<compile_context>
chip_gen: v6e
topology: v6e:2x2x1
jax: 0.10.0
libtpu: 0.0.40
codegen_flags: <defaults>
</compile_context>

<pallas_src>
import math

import jax
import jax.numpy as jnp
from jax import lax
from jax.experimental import pallas as pl
from jax.experimental.pallas import tpu as pltpu


def _round_up(x, m):
    return ((x + m - 1) // m) * m


# ---------------------------------------------------------------------------
# Fused kernel: all LSTM layers + fc1 + sigmoid.
# ---------------------------------------------------------------------------
def fused_lstm_kernel(x_ref, wih_ref, whh_ref, b_ref, wfc_ref, bfc_ref,
                      out_ref, seq0, seq1, gx_ref):
    """Shapes (feature dims padded to DW, multiple of 128; G = 4*DW):

    x_ref   : (T, Bb, DW)  bf16  input sequence block (time-major)
    wih_ref : (L, DW, G)   bf16  W_ih^T per layer, gate-blocked, zero padded
    whh_ref : (L, DW, G)   bf16  W_hh^T per layer, gate-blocked, zero padded
    b_ref   : (L, 1, G)    f32   b_ih + b_hh per layer, gate-blocked
    wfc_ref : (1, DW)      f32   fc1 weight row (zero padded)
    bfc_ref : (1, 1)       f32   fc1 bias
    out_ref : (Bb, 128)    f32   sigmoid(fc1(h_T)) broadcast along lanes
    seq0/1  : (T, Bb, DW)  bf16  scratch: ping-pong hidden-state sequences
    gx_ref  : (T, Bb, G)   f32   scratch: hoisted input projection (all t)
    """
    T, Bb, DW = x_ref.shape
    L = wih_ref.shape[0]
    G = whh_ref.shape[2]

    seq_bufs = (seq0, seq1)
    h_last = None

    for l in range(L):                       # static layer loop (fully fused)
        is_last = (l == L - 1)
        dst = seq_bufs[l % 2]

        # --- hoisted input projection: one big MXU matmul over all T*Bb rows,
        #     bias folded in once (no per-step bias re-broadcast).
        if l == 0:
            x_mat = x_ref[...].reshape(T * Bb, DW)                 # bf16
        else:
            x_mat = seq_bufs[(l - 1) % 2][...].reshape(T * Bb, DW)  # bf16
        gx = jnp.dot(x_mat, wih_ref[l], preferred_element_type=jnp.float32)
        gx_ref[...] = (gx + b_ref[l]).reshape(T, Bb, G)

        # --- per-layer constants hoisted out of the serial time loop.
        whh_l = whh_ref[l]                                          # (DW, G) bf16

        # --- serial recurrence: only h @ W_hh^T + gates per step.
        def step(t, carry, dst=dst, is_last=is_last, whh_l=whh_l):
            h, c = carry                                            # f32 (Bb, DW)
            g = gx_ref[t] + jnp.dot(h.astype(jnp.bfloat16), whh_l,
                                    preferred_element_type=jnp.float32)
            # PyTorch gate order [i, f, g, o]; each slice is lane-aligned (DW).
            i_g = jax.nn.sigmoid(g[:, 0 * DW:1 * DW])
            f_g = jax.nn.sigmoid(g[:, 1 * DW:2 * DW])
            g_g = jnp.tanh(g[:, 2 * DW:3 * DW])
            o_g = jax.nn.sigmoid(g[:, 3 * DW:4 * DW])
            c_new = f_g * c + i_g * g_g
            h_new = o_g * jnp.tanh(c_new)
            if not is_last:                  # last layer's sequence is dead
                dst[t] = h_new.astype(jnp.bfloat16)   # feed next layer (VMEM)
            return h_new, c_new

        h0 = jnp.zeros((Bb, DW), jnp.float32)   # h0 = c0 = 0 (matches PyTorch)
        c0 = jnp.zeros((Bb, DW), jnp.float32)
        h_last, _ = lax.fori_loop(0, T, step, (h0, c0),
                                  unroll=True if T <= 32 else 4)

    # --- fc1 + sigmoid head: lane-wise multiply + cross-lane reduce (no N=1
    #     matmul), stored lane-dense into a (Bb, 128) tile.
    logit = jnp.sum(h_last * wfc_ref[...], axis=-1, keepdims=True) + bfc_ref[...]
    out_ref[...] = jnp.broadcast_to(jax.nn.sigmoid(logit), out_ref.shape)


# ---------------------------------------------------------------------------
# Wrapper
# ---------------------------------------------------------------------------
def lstm_multitask_forward(x, packed):
    """x: (B, T, input_size), batch_first — returns (B, 1) sigmoid output."""
    B, T, Din = x.shape
    DW = packed["wih"].shape[1]
    G = 4 * DW

    B_pad = _round_up(max(B, 8), 8)          # >= 8 sublanes
    B_blk = min(B_pad, 128)                  # batch block (grid axis)
    B_pad = _round_up(B_pad, B_blk)
    n_blk = B_pad // B_blk

    # time-major, zero-pad batch/feature dims, bf16 operands for the MXU.
    x_t = jnp.transpose(x, (1, 0, 2)).astype(jnp.float32)        # (T, B, Din)
    x_t = jnp.pad(x_t, ((0, 0), (0, B_pad - B), (0, DW - Din)))
    x_t = x_t.astype(jnp.bfloat16)

    out = pl.pallas_call(
        fused_lstm_kernel,
        out_shape=jax.ShapeDtypeStruct((B_pad, 128), jnp.float32),
        grid=(n_blk,),
        in_specs=[
            pl.BlockSpec((T, B_blk, DW), lambda b: (0, b, 0)),
            pl.BlockSpec(packed["wih"].shape, lambda b: (0, 0, 0)),
            pl.BlockSpec(packed["whh"].shape, lambda b: (0, 0, 0)),
            pl.BlockSpec(packed["b"].shape, lambda b: (0, 0, 0)),
            pl.BlockSpec(packed["fc1_w"].shape, lambda b: (0, 0)),
            pl.BlockSpec(packed["fc1_b"].shape, lambda b: (0, 0)),
        ],
        out_specs=pl.BlockSpec((B_blk, 128), lambda b: (b, 0)),
        scratch_shapes=[
            pltpu.VMEM((T, B_blk, DW), jnp.bfloat16),  # seq ping
            pltpu.VMEM((T, B_blk, DW), jnp.bfloat16),  # seq pong
            pltpu.VMEM((T, B_blk, G), jnp.float32),    # hoisted gates_x
        ],
        compiler_params=pltpu.CompilerParams(
            dimension_semantics=("parallel",)),        # megacore sharding
    )(x_t, packed["wih"], packed["whh"], packed["b"],
      packed["fc1_w"], packed["fc1_b"])

    return out[:B, :1]


# ---------------------------------------------------------------------------
# Parameter preparation (PyTorch layout -> padded / gate-blocked / stacked)
# ---------------------------------------------------------------------------
def _pack_lstm_weights(w_ih, w_hh, b_ih, b_hh, DW):
    """PyTorch LSTM weights (4H, d_in)/(4H, H)/(4H,) -> padded transposed."""
    four_h = w_ih.shape[0]
    H = four_h // 4
    d_in = w_ih.shape[1]
    wih_p = jnp.zeros((DW, 4 * DW), jnp.float32)
    whh_p = jnp.zeros((DW, 4 * DW), jnp.float32)
    b_p = jnp.zeros((1, 4 * DW), jnp.float32)
    for k in range(4):                                  # gate order i, f, g, o
        wih_p = wih_p.at[:d_in, k * DW:k * DW + H].set(w_ih[k * H:(k + 1) * H, :].T)
        whh_p = whh_p.at[:H, k * DW:k * DW + H].set(w_hh[k * H:(k + 1) * H, :].T)
        b_p = b_p.at[0, k * DW:k * DW + H].set(
            b_ih[k * H:(k + 1) * H] + b_hh[k * H:(k + 1) * H])
    return wih_p, whh_p, b_p


def pack_params(raw, input_size, hidden_size):
    DW = _round_up(max(input_size, hidden_size, 128), 128)
    wihs, whhs, bs = [], [], []
    for (w_ih, w_hh, b_ih, b_hh) in raw["lstm"]:
        wih_p, whh_p, b_p = _pack_lstm_weights(w_ih, w_hh, b_ih, b_hh, DW)
        wihs.append(wih_p)
        whhs.append(whh_p)
        bs.append(b_p)
    H = hidden_size
    fc_w = jnp.zeros((1, DW), jnp.float32).at[0, :H].set(raw["fc1_w"][0])
    fc_b = raw["fc1_b"].reshape(1, 1).astype(jnp.float32)
    return {
        "wih": jnp.stack(wihs).astype(jnp.bfloat16),    # (L, DW, 4*DW)
        "whh": jnp.stack(whhs).astype(jnp.bfloat16),    # (L, DW, 4*DW)
        "b": jnp.stack(bs),                             # (L, 1, 4*DW) f32
        "fc1_w": fc_w,                                  # (1, DW) f32
        "fc1_b": fc_b,                                  # (1, 1) f32
    }


def init_raw_params(key, input_size, hidden_size, num_layers):
    """Mirrors PyTorch default uniform init (raw nn.LSTM / nn.Linear layout)."""
    k = 1.0 / math.sqrt(hidden_size)
    raw = {"lstm": []}
    for layer in range(num_layers):
        d_in = input_size if layer == 0 else hidden_size
        key, k1, k2, k3, k4 = jax.random.split(key, 5)
        w_ih = jax.random.uniform(k1, (4 * hidden_size, d_in),
                                  minval=-k, maxval=k, dtype=jnp.float32)
        w_hh = jax.random.uniform(k2, (4 * hidden_size, hidden_size),
                                  minval=-k, maxval=k, dtype=jnp.float32)
        b_ih = jax.random.uniform(k3, (4 * hidden_size,),
                                  minval=-k, maxval=k, dtype=jnp.float32)
        b_hh = jax.random.uniform(k4, (4 * hidden_size,),
                                  minval=-k, maxval=k, dtype=jnp.float32)
        raw["lstm"].append((w_ih, w_hh, b_ih, b_hh))
    key, k5, k6 = jax.random.split(key, 3)
    raw["fc1_w"] = jax.random.uniform(k5, (1, hidden_size),
                                      minval=-k, maxval=k, dtype=jnp.float32)
    raw["fc1_b"] = jax.random.uniform(k6, (1,),
                                      minval=-k, maxval=k, dtype=jnp.float32)
    # fc2 exists in the PyTorch __init__ but forward() never uses it; omitted.
    return raw


# ---------------------------------------------------------------------------
# Pure-JAX reference (matches the kernel's bf16-matmul / f32-accumulate math)
# ---------------------------------------------------------------------------
def reference_forward(x, raw):
    B, T, _ = x.shape
    seq = x.astype(jnp.float32)
    for (w_ih, w_hh, b_ih, b_hh) in raw["lstm"]:
        H = w_hh.shape[1]
        h = jnp.zeros((B, H), jnp.float32)
        c = jnp.zeros((B, H), jnp.float32)
        wih_t = w_ih.T.astype(jnp.bfloat16)
        whh_t = w_hh.T.astype(jnp.bfloat16)
        bias = (b_ih + b_hh)[None, :]
        outs = []
        for t in range(T):
            xt = seq[:, t, :].astype(jnp.bfloat16)
            gates = (jnp.dot(xt, wih_t, preferred_element_type=jnp.float32)
                     + jnp.dot(h.astype(jnp.bfloat16), whh_t,
                               preferred_element_type=jnp.float32)
                     + bias)
            i_g = jax.nn.sigmoid(gates[:, 0 * H:1 * H])
            f_g = jax.nn.sigmoid(gates[:, 1 * H:2 * H])
            g_g = jnp.tanh(gates[:, 2 * H:3 * H])
            o_g = jax.nn.sigmoid(gates[:, 3 * H:4 * H])
            c = f_g * c + i_g * g_g
            h = o_g * jnp.tanh(c)
            outs.append(h)
        seq = jnp.stack(outs, axis=1)
    logit = seq[:, -1, :] @ raw["fc1_w"].T + raw["fc1_b"][None, :]
    return jax.nn.sigmoid(logit)


# ---------------------------------------------------------------------------
if __name__ == "__main__":
    B, T = 2, 8
    input_size, hidden_size, num_layers = 16, 32, 2

    key = jax.random.PRNGKey(0)
    key, kx = jax.random.split(key)
    x = jax.random.normal(kx, (B, T, input_size), dtype=jnp.float32)

    raw = init_raw_params(key, input_size, hidden_size, num_layers)
    packed = pack_params(raw, input_size, hidden_size)

    fwd = jax.jit(lstm_multitask_forward)
    out = jax.block_until_ready(fwd(x, packed))
    assert out.shape == (B, 1), out.shape
    assert bool(jnp.all(jnp.isfinite(out)))
    assert bool(jnp.all((out >= 0.0) & (out <= 1.0)))

    ref = jax.block_until_ready(reference_forward(x, raw))
    assert bool(jnp.allclose(out, ref, atol=1e-3, rtol=1e-3)), (out, ref)

    print("KERNEL_OK")
</pallas_src>

<mosaic_0001>
module attributes {stable_mosaic.version = 11 : i64} {
  func.func @fused_lstm_kernel(%arg0: i32, %arg1: memref<8x8x128xbf16, #tpu.memory_space<vmem>>, %arg2: memref<2x128x512xbf16, #tpu.memory_space<vmem>>, %arg3: memref<2x128x512xbf16, #tpu.memory_space<vmem>>, %arg4: memref<2x1x512xf32, #tpu.memory_space<vmem>>, %arg5: memref<1x128xf32, #tpu.memory_space<vmem>>, %arg6: memref<1x1xf32, #tpu.memory_space<vmem>>, %arg7: memref<8x128xf32, #tpu.memory_space<vmem>>, %arg8: memref<8x8x128xbf16, #tpu.memory_space<vmem>>, %arg9: memref<8x8x128xbf16, #tpu.memory_space<vmem>>, %arg10: memref<8x8x512xf32, #tpu.memory_space<vmem>>) attributes {dimension_semantics = [#tpu.dimension_semantics<parallel>], iteration_bounds = array<i64: 1>, scalar_prefetch = 0 : i64, scratch_operands = 3 : i64, tpu.core_type = #tpu.core_type<tc>, window_params = [{transform_indices = @transform_0, window_bounds = array<i64: 8, 8, 128>}, {pipeline_mode = #tpu.pipeline_mode<synchronous>, transform_indices = @transform_1, window_bounds = array<i64: 2, 128, 512>}, {pipeline_mode = #tpu.pipeline_mode<synchronous>, transform_indices = @transform_2, window_bounds = array<i64: 2, 128, 512>}, {pipeline_mode = #tpu.pipeline_mode<synchronous>, transform_indices = @transform_3, window_bounds = array<i64: 2, 1, 512>}, {pipeline_mode = #tpu.pipeline_mode<synchronous>, transform_indices = @transform_4, window_bounds = array<i64: 1, 128>}, {pipeline_mode = #tpu.pipeline_mode<synchronous>, transform_indices = @transform_5, window_bounds = array<i64: 1, 1>}, {transform_indices = @transform_6, window_bounds = array<i64: 8, 128>}]} {
    %c0 = arith.constant 0 : index
    %c0_0 = arith.constant 0 : index
    %c0_1 = arith.constant 0 : index
    %0 = vector.load %arg1[%c0, %c0_0, %c0_1] : memref<8x8x128xbf16, #tpu.memory_space<vmem>>, vector<8x8x128xbf16>
    %1 = vector.shape_cast %0 : vector<8x8x128xbf16> to vector<64x128xbf16>
    %c0_2 = arith.constant 0 : index
    %c0_3 = arith.constant 0 : index
    %c0_4 = arith.constant 0 : index
    %2 = vector.load %arg2[%c0_2, %c0_3, %c0_4] : memref<2x128x512xbf16, #tpu.memory_space<vmem>>, vector<1x128x512xbf16>
    %3 = vector.shape_cast %2 : vector<1x128x512xbf16> to vector<128x512xbf16>
    %cst = arith.constant dense<0.000000e+00> : vector<64x512xf32>
    %4 = tpu.matmul %1, %3, %cst {dimension_numbers = #tpu.dot_dimension_numbers<[1], [0], [0], [1], [0, 0, 1, 1], [], []>} : vector<64x128xbf16>, vector<128x512xbf16>, vector<64x512xf32> -> vector<64x512xf32>
    %c0_5 = arith.constant 0 : index
    %c0_6 = arith.constant 0 : index
    %c0_7 = arith.constant 0 : index
    %5 = vector.load %arg4[%c0_5, %c0_6, %c0_7] : memref<2x1x512xf32, #tpu.memory_space<vmem>>, vector<1x1x512xf32>
    %6 = vector.shape_cast %5 : vector<1x1x512xf32> to vector<1x512xf32>
    %7 = vector.broadcast %6 : vector<1x512xf32> to vector<64x512xf32>
    %8 = arith.addf %4, %7 : vector<64x512xf32>
    %9 = vector.shape_cast %8 : vector<64x512xf32> to vector<8x8x512xf32>
    %c0_8 = arith.constant 0 : index
    %c0_9 = arith.constant 0 : index
    %c0_10 = arith.constant 0 : index
    %10 = vector.load %arg10[%c0_8, %c0_9, %c0_10] : memref<8x8x512xf32, #tpu.memory_space<vmem>>, vector<8x8x512xf32>
    tpu.vector_store %arg10[%c0_8, %c0_9, %c0_10], %9 {strides = array<i32>} : memref<8x8x512xf32, #tpu.memory_space<vmem>>, vector<8x8x512xf32>,
    %c0_11 = arith.constant 0 : index
    %c0_12 = arith.constant 0 : index
    %c0_13 = arith.constant 0 : index
    %11 = vector.load %arg3[%c0_11, %c0_12, %c0_13] : memref<2x128x512xbf16, #tpu.memory_space<vmem>>, vector<1x128x512xbf16>
    %12 = vector.shape_cast %11 : vector<1x128x512xbf16> to vector<128x512xbf16>
    %cst_14 = arith.constant 0.000000e+00 : f32
    %13 = vector.broadcast %cst_14 : f32 to vector<8x128xf32>
    %cst_15 = arith.constant 0.000000e+00 : f32
    %14 = vector.broadcast %cst_15 : f32 to vector<8x128xf32>
    %c0_i32 = arith.constant 0 : i32
    %15 = arith.index_cast %c0_i32 : i32 to index
    %c0_16 = arith.constant 0 : index
    %c0_17 = arith.constant 0 : index
    %16 = vector.load %arg10[%15, %c0_16, %c0_17] : memref<8x8x512xf32, #tpu.memory_space<vmem>>, vector<1x8x512xf32>
    %17 = vector.shape_cast %16 : vector<1x8x512xf32> to vector<8x512xf32>
    %18 = arith.truncf %13 : vector<8x128xf32> to vector<8x128xbf16>
    %cst_18 = arith.constant dense<0.000000e+00> : vector<8x512xf32>
    %19 = tpu.matmul %18, %12, %cst_18 {dimension_numbers = #tpu.dot_dimension_numbers<[1], [0], [0], [1], [0, 0, 1, 1], [], []>} : vector<8x128xbf16>, vector<128x512xbf16>, vector<8x512xf32> -> vector<8x512xf32>
    %20 = arith.addf %17, %19 : vector<8x512xf32>
    %21 = vector.extract_strided_slice %20 {offsets = [0, 0], sizes = [8, 128], strides = [1, 1]} : vector<8x512xf32> to vector<8x128xf32>
    %22 = arith.negf %21 : vector<8x128xf32>
    %23 = math.exp %22 : vector<8x128xf32>
    %cst_19 = arith.constant 1.000000e+00 : f32
    %24 = vector.broadcast %cst_19 : f32 to vector<8x128xf32>
    %25 = arith.addf %24, %23 : vector<8x128xf32>
    %26 = arith.divf %24, %25 : vector<8x128xf32>
    %27 = vector.extract_strided_slice %20 {offsets = [0, 128], sizes = [8, 128], strides = [1, 1]} : vector<8x512xf32> to vector<8x128xf32>
    %28 = arith.negf %27 : vector<8x128xf32>
    %29 = math.exp %28 : vector<8x128xf32>
    %cst_20 = arith.constant 1.000000e+00 : f32
    %30 = vector.broadcast %cst_20 : f32 to vector<8x128xf32>
    %31 = arith.addf %30, %29 : vector<8x128xf32>
    %32 = arith.divf %30, %31 : vector<8x128xf32>
    %33 = vector.extract_strided_slice %20 {offsets = [0, 256], sizes = [8, 128], strides = [1, 1]} : vector<8x512xf32> to vector<8x128xf32>
    %34 = math.tanh %33 : vector<8x128xf32>
    %35 = vector.extract_strided_slice %20 {offsets = [0, 384], sizes = [8, 128], strides = [1, 1]} : vector<8x512xf32> to vector<8x128xf32>
    %36 = arith.negf %35 : vector<8x128xf32>
    %37 = math.exp %36 : vector<8x128xf32>
    %cst_21 = arith.constant 1.000000e+00 : f32
    %38 = vector.broadcast %cst_21 : f32 to vector<8x128xf32>
    %39 = arith.addf %38, %37 : vector<8x128xf32>
    %40 = arith.divf %38, %39 : vector<8x128xf32>
    %41 = arith.mulf %32, %14 : vector<8x128xf32>
    %42 = arith.mulf %26, %34 : vector<8x128xf32>
    %43 = arith.addf %41, %42 : vector<8x128xf32>
    %44 = math.tanh %43 : vector<8x128xf32>
    %45 = arith.mulf %40, %44 : vector<8x128xf32>
    %46 = arith.truncf %45 : vector<8x128xf32> to vector<8x128xbf16>
    %47 = arith.index_cast %c0_i32 : i32 to index
    %c0_22 = arith.constant 0 : index
    %c0_23 = arith.constant 0 : index
    %48 = vector.load %arg8[%47, %c0_22, %c0_23] : memref<8x8x128xbf16, #tpu.memory_space<vmem>>, vector<1x8x128xbf16>
    %49 = vector.shape_cast %48 : vector<1x8x128xbf16> to vector<8x128xbf16>
    %50 = vector.shape_cast %46 : vector<8x128xbf16> to vector<1x8x128xbf16>
    tpu.vector_store %arg8[%47, %c0_22, %c0_23], %50 {strides = array<i32>} : memref<8x8x128xbf16, #tpu.memory_space<vmem>>, vector<1x8x128xbf16>,
    %c1_i32 = arith.constant 1 : i32
    %51 = arith.index_cast %c1_i32 : i32 to index
    %c0_24 = arith.constant 0 : index
    %c0_25 = arith.constant 0 : index
    %52 = vector.load %arg10[%51, %c0_24, %c0_25] : memref<8x8x512xf32, #tpu.memory_space<vmem>>, vector<1x8x512xf32>
    %53 = vector.shape_cast %52 : vector<1x8x512xf32> to vector<8x512xf32>
    %54 = arith.truncf %45 : vector<8x128xf32> to vector<8x128xbf16>
    %cst_26 = arith.constant dense<0.000000e+00> : vector<8x512xf32>
    %55 = tpu.matmul %54, %12, %cst_26 {dimension_numbers = #tpu.dot_dimension_numbers<[1], [0], [0], [1], [0, 0, 1, 1], [], []>} : vector<8x128xbf16>, vector<128x512xbf16>, vector<8x512xf32> -> vector<8x512xf32>
    %56 = arith.addf %53, %55 : vector<8x512xf32>
    %57 = vector.extract_strided_slice %56 {offsets = [0, 0], sizes = [8, 128], strides = [1, 1]} : vector<8x512xf32> to vector<8x128xf32>
    %58 = arith.negf %57 : vector<8x128xf32>
    %59 = math.exp %58 : vector<8x128xf32>
    %cst_27 = arith.constant 1.000000e+00 : f32
    %60 = vector.broadcast %cst_27 : f32 to vector<8x128xf32>
    %61 = arith.addf %60, %59 : vector<8x128xf32>
    %62 = arith.divf %60, %61 : vector<8x128xf32>
    %63 = vector.extract_strided_slice %56 {offsets = [0, 128], sizes = [8, 128], strides = [1, 1]} : vector<8x512xf32> to vector<8x128xf32>
    %64 = arith.negf %63 : vector<8x128xf32>
    %65 = math.exp %64 : vector<8x128xf32>
    %cst_28 = arith.constant 1.000000e+00 : f32
    %66 = vector.broadcast %cst_28 : f32 to vector<8x128xf32>
    %67 = arith.addf %66, %65 : vector<8x128xf32>
    %68 = arith.divf %66, %67 : vector<8x128xf32>
    %69 = vector.extract_strided_slice %56 {offsets = [0, 256], sizes = [8, 128], strides = [1, 1]} : vector<8x512xf32> to vector<8x128xf32>
    %70 = math.tanh %69 : vector<8x128xf32>
    %71 = vector.extract_strided_slice %56 {offsets = [0, 384], sizes = [8, 128], strides = [1, 1]} : vector<8x512xf32> to vector<8x128xf32>
    %72 = arith.negf %71 : vector<8x128xf32>
    %73 = math.exp %72 : vector<8x128xf32>
    %cst_29 = arith.constant 1.000000e+00 : f32
    %74 = vector.broadcast %cst_29 : f32 to vector<8x128xf32>
    %75 = arith.addf %74, %73 : vector<8x128xf32>
    %76 = arith.divf %74, %75 : vector<8x128xf32>
    %77 = arith.mulf %68, %43 : vector<8x128xf32>
    %78 = arith.mulf %62, %70 : vector<8x128xf32>
    %79 = arith.addf %77, %78 : vector<8x128xf32>
    %80 = math.tanh %79 : vector<8x128xf32>
    %81 = arith.mulf %76, %80 : vector<8x128xf32>
    %82 = arith.truncf %81 : vector<8x128xf32> to vector<8x128xbf16>
    %83 = arith.index_cast %c1_i32 : i32 to index
    %c0_30 = arith.constant 0 : index
    %c0_31 = arith.constant 0 : index
    %84 = vector.load %arg8[%83, %c0_30, %c0_31] : memref<8x8x128xbf16, #tpu.memory_space<vmem>>, vector<1x8x128xbf16>
    %85 = vector.shape_cast %84 : vector<1x8x128xbf16> to vector<8x128xbf16>
    %86 = vector.shape_cast %82 : vector<8x128xbf16> to vector<1x8x128xbf16>
    tpu.vector_store %arg8[%83, %c0_30, %c0_31], %86 {strides = array<i32>} : memref<8x8x128xbf16, #tpu.memory_space<vmem>>, vector<1x8x128xbf16>,
    %c2_i32 = arith.constant 2 : i32
    %87 = arith.index_cast %c2_i32 : i32 to index
    %c0_32 = arith.constant 0 : index
    %c0_33 = arith.constant 0 : index
    %88 = vector.load %arg10[%87, %c0_32, %c0_33] : memref<8x8x512xf32, #tpu.memory_space<vmem>>, vector<1x8x512xf32>
    %89 = vector.shape_cast %88 : vector<1x8x512xf32> to vector<8x512xf32>
    %90 = arith.truncf %81 : vector<8x128xf32> to vector<8x128xbf16>
    %cst_34 = arith.constant dense<0.000000e+00> : vector<8x512xf32>
    %91 = tpu.matmul %90, %12, %cst_34 {dimension_numbers = #tpu.dot_dimension_numbers<[1], [0], [0], [1], [0, 0, 1, 1], [], []>} : vector<8x128xbf16>, vector<128x512xbf16>, vector<8x512xf32> -> vector<8x512xf32>
    %92 = arith.addf %89, %91 : vector<8x512xf32>
    %93 = vector.extract_strided_slice %92 {offsets = [0, 0], sizes = [8, 128], strides = [1, 1]} : vector<8x512xf32> to vector<8x128xf32>
    %94 = arith.negf %93 : vector<8x128xf32>
    %95 = math.exp %94 : vector<8x128xf32>
    %cst_35 = arith.constant 1.000000e+00 : f32
    %96 = vector.broadcast %cst_35 : f32 to vector<8x128xf32>
    %97 = arith.addf %96, %95 : vector<8x128xf32>
    %98 = arith.divf %96, %97 : vector<8x128xf32>
    %99 = vector.extract_strided_slice %92 {offsets = [0, 128], sizes = [8, 128], strides = [1, 1]} : vector<8x512xf32> to vector<8x128xf32>
    %100 = arith.negf %99 : vector<8x128xf32>
    %101 = math.exp %100 : vector<8x128xf32>
    %cst_36 = arith.constant 1.000000e+00 : f32
    %102 = vector.broadcast %cst_36 : f32 to vector<8x128xf32>
    %103 = arith.addf %102, %101 : vector<8x128xf32>
    %104 = arith.divf %102, %103 : vector<8x128xf32>
    %105 = vector.extract_strided_slice %92 {offsets = [0, 256], sizes = [8, 128], strides = [1, 1]} : vector<8x512xf32> to vector<8x128xf32>
    %106 = math.tanh %105 : vector<8x128xf32>
    %107 = vector.extract_strided_slice %92 {offsets = [0, 384], sizes = [8, 128], strides = [1, 1]} : vector<8x512xf32> to vector<8x128xf32>
    %108 = arith.negf %107 : vector<8x128xf32>
    %109 = math.exp %108 : vector<8x128xf32>
    %cst_37 = arith.constant 1.000000e+00 : f32
    %110 = vector.broadcast %cst_37 : f32 to vector<8x128xf32>
    %111 = arith.addf %110, %109 : vector<8x128xf32>
    %112 = arith.divf %110, %111 : vector<8x128xf32>
    %113 = arith.mulf %104, %79 : vector<8x128xf32>
    %114 = arith.mulf %98, %106 : vector<8x128xf32>
    %115 = arith.addf %113, %114 : vector<8x128xf32>
    %116 = math.tanh %115 : vector<8x128xf32>
    %117 = arith.mulf %112, %116 : vector<8x128xf32>
    %118 = arith.truncf %117 : vector<8x128xf32> to vector<8x128xbf16>
    %119 = arith.index_cast %c2_i32 : i32 to index
    %c0_38 = arith.constant 0 : index
    %c0_39 = arith.constant 0 : index
    %120 = vector.load %arg8[%119, %c0_38, %c0_39] : memref<8x8x128xbf16, #tpu.memory_space<vmem>>, vector<1x8x128xbf16>
    %121 = vector.shape_cast %120 : vector<1x8x128xbf16> to vector<8x128xbf16>
    %122 = vector.shape_cast %118 : vector<8x128xbf16> to vector<1x8x128xbf16>
    tpu.vector_store %arg8[%119, %c0_38, %c0_39], %122 {strides = array<i32>} : memref<8x8x128xbf16, #tpu.memory_space<vmem>>, vector<1x8x128xbf16>,
    %c3_i32 = arith.constant 3 : i32
    %123 = arith.index_cast %c3_i32 : i32 to index
    %c0_40 = arith.constant 0 : index
    %c0_41 = arith.constant 0 : index
    %124 = vector.load %arg10[%123, %c0_40, %c0_41] : memref<8x8x512xf32, #tpu.memory_space<vmem>>, vector<1x8x512xf32>
    %125 = vector.shape_cast %124 : vector<1x8x512xf32> to vector<8x512xf32>
    %126 = arith.truncf %117 : vector<8x128xf32> to vector<8x128xbf16>
    %cst_42 = arith.constant dense<0.000000e+00> : vector<8x512xf32>
    %127 = tpu.matmul %126, %12, %cst_42 {dimension_numbers = #tpu.dot_dimension_numbers<[1], [0], [0], [1], [0, 0, 1, 1], [], []>} : vector<8x128xbf16>, vector<128x512xbf16>, vector<8x512xf32> -> vector<8x512xf32>
    %128 = arith.addf %125, %127 : vector<8x512xf32>
    %129 = vector.extract_strided_slice %128 {offsets = [0, 0], sizes = [8, 128], strides = [1, 1]} : vector<8x512xf32> to vector<8x128xf32>
    %130 = arith.negf %129 : vector<8x128xf32>
    %131 = math.exp %130 : vector<8x128xf32>
    %cst_43 = arith.constant 1.000000e+00 : f32
    %132 = vector.broadcast %cst_43 : f32 to vector<8x128xf32>
    %133 = arith.addf %132, %131 : vector<8x128xf32>
    %134 = arith.divf %132, %133 : vector<8x128xf32>
    %135 = vector.extract_strided_slice %128 {offsets = [0, 128], sizes = [8, 128], strides = [1, 1]} : vector<8x512xf32> to vector<8x128xf32>
    %136 = arith.negf %135 : vector<8x128xf32>
    %137 = math.exp %136 : vector<8x128xf32>
    %cst_44 = arith.constant 1.000000e+00 : f32
    %138 = vector.broadcast %cst_44 : f32 to vector<8x128xf32>
    %139 = arith.addf %138, %137 : vector<8x128xf32>
    %140 = arith.divf %138, %139 : vector<8x128xf32>
    %141 = vector.extract_strided_slice %128 {offsets = [0, 256], sizes = [8, 128], strides = [1, 1]} : vector<8x512xf32> to vector<8x128xf32>
    %142 = math.tanh %141 : vector<8x128xf32>
    %143 = vector.extract_strided_slice %128 {offsets = [0, 384], sizes = [8, 128], strides = [1, 1]} : vector<8x512xf32> to vector<8x128xf32>
    %144 = arith.negf %143 : vector<8x128xf32>
    %145 = math.exp %144 : vector<8x128xf32>
    %cst_45 = arith.constant 1.000000e+00 : f32
    %146 = vector.broadcast %cst_45 : f32 to vector<8x128xf32>
    %147 = arith.addf %146, %145 : vector<8x128xf32>
    %148 = arith.divf %146, %147 : vector<8x128xf32>
    %149 = arith.mulf %140, %115 : vector<8x128xf32>
    %150 = arith.mulf %134, %142 : vector<8x128xf32>
    %151 = arith.addf %149, %150 : vector<8x128xf32>
    %152 = math.tanh %151 : vector<8x128xf32>
    %153 = arith.mulf %148, %152 : vector<8x128xf32>
    %154 = arith.truncf %153 : vector<8x128xf32> to vector<8x128xbf16>
    %155 = arith.index_cast %c3_i32 : i32 to index
    %c0_46 = arith.constant 0 : index
    %c0_47 = arith.constant 0 : index
    %156 = vector.load %arg8[%155, %c0_46, %c0_47] : memref<8x8x128xbf16, #tpu.memory_space<vmem>>, vector<1x8x128xbf16>
    %157 = vector.shape_cast %156 : vector<1x8x128xbf16> to vector<8x128xbf16>
    %158 = vector.shape_cast %154 : vector<8x128xbf16> to vector<1x8x128xbf16>
    tpu.vector_store %arg8[%155, %c0_46, %c0_47], %158 {strides = array<i32>} : memref<8x8x128xbf16, #tpu.memory_space<vmem>>, vector<1x8x128xbf16>,
    %c4_i32 = arith.constant 4 : i32
    %159 = arith.index_cast %c4_i32 : i32 to index
    %c0_48 = arith.constant 0 : index
    %c0_49 = arith.constant 0 : index
    %160 = vector.load %arg10[%159, %c0_48, %c0_49] : memref<8x8x512xf32, #tpu.memory_space<vmem>>, vector<1x8x512xf32>
    %161 = vector.shape_cast %160 : vector<1x8x512xf32> to vector<8x512xf32>
    %162 = arith.truncf %153 : vector<8x128xf32> to vector<8x128xbf16>
    %cst_50 = arith.constant dense<0.000000e+00> : vector<8x512xf32>
    %163 = tpu.matmul %162, %12, %cst_50 {dimension_numbers = #tpu.dot_dimension_numbers<[1], [0], [0], [1], [0, 0, 1, 1], [], []>} : vector<8x128xbf16>, vector<128x512xbf16>, vector<8x512xf32> -> vector<8x512xf32>
    %164 = arith.addf %161, %163 : vector<8x512xf32>
    %165 = vector.extract_strided_slice %164 {offsets = [0, 0], sizes = [8, 128], strides = [1, 1]} : vector<8x512xf32> to vector<8x128xf32>
    %166 = arith.negf %165 : vector<8x128xf32>
    %167 = math.exp %166 : vector<8x128xf32>
    %cst_51 = arith.constant 1.000000e+00 : f32
    %168 = vector.broadcast %cst_51 : f32 to vector<8x128xf32>
    %169 = arith.addf %168, %167 : vector<8x128xf32>
    %170 = arith.divf %168, %169 : vector<8x128xf32>
    %171 = vector.extract_strided_slice %164 {offsets = [0, 128], sizes = [8, 128], strides = [1, 1]} : vector<8x512xf32> to vector<8x128xf32>
    %172 = arith.negf %171 : vector<8x128xf32>
    %173 = math.exp %172 : vector<8x128xf32>
    %cst_52 = arith.constant 1.000000e+00 : f32
    %174 = vector.broadcast %cst_52 : f32 to vector<8x128xf32>
    %175 = arith.addf %174, %173 : vector<8x128xf32>
    %176 = arith.divf %174, %175 : vector<8x128xf32>
    %177 = vector.extract_strided_slice %164 {offsets = [0, 256], sizes = [8, 128], strides = [1, 1]} : vector<8x512xf32> to vector<8x128xf32>
    %178 = math.tanh %177 : vector<8x128xf32>
    %179 = vector.extract_strided_slice %164 {offsets = [0, 384], sizes = [8, 128], strides = [1, 1]} : vector<8x512xf32> to vector<8x128xf32>
    %180 = arith.negf %179 : vector<8x128xf32>
    %181 = math.exp %180 : vector<8x128xf32>
    %cst_53 = arith.constant 1.000000e+00 : f32
    %182 = vector.broadcast %cst_53 : f32 to vector<8x128xf32>
    %183 = arith.addf %182, %181 : vector<8x128xf32>
    %184 = arith.divf %182, %183 : vector<8x128xf32>
    %185 = arith.mulf %176, %151 : vector<8x128xf32>
    %186 = arith.mulf %170, %178 : vector<8x128xf32>
    %187 = arith.addf %185, %186 : vector<8x128xf32>
    %188 = math.tanh %187 : vector<8x128xf32>
    %189 = arith.mulf %184, %188 : vector<8x128xf32>
    %190 = arith.truncf %189 : vector<8x128xf32> to vector<8x128xbf16>
    %191 = arith.index_cast %c4_i32 : i32 to index
    %c0_54 = arith.constant 0 : index
    %c0_55 = arith.constant 0 : index
    %192 = vector.load %arg8[%191, %c0_54, %c0_55] : memref<8x8x128xbf16, #tpu.memory_space<vmem>>, vector<1x8x128xbf16>
    %193 = vector.shape_cast %192 : vector<1x8x128xbf16> to vector<8x128xbf16>
    %194 = vector.shape_cast %190 : vector<8x128xbf16> to vector<1x8x128xbf16>
    tpu.vector_store %arg8[%191, %c0_54, %c0_55], %194 {strides = array<i32>} : memref<8x8x128xbf16, #tpu.memory_space<vmem>>, vector<1x8x128xbf16>,
    %c5_i32 = arith.constant 5 : i32
    %195 = arith.index_cast %c5_i32 : i32 to index
    %c0_56 = arith.constant 0 : index
    %c0_57 = arith.constant 0 : index
    %196 = vector.load %arg10[%195, %c0_56, %c0_57] : memref<8x8x512xf32, #tpu.memory_space<vmem>>, vector<1x8x512xf32>
    %197 = vector.shape_cast %196 : vector<1x8x512xf32> to vector<8x512xf32>
    %198 = arith.truncf %189 : vector<8x128xf32> to vector<8x128xbf16>
    %cst_58 = arith.constant dense<0.000000e+00> : vector<8x512xf32>
    %199 = tpu.matmul %198, %12, %cst_58 {dimension_numbers = #tpu.dot_dimension_numbers<[1], [0], [0], [1], [0, 0, 1, 1], [], []>} : vector<8x128xbf16>, vector<128x512xbf16>, vector<8x512xf32> -> vector<8x512xf32>
    %200 = arith.addf %197, %199 : vector<8x512xf32>
    %201 = vector.extract_strided_slice %200 {offsets = [0, 0], sizes = [8, 128], strides = [1, 1]} : vector<8x512xf32> to vector<8x128xf32>
    %202 = arith.negf %201 : vector<8x128xf32>
    %203 = math.exp %202 : vector<8x128xf32>
    %cst_59 = arith.constant 1.000000e+00 : f32
    %204 = vector.broadcast %cst_59 : f32 to vector<8x128xf32>
    %205 = arith.addf %204, %203 : vector<8x128xf32>
    %206 = arith.divf %204, %205 : vector<8x128xf32>
    %207 = vector.extract_strided_slice %200 {offsets = [0, 128], sizes = [8, 128], strides = [1, 1]} : vector<8x512xf32> to vector<8x128xf32>
    %208 = arith.negf %207 : vector<8x128xf32>
    %209 = math.exp %208 : vector<8x128xf32>
    %cst_60 = arith.constant 1.000000e+00 : f32
    %210 = vector.broadcast %cst_60 : f32 to vector<8x128xf32>
    %211 = arith.addf %210, %209 : vector<8x128xf32>
    %212 = arith.divf %210, %211 : vector<8x128xf32>
    %213 = vector.extract_strided_slice %200 {offsets = [0, 256], sizes = [8, 128], strides = [1, 1]} : vector<8x512xf32> to vector<8x128xf32>
    %214 = math.tanh %213 : vector<8x128xf32>
    %215 = vector.extract_strided_slice %200 {offsets = [0, 384], sizes = [8, 128], strides = [1, 1]} : vector<8x512xf32> to vector<8x128xf32>
    %216 = arith.negf %215 : vector<8x128xf32>
    %217 = math.exp %216 : vector<8x128xf32>
    %cst_61 = arith.constant 1.000000e+00 : f32
    %218 = vector.broadcast %cst_61 : f32 to vector<8x128xf32>
    %219 = arith.addf %218, %217 : vector<8x128xf32>
    %220 = arith.divf %218, %219 : vector<8x128xf32>
    %221 = arith.mulf %212, %187 : vector<8x128xf32>
    %222 = arith.mulf %206, %214 : vector<8x128xf32>
    %223 = arith.addf %221, %222 : vector<8x128xf32>
    %224 = math.tanh %223 : vector<8x128xf32>
    %225 = arith.mulf %220, %224 : vector<8x128xf32>
    %226 = arith.truncf %225 : vector<8x128xf32> to vector<8x128xbf16>
    %227 = arith.index_cast %c5_i32 : i32 to index
    %c0_62 = arith.constant 0 : index
    %c0_63 = arith.constant 0 : index
    %228 = vector.load %arg8[%227, %c0_62, %c0_63] : memref<8x8x128xbf16, #tpu.memory_space<vmem>>, vector<1x8x128xbf16>
    %229 = vector.shape_cast %228 : vector<1x8x128xbf16> to vector<8x128xbf16>
    %230 = vector.shape_cast %226 : vector<8x128xbf16> to vector<1x8x128xbf16>
    tpu.vector_store %arg8[%227, %c0_62, %c0_63], %230 {strides = array<i32>} : memref<8x8x128xbf16, #tpu.memory_space<vmem>>, vector<1x8x128xbf16>,
    %c6_i32 = arith.constant 6 : i32
    %231 = arith.index_cast %c6_i32 : i32 to index
    %c0_64 = arith.constant 0 : index
    %c0_65 = arith.constant 0 : index
    %232 = vector.load %arg10[%231, %c0_64, %c0_65] : memref<8x8x512xf32, #tpu.memory_space<vmem>>, vector<1x8x512xf32>
    %233 = vector.shape_cast %232 : vector<1x8x512xf32> to vector<8x512xf32>
    %234 = arith.truncf %225 : vector<8x128xf32> to vector<8x128xbf16>
    %cst_66 = arith.constant dense<0.000000e+00> : vector<8x512xf32>
    %235 = tpu.matmul %234, %12, %cst_66 {dimension_numbers = #tpu.dot_dimension_numbers<[1], [0], [0], [1], [0, 0, 1, 1], [], []>} : vector<8x128xbf16>, vector<128x512xbf16>, vector<8x512xf32> -> vector<8x512xf32>
    %236 = arith.addf %233, %235 : vector<8x512xf32>
    %237 = vector.extract_strided_slice %236 {offsets = [0, 0], sizes = [8, 128], strides = [1, 1]} : vector<8x512xf32> to vector<8x128xf32>
    %238 = arith.negf %237 : vector<8x128xf32>
    %239 = math.exp %238 : vector<8x128xf32>
    %cst_67 = arith.constant 1.000000e+00 : f32
    %240 = vector.broadcast %cst_67 : f32 to vector<8x128xf32>
    %241 = arith.addf %240, %239 : vector<8x128xf32>
    %242 = arith.divf %240, %241 : vector<8x128xf32>
    %243 = vector.extract_strided_slice %236 {offsets = [0, 128], sizes = [8, 128], strides = [1, 1]} : vector<8x512xf32> to vector<8x128xf32>
    %244 = arith.negf %243 : vector<8x128xf32>
    %245 = math.exp %244 : vector<8x128xf32>
    %cst_68 = arith.constant 1.000000e+00 : f32
    %246 = vector.broadcast %cst_68 : f32 to vector<8x128xf32>
    %247 = arith.addf %246, %245 : vector<8x128xf32>
    %248 = arith.divf %246, %247 : vector<8x128xf32>
    %249 = vector.extract_strided_slice %236 {offsets = [0, 256], sizes = [8, 128], strides = [1, 1]} : vector<8x512xf32> to vector<8x128xf32>
    %250 = math.tanh %249 : vector<8x128xf32>
    %251 = vector.extract_strided_slice %236 {offsets = [0, 384], sizes = [8, 128], strides = [1, 1]} : vector<8x512xf32> to vector<8x128xf32>
    %252 = arith.negf %251 : vector<8x128xf32>
    %253 = math.exp %252 : vector<8x128xf32>
    %cst_69 = arith.constant 1.000000e+00 : f32
    %254 = vector.broadcast %cst_69 : f32 to vector<8x128xf32>
    %255 = arith.addf %254, %253 : vector<8x128xf32>
    %256 = arith.divf %254, %255 : vector<8x128xf32>
    %257 = arith.mulf %248, %223 : vector<8x128xf32>
    %258 = arith.mulf %242, %250 : vector<8x128xf32>
    %259 = arith.addf %257, %258 : vector<8x128xf32>
    %260 = math.tanh %259 : vector<8x128xf32>
    %261 = arith.mulf %256, %260 : vector<8x128xf32>
    %262 = arith.truncf %261 : vector<8x128xf32> to vector<8x128xbf16>
    %263 = arith.index_cast %c6_i32 : i32 to index
    %c0_70 = arith.constant 0 : index
    %c0_71 = arith.constant 0 : index
    %264 = vector.load %arg8[%263, %c0_70, %c0_71] : memref<8x8x128xbf16, #tpu.memory_space<vmem>>, vector<1x8x128xbf16>
    %265 = vector.shape_cast %264 : vector<1x8x128xbf16> to vector<8x128xbf16>
    %266 = vector.shape_cast %262 : vector<8x128xbf16> to vector<1x8x128xbf16>
    tpu.vector_store %arg8[%263, %c0_70, %c0_71], %266 {strides = array<i32>} : memref<8x8x128xbf16, #tpu.memory_space<vmem>>, vector<1x8x128xbf16>,
    %c7_i32 = arith.constant 7 : i32
    %267 = arith.index_cast %c7_i32 : i32 to index
    %c0_72 = arith.constant 0 : index
    %c0_73 = arith.constant 0 : index
    %268 = vector.load %arg10[%267, %c0_72, %c0_73] : memref<8x8x512xf32, #tpu.memory_space<vmem>>, vector<1x8x512xf32>
    %269 = vector.shape_cast %268 : vector<1x8x512xf32> to vector<8x512xf32>
    %270 = arith.truncf %261 : vector<8x128xf32> to vector<8x128xbf16>
    %cst_74 = arith.constant dense<0.000000e+00> : vector<8x512xf32>
    %271 = tpu.matmul %270, %12, %cst_74 {dimension_numbers = #tpu.dot_dimension_numbers<[1], [0], [0], [1], [0, 0, 1, 1], [], []>} : vector<8x128xbf16>, vector<128x512xbf16>, vector<8x512xf32> -> vector<8x512xf32>
    %272 = arith.addf %269, %271 : vector<8x512xf32>
    %273 = vector.extract_strided_slice %272 {offsets = [0, 0], sizes = [8, 128], strides = [1, 1]} : vector<8x512xf32> to vector<8x128xf32>
    %274 = arith.negf %273 : vector<8x128xf32>
    %275 = math.exp %274 : vector<8x128xf32>
    %cst_75 = arith.constant 1.000000e+00 : f32
    %276 = vector.broadcast %cst_75 : f32 to vector<8x128xf32>
    %277 = arith.addf %276, %275 : vector<8x128xf32>
    %278 = arith.divf %276, %277 : vector<8x128xf32>
    %279 = vector.extract_strided_slice %272 {offsets = [0, 128], sizes = [8, 128], strides = [1, 1]} : vector<8x512xf32> to vector<8x128xf32>
    %280 = arith.negf %279 : vector<8x128xf32>
    %281 = math.exp %280 : vector<8x128xf32>
    %cst_76 = arith.constant 1.000000e+00 : f32
    %282 = vector.broadcast %cst_76 : f32 to vector<8x128xf32>
    %283 = arith.addf %282, %281 : vector<8x128xf32>
    %284 = arith.divf %282, %283 : vector<8x128xf32>
    %285 = vector.extract_strided_slice %272 {offsets = [0, 256], sizes = [8, 128], strides = [1, 1]} : vector<8x512xf32> to vector<8x128xf32>
    %286 = math.tanh %285 : vector<8x128xf32>
    %287 = vector.extract_strided_slice %272 {offsets = [0, 384], sizes = [8, 128], strides = [1, 1]} : vector<8x512xf32> to vector<8x128xf32>
    %288 = arith.negf %287 : vector<8x128xf32>
    %289 = math.exp %288 : vector<8x128xf32>
    %cst_77 = arith.constant 1.000000e+00 : f32
    %290 = vector.broadcast %cst_77 : f32 to vector<8x128xf32>
    %291 = arith.addf %290, %289 : vector<8x128xf32>
    %292 = arith.divf %290, %291 : vector<8x128xf32>
    %293 = arith.mulf %284, %259 : vector<8x128xf32>
    %294 = arith.mulf %278, %286 : vector<8x128xf32>
    %295 = arith.addf %293, %294 : vector<8x128xf32>
    %296 = math.tanh %295 : vector<8x128xf32>
    %297 = arith.mulf %292, %296 : vector<8x128xf32>
    %298 = arith.truncf %297 : vector<8x128xf32> to vector<8x128xbf16>
    %299 = arith.index_cast %c7_i32 : i32 to index
    %c0_78 = arith.constant 0 : index
    %c0_79 = arith.constant 0 : index
    %300 = vector.load %arg8[%299, %c0_78, %c0_79] : memref<8x8x128xbf16, #tpu.memory_space<vmem>>, vector<1x8x128xbf16>
    %301 = vector.shape_cast %300 : vector<1x8x128xbf16> to vector<8x128xbf16>
    %302 = vector.shape_cast %298 : vector<8x128xbf16> to vector<1x8x128xbf16>
    tpu.vector_store %arg8[%299, %c0_78, %c0_79], %302 {strides = array<i32>} : memref<8x8x128xbf16, #tpu.memory_space<vmem>>, vector<1x8x128xbf16>,
    %c8_i32 = arith.constant 8 : i32
    %c0_80 = arith.constant 0 : index
    %c0_81 = arith.constant 0 : index
    %c0_82 = arith.constant 0 : index
    %303 = vector.load %arg8[%c0_80, %c0_81, %c0_82] : memref<8x8x128xbf16, #tpu.memory_space<vmem>>, vector<8x8x128xbf16>
    %304 = vector.shape_cast %303 : vector<8x8x128xbf16> to vector<64x128xbf16>
    %c1 = arith.constant 1 : index
    %c0_83 = arith.constant 0 : index
    %c0_84 = arith.constant 0 : index
    %305 = vector.load %arg2[%c1, %c0_83, %c0_84] : memref<2x128x512xbf16, #tpu.memory_space<vmem>>, vector<1x128x512xbf16>
    %306 = vector.shape_cast %305 : vector<1x128x512xbf16> to vector<128x512xbf16>
    %cst_85 = arith.constant dense<0.000000e+00> : vector<64x512xf32>
    %307 = tpu.matmul %304, %306, %cst_85 {dimension_numbers = #tpu.dot_dimension_numbers<[1], [0], [0], [1], [0, 0, 1, 1], [], []>} : vector<64x128xbf16>, vector<128x512xbf16>, vector<64x512xf32> -> vector<64x512xf32>
    %c1_86 = arith.constant 1 : index
    %c0_87 = arith.constant 0 : index
    %c0_88 = arith.constant 0 : index
    %308 = vector.load %arg4[%c1_86, %c0_87, %c0_88] : memref<2x1x512xf32, #tpu.memory_space<vmem>>, vector<1x1x512xf32>
    %309 = vector.shape_cast %308 : vector<1x1x512xf32> to vector<1x512xf32>
    %310 = vector.broadcast %309 : vector<1x512xf32> to vector<64x512xf32>
    %311 = arith.addf %307, %310 : vector<64x512xf32>
    %312 = vector.shape_cast %311 : vector<64x512xf32> to vector<8x8x512xf32>
    %c0_89 = arith.constant 0 : index
    %c0_90 = arith.constant 0 : index
    %c0_91 = arith.constant 0 : index
    %313 = vector.load %arg10[%c0_89, %c0_90, %c0_91] : memref<8x8x512xf32, #tpu.memory_space<vmem>>, vector<8x8x512xf32>
    tpu.vector_store %arg10[%c0_89, %c0_90, %c0_91], %312 {strides = array<i32>} : memref<8x8x512xf32, #tpu.memory_space<vmem>>, vector<8x8x512xf32>,
    %c1_92 = arith.constant 1 : index
    %c0_93 = arith.constant 0 : index
    %c0_94 = arith.constant 0 : index
    %314 = vector.load %arg3[%c1_92, %c0_93, %c0_94] : memref<2x128x512xbf16, #tpu.memory_space<vmem>>, vector<1x128x512xbf16>
    %315 = vector.shape_cast %314 : vector<1x128x512xbf16> to vector<128x512xbf16>
    %cst_95 = arith.constant 0.000000e+00 : f32
    %316 = vector.broadcast %cst_95 : f32 to vector<8x128xf32>
    %cst_96 = arith.constant 0.000000e+00 : f32
    %317 = vector.broadcast %cst_96 : f32 to vector<8x128xf32>
    %c0_i32_97 = arith.constant 0 : i32
    %318 = arith.index_cast %c0_i32_97 : i32 to index
    %c0_98 = arith.constant 0 : index
    %c0_99 = arith.constant 0 : index
    %319 = vector.load %arg10[%318, %c0_98, %c0_99] : memref<8x8x512xf32, #tpu.memory_space<vmem>>, vector<1x8x512xf32>
    %320 = vector.shape_cast %319 : vector<1x8x512xf32> to vector<8x512xf32>
    %321 = arith.truncf %316 : vector<8x128xf32> to vector<8x128xbf16>
    %cst_100 = arith.constant dense<0.000000e+00> : vector<8x512xf32>
    %322 = tpu.matmul %321, %315, %cst_100 {dimension_numbers = #tpu.dot_dimension_numbers<[1], [0], [0], [1], [0, 0, 1, 1], [], []>} : vector<8x128xbf16>, vector<128x512xbf16>, vector<8x512xf32> -> vector<8x512xf32>
    %323 = arith.addf %320, %322 : vector<8x512xf32>
    %324 = vector.extract_strided_slice %323 {offsets = [0, 0], sizes = [8, 128], strides = [1, 1]} : vector<8x512xf32> to vector<8x128xf32>
    %325 = arith.negf %324 : vector<8x128xf32>
    %326 = math.exp %325 : vector<8x128xf32>
    %cst_101 = arith.constant 1.000000e+00 : f32
    %327 = vector.broadcast %cst_101 : f32 to vector<8x128xf32>
    %328 = arith.addf %327, %326 : vector<8x128xf32>
    %329 = arith.divf %327, %328 : vector<8x128xf32>
    %330 = vector.extract_strided_slice %323 {offsets = [0, 128], sizes = [8, 128], strides = [1, 1]} : vector<8x512xf32> to vector<8x128xf32>
    %331 = arith.negf %330 : vector<8x128xf32>
    %332 = math.exp %331 : vector<8x128xf32>
    %cst_102 = arith.constant 1.000000e+00 : f32
    %333 = vector.broadcast %cst_102 : f32 to vector<8x128xf32>
    %334 = arith.addf %333, %332 : vector<8x128xf32>
    %335 = arith.divf %333, %334 : vector<8x128xf32>
    %336 = vector.extract_strided_slice %323 {offsets = [0, 256], sizes = [8, 128], strides = [1, 1]} : vector<8x512xf32> to vector<8x128xf32>
    %337 = math.tanh %336 : vector<8x128xf32>
    %338 = vector.extract_strided_slice %323 {offsets = [0, 384], sizes = [8, 128], strides = [1, 1]} : vector<8x512xf32> to vector<8x128xf32>
    %339 = arith.negf %338 : vector<8x128xf32>
    %340 = math.exp %339 : vector<8x128xf32>
    %cst_103 = arith.constant 1.000000e+00 : f32
    %341 = vector.broadcast %cst_103 : f32 to vector<8x128xf32>
    %342 = arith.addf %341, %340 : vector<8x128xf32>
    %343 = arith.divf %341, %342 : vector<8x128xf32>
    %344 = arith.mulf %335, %317 : vector<8x128xf32>
    %345 = arith.mulf %329, %337 : vector<8x128xf32>
    %346 = arith.addf %344, %345 : vector<8x128xf32>
    %347 = math.tanh %346 : vector<8x128xf32>
    %348 = arith.mulf %343, %347 : vector<8x128xf32>
    %c1_i32_104 = arith.constant 1 : i32
    %349 = arith.index_cast %c1_i32_104 : i32 to index
    %c0_105 = arith.constant 0 : index
    %c0_106 = arith.constant 0 : index
    %350 = vector.load %arg10[%349, %c0_105, %c0_106] : memref<8x8x512xf32, #tpu.memory_space<vmem>>, vector<1x8x512xf32>
    %351 = vector.shape_cast %350 : vector<1x8x512xf32> to vector<8x512xf32>
    %352 = arith.truncf %348 : vector<8x128xf32> to vector<8x128xbf16>
    %cst_107 = arith.constant dense<0.000000e+00> : vector<8x512xf32>
    %353 = tpu.matmul %352, %315, %cst_107 {dimension_numbers = #tpu.dot_dimension_numbers<[1], [0], [0], [1], [0, 0, 1, 1], [], []>} : vector<8x128xbf16>, vector<128x512xbf16>, vector<8x512xf32> -> vector<8x512xf32>
    %354 = arith.addf %351, %353 : vector<8x512xf32>
    %355 = vector.extract_strided_slice %354 {offsets = [0, 0], sizes = [8, 128], strides = [1, 1]} : vector<8x512xf32> to vector<8x128xf32>
    %356 = arith.negf %355 : vector<8x128xf32>
    %357 = math.exp %356 : vector<8x128xf32>
    %cst_108 = arith.constant 1.000000e+00 : f32
    %358 = vector.broadcast %cst_108 : f32 to vector<8x128xf32>
    %359 = arith.addf %358, %357 : vector<8x128xf32>
    %360 = arith.divf %358, %359 : vector<8x128xf32>
    %361 = vector.extract_strided_slice %354 {offsets = [0, 128], sizes = [8, 128], strides = [1, 1]} : vector<8x512xf32> to vector<8x128xf32>
    %362 = arith.negf %361 : vector<8x128xf32>
    %363 = math.exp %362 : vector<8x128xf32>
    %cst_109 = arith.constant 1.000000e+00 : f32
    %364 = vector.broadcast %cst_109 : f32 to vector<8x128xf32>
    %365 = arith.addf %364, %363 : vector<8x128xf32>
    %366 = arith.divf %364, %365 : vector<8x128xf32>
    %367 = vector.extract_strided_slice %354 {offsets = [0, 256], sizes = [8, 128], strides = [1, 1]} : vector<8x512xf32> to vector<8x128xf32>
    %368 = math.tanh %367 : vector<8x128xf32>
    %369 = vector.extract_strided_slice %354 {offsets = [0, 384], sizes = [8, 128], strides = [1, 1]} : vector<8x512xf32> to vector<8x128xf32>
    %370 = arith.negf %369 : vector<8x128xf32>
    %371 = math.exp %370 : vector<8x128xf32>
    %cst_110 = arith.constant 1.000000e+00 : f32
    %372 = vector.broadcast %cst_110 : f32 to vector<8x128xf32>
    %373 = arith.addf %372, %371 : vector<8x128xf32>
    %374 = arith.divf %372, %373 : vector<8x128xf32>
    %375 = arith.mulf %366, %346 : vector<8x128xf32>
    %376 = arith.mulf %360, %368 : vector<8x128xf32>
    %377 = arith.addf %375, %376 : vector<8x128xf32>
    %378 = math.tanh %377 : vector<8x128xf32>
    %379 = arith.mulf %374, %378 : vector<8x128xf32>
    %c2_i32_111 = arith.constant 2 : i32
    %380 = arith.index_cast %c2_i32_111 : i32 to index
    %c0_112 = arith.constant 0 : index
    %c0_113 = arith.constant 0 : index
    %381 = vector.load %arg10[%380, %c0_112, %c0_113] : memref<8x8x512xf32, #tpu.memory_space<vmem>>, vector<1x8x512xf32>
    %382 = vector.shape_cast %381 : vector<1x8x512xf32> to vector<8x512xf32>
    %383 = arith.truncf %379 : vector<8x128xf32> to vector<8x128xbf16>
    %cst_114 = arith.constant dense<0.000000e+00> : vector<8x512xf32>
    %384 = tpu.matmul %383, %315, %cst_114 {dimension_numbers = #tpu.dot_dimension_numbers<[1], [0], [0], [1], [0, 0, 1, 1], [], []>} : vector<8x128xbf16>, vector<128x512xbf16>, vector<8x512xf32> -> vector<8x512xf32>
    %385 = arith.addf %382, %384 : vector<8x512xf32>
    %386 = vector.extract_strided_slice %385 {offsets = [0, 0], sizes = [8, 128], strides = [1, 1]} : vector<8x512xf32> to vector<8x128xf32>
    %387 = arith.negf %386 : vector<8x128xf32>
    %388 = math.exp %387 : vector<8x128xf32>
    %cst_115 = arith.constant 1.000000e+00 : f32
    %389 = vector.broadcast %cst_115 : f32 to vector<8x128xf32>
    %390 = arith.addf %389, %388 : vector<8x128xf32>
    %391 = arith.divf %389, %390 : vector<8x128xf32>
    %392 = vector.extract_strided_slice %385 {offsets = [0, 128], sizes = [8, 128], strides = [1, 1]} : vector<8x512xf32> to vector<8x128xf32>
    %393 = arith.negf %392 : vector<8x128xf32>
    %394 = math.exp %393 : vector<8x128xf32>
    %cst_116 = arith.constant 1.000000e+00 : f32
    %395 = vector.broadcast %cst_116 : f32 to vector<8x128xf32>
    %396 = arith.addf %395, %394 : vector<8x128xf32>
    %397 = arith.divf %395, %396 : vector<8x128xf32>
    %398 = vector.extract_strided_slice %385 {offsets = [0, 256], sizes = [8, 128], strides = [1, 1]} : vector<8x512xf32> to vector<8x128xf32>
    %399 = math.tanh %398 : vector<8x128xf32>
    %400 = vector.extract_strided_slice %385 {offsets = [0, 384], sizes = [8, 128], strides = [1, 1]} : vector<8x512xf32> to vector<8x128xf32>
    %401 = arith.negf %400 : vector<8x128xf32>
    %402 = math.exp %401 : vector<8x128xf32>
    %cst_117 = arith.constant 1.000000e+00 : f32
    %403 = vector.broadcast %cst_117 : f32 to vector<8x128xf32>
    %404 = arith.addf %403, %402 : vector<8x128xf32>
    %405 = arith.divf %403, %404 : vector<8x128xf32>
    %406 = arith.mulf %397, %377 : vector<8x128xf32>
    %407 = arith.mulf %391, %399 : vector<8x128xf32>
    %408 = arith.addf %406, %407 : vector<8x128xf32>
    %409 = math.tanh %408 : vector<8x128xf32>
    %410 = arith.mulf %405, %409 : vector<8x128xf32>
    %c3_i32_118 = arith.constant 3 : i32
    %411 = arith.index_cast %c3_i32_118 : i32 to index
    %c0_119 = arith.constant 0 : index
    %c0_120 = arith.constant 0 : index
    %412 = vector.load %arg10[%411, %c0_119, %c0_120] : memref<8x8x512xf32, #tpu.memory_space<vmem>>, vector<1x8x512xf32>
    %413 = vector.shape_cast %412 : vector<1x8x512xf32> to vector<8x512xf32>
    %414 = arith.truncf %410 : vector<8x128xf32> to vector<8x128xbf16>
    %cst_121 = arith.constant dense<0.000000e+00> : vector<8x512xf32>
    %415 = tpu.matmul %414, %315, %cst_121 {dimension_numbers = #tpu.dot_dimension_numbers<[1], [0], [0], [1], [0, 0, 1, 1], [], []>} : vector<8x128xbf16>, vector<128x512xbf16>, vector<8x512xf32> -> vector<8x512xf32>
    %416 = arith.addf %413, %415 : vector<8x512xf32>
    %417 = vector.extract_strided_slice %416 {offsets = [0, 0], sizes = [8, 128], strides = [1, 1]} : vector<8x512xf32> to vector<8x128xf32>
    %418 = arith.negf %417 : vector<8x128xf32>
    %419 = math.exp %418 : vector<8x128xf32>
    %cst_122 = arith.constant 1.000000e+00 : f32
    %420 = vector.broadcast %cst_122 : f32 to vector<8x128xf32>
    %421 = arith.addf %420, %419 : vector<8x128xf32>
    %422 = arith.divf %420, %421 : vector<8x128xf32>
    %423 = vector.extract_strided_slice %416 {offsets = [0, 128], sizes = [8, 128], strides = [1, 1]} : vector<8x512xf32> to vector<8x128xf32>
    %424 = arith.negf %423 : vector<8x128xf32>
    %425 = math.exp %424 : vector<8x128xf32>
    %cst_123 = arith.constant 1.000000e+00 : f32
    %426 = vector.broadcast %cst_123 : f32 to vector<8x128xf32>
    %427 = arith.addf %426, %425 : vector<8x128xf32>
    %428 = arith.divf %426, %427 : vector<8x128xf32>
    %429 = vector.extract_strided_slice %416 {offsets = [0, 256], sizes = [8, 128], strides = [1, 1]} : vector<8x512xf32> to vector<8x128xf32>
    %430 = math.tanh %429 : vector<8x128xf32>
    %431 = vector.extract_strided_slice %416 {offsets = [0, 384], sizes = [8, 128], strides = [1, 1]} : vector<8x512xf32> to vector<8x128xf32>
    %432 = arith.negf %431 : vector<8x128xf32>
    %433 = math.exp %432 : vector<8x128xf32>
    %cst_124 = arith.constant 1.000000e+00 : f32
    %434 = vector.broadcast %cst_124 : f32 to vector<8x128xf32>
    %435 = arith.addf %434, %433 : vector<8x128xf32>
    %436 = arith.divf %434, %435 : vector<8x128xf32>
    %437 = arith.mulf %428, %408 : vector<8x128xf32>
    %438 = arith.mulf %422, %430 : vector<8x128xf32>
    %439 = arith.addf %437, %438 : vector<8x128xf32>
    %440 = math.tanh %439 : vector<8x128xf32>
    %441 = arith.mulf %436, %440 : vector<8x128xf32>
    %c4_i32_125 = arith.constant 4 : i32
    %442 = arith.index_cast %c4_i32_125 : i32 to index
    %c0_126 = arith.constant 0 : index
    %c0_127 = arith.constant 0 : index
    %443 = vector.load %arg10[%442, %c0_126, %c0_127] : memref<8x8x512xf32, #tpu.memory_space<vmem>>, vector<1x8x512xf32>
    %444 = vector.shape_cast %443 : vector<1x8x512xf32> to vector<8x512xf32>
    %445 = arith.truncf %441 : vector<8x128xf32> to vector<8x128xbf16>
    %cst_128 = arith.constant dense<0.000000e+00> : vector<8x512xf32>
    %446 = tpu.matmul %445, %315, %cst_128 {dimension_numbers = #tpu.dot_dimension_numbers<[1], [0], [0], [1], [0, 0, 1, 1], [], []>} : vector<8x128xbf16>, vector<128x512xbf16>, vector<8x512xf32> -> vector<8x512xf32>
    %447 = arith.addf %444, %446 : vector<8x512xf32>
    %448 = vector.extract_strided_slice %447 {offsets = [0, 0], sizes = [8, 128], strides = [1, 1]} : vector<8x512xf32> to vector<8x128xf32>
    %449 = arith.negf %448 : vector<8x128xf32>
    %450 = math.exp %449 : vector<8x128xf32>
    %cst_129 = arith.constant 1.000000e+00 : f32
    %451 = vector.broadcast %cst_129 : f32 to vector<8x128xf32>
    %452 = arith.addf %451, %450 : vector<8x128xf32>
    %453 = arith.divf %451, %452 : vector<8x128xf32>
    %454 = vector.extract_strided_slice %447 {offsets = [0, 128], sizes = [8, 128], strides = [1, 1]} : vector<8x512xf32> to vector<8x128xf32>
    %455 = arith.negf %454 : vector<8x128xf32>
    %456 = math.exp %455 : vector<8x128xf32>
    %cst_130 = arith.constant 1.000000e+00 : f32
    %457 = vector.broadcast %cst_130 : f32 to vector<8x128xf32>
    %458 = arith.addf %457, %456 : vector<8x128xf32>
    %459 = arith.divf %457, %458 : vector<8x128xf32>
    %460 = vector.extract_strided_slice %447 {offsets = [0, 256], sizes = [8, 128], strides = [1, 1]} : vector<8x512xf32> to vector<8x128xf32>
    %461 = math.tanh %460 : vector<8x128xf32>
    %462 = vector.extract_strided_slice %447 {offsets = [0, 384], sizes = [8, 128], strides = [1, 1]} : vector<8x512xf32> to vector<8x128xf32>
    %463 = arith.negf %462 : vector<8x128xf32>
    %464 = math.exp %463 : vector<8x128xf32>
    %cst_131 = arith.constant 1.000000e+00 : f32
    %465 = vector.broadcast %cst_131 : f32 to vector<8x128xf32>
    %466 = arith.addf %465, %464 : vector<8x128xf32>
    %467 = arith.divf %465, %466 : vector<8x128xf32>
    %468 = arith.mulf %459, %439 : vector<8x128xf32>
    %469 = arith.mulf %453, %461 : vector<8x128xf32>
    %470 = arith.addf %468, %469 : vector<8x128xf32>
    %471 = math.tanh %470 : vector<8x128xf32>
    %472 = arith.mulf %467, %471 : vector<8x128xf32>
    %c5_i32_132 = arith.constant 5 : i32
    %473 = arith.index_cast %c5_i32_132 : i32 to index
    %c0_133 = arith.constant 0 : index
    %c0_134 = arith.constant 0 : index
    %474 = vector.load %arg10[%473, %c0_133, %c0_134] : memref<8x8x512xf32, #tpu.memory_space<vmem>>, vector<1x8x512xf32>
    %475 = vector.shape_cast %474 : vector<1x8x512xf32> to vector<8x512xf32>
    %476 = arith.truncf %472 : vector<8x128xf32> to vector<8x128xbf16>
    %cst_135 = arith.constant dense<0.000000e+00> : vector<8x512xf32>
    %477 = tpu.matmul %476, %315, %cst_135 {dimension_numbers = #tpu.dot_dimension_numbers<[1], [0], [0], [1], [0, 0, 1, 1], [], []>} : vector<8x128xbf16>, vector<128x512xbf16>, vector<8x512xf32> -> vector<8x512xf32>
    %478 = arith.addf %475, %477 : vector<8x512xf32>
    %479 = vector.extract_strided_slice %478 {offsets = [0, 0], sizes = [8, 128], strides = [1, 1]} : vector<8x512xf32> to vector<8x128xf32>
    %480 = arith.negf %479 : vector<8x128xf32>
    %481 = math.exp %480 : vector<8x128xf32>
    %cst_136 = arith.constant 1.000000e+00 : f32
    %482 = vector.broadcast %cst_136 : f32 to vector<8x128xf32>
    %483 = arith.addf %482, %481 : vector<8x128xf32>
    %484 = arith.divf %482, %483 : vector<8x128xf32>
    %485 = vector.extract_strided_slice %478 {offsets = [0, 128], sizes = [8, 128], strides = [1, 1]} : vector<8x512xf32> to vector<8x128xf32>
    %486 = arith.negf %485 : vector<8x128xf32>
    %487 = math.exp %486 : vector<8x128xf32>
    %cst_137 = arith.constant 1.000000e+00 : f32
    %488 = vector.broadcast %cst_137 : f32 to vector<8x128xf32>
    %489 = arith.addf %488, %487 : vector<8x128xf32>
    %490 = arith.divf %488, %489 : vector<8x128xf32>
    %491 = vector.extract_strided_slice %478 {offsets = [0, 256], sizes = [8, 128], strides = [1, 1]} : vector<8x512xf32> to vector<8x128xf32>
    %492 = math.tanh %491 : vector<8x128xf32>
    %493 = vector.extract_strided_slice %478 {offsets = [0, 384], sizes = [8, 128], strides = [1, 1]} : vector<8x512xf32> to vector<8x128xf32>
    %494 = arith.negf %493 : vector<8x128xf32>
    %495 = math.exp %494 : vector<8x128xf32>
    %cst_138 = arith.constant 1.000000e+00 : f32
    %496 = vector.broadcast %cst_138 : f32 to vector<8x128xf32>
    %497 = arith.addf %496, %495 : vector<8x128xf32>
    %498 = arith.divf %496, %497 : vector<8x128xf32>
    %499 = arith.mulf %490, %470 : vector<8x128xf32>
    %500 = arith.mulf %484, %492 : vector<8x128xf32>
    %501 = arith.addf %499, %500 : vector<8x128xf32>
    %502 = math.tanh %501 : vector<8x128xf32>
    %503 = arith.mulf %498, %502 : vector<8x128xf32>
    %c6_i32_139 = arith.constant 6 : i32
    %504 = arith.index_cast %c6_i32_139 : i32 to index
    %c0_140 = arith.constant 0 : index
    %c0_141 = arith.constant 0 : index
    %505 = vector.load %arg10[%504, %c0_140, %c0_141] : memref<8x8x512xf32, #tpu.memory_space<vmem>>, vector<1x8x512xf32>
    %506 = vector.shape_cast %505 : vector<1x8x512xf32> to vector<8x512xf32>
    %507 = arith.truncf %503 : vector<8x128xf32> to vector<8x128xbf16>
    %cst_142 = arith.constant dense<0.000000e+00> : vector<8x512xf32>
    %508 = tpu.matmul %507, %315, %cst_142 {dimension_numbers = #tpu.dot_dimension_numbers<[1], [0], [0], [1], [0, 0, 1, 1], [], []>} : vector<8x128xbf16>, vector<128x512xbf16>, vector<8x512xf32> -> vector<8x512xf32>
    %509 = arith.addf %506, %508 : vector<8x512xf32>
    %510 = vector.extract_strided_slice %509 {offsets = [0, 0], sizes = [8, 128], strides = [1, 1]} : vector<8x512xf32> to vector<8x128xf32>
    %511 = arith.negf %510 : vector<8x128xf32>
    %512 = math.exp %511 : vector<8x128xf32>
    %cst_143 = arith.constant 1.000000e+00 : f32
    %513 = vector.broadcast %cst_143 : f32 to vector<8x128xf32>
    %514 = arith.addf %513, %512 : vector<8x128xf32>
    %515 = arith.divf %513, %514 : vector<8x128xf32>
    %516 = vector.extract_strided_slice %509 {offsets = [0, 128], sizes = [8, 128], strides = [1, 1]} : vector<8x512xf32> to vector<8x128xf32>
    %517 = arith.negf %516 : vector<8x128xf32>
    %518 = math.exp %517 : vector<8x128xf32>
    %cst_144 = arith.constant 1.000000e+00 : f32
    %519 = vector.broadcast %cst_144 : f32 to vector<8x128xf32>
    %520 = arith.addf %519, %518 : vector<8x128xf32>
    %521 = arith.divf %519, %520 : vector<8x128xf32>
    %522 = vector.extract_strided_slice %509 {offsets = [0, 256], sizes = [8, 128], strides = [1, 1]} : vector<8x512xf32> to vector<8x128xf32>
    %523 = math.tanh %522 : vector<8x128xf32>
    %524 = vector.extract_strided_slice %509 {offsets = [0, 384], sizes = [8, 128], strides = [1, 1]} : vector<8x512xf32> to vector<8x128xf32>
    %525 = arith.negf %524 : vector<8x128xf32>
    %526 = math.exp %525 : vector<8x128xf32>
    %cst_145 = arith.constant 1.000000e+00 : f32
    %527 = vector.broadcast %cst_145 : f32 to vector<8x128xf32>
    %528 = arith.addf %527, %526 : vector<8x128xf32>
    %529 = arith.divf %527, %528 : vector<8x128xf32>
    %530 = arith.mulf %521, %501 : vector<8x128xf32>
    %531 = arith.mulf %515, %523 : vector<8x128xf32>
    %532 = arith.addf %530, %531 : vector<8x128xf32>
    %533 = math.tanh %532 : vector<8x128xf32>
    %534 = arith.mulf %529, %533 : vector<8x128xf32>
    %c7_i32_146 = arith.constant 7 : i32
    %535 = arith.index_cast %c7_i32_146 : i32 to index
    %c0_147 = arith.constant 0 : index
    %c0_148 = arith.constant 0 : index
    %536 = vector.load %arg10[%535, %c0_147, %c0_148] : memref<8x8x512xf32, #tpu.memory_space<vmem>>, vector<1x8x512xf32>
    %537 = vector.shape_cast %536 : vector<1x8x512xf32> to vector<8x512xf32>
    %538 = arith.truncf %534 : vector<8x128xf32> to vector<8x128xbf16>
    %cst_149 = arith.constant dense<0.000000e+00> : vector<8x512xf32>
    %539 = tpu.matmul %538, %315, %cst_149 {dimension_numbers = #tpu.dot_dimension_numbers<[1], [0], [0], [1], [0, 0, 1, 1], [], []>} : vector<8x128xbf16>, vector<128x512xbf16>, vector<8x512xf32> -> vector<8x512xf32>
    %540 = arith.addf %537, %539 : vector<8x512xf32>
    %541 = vector.extract_strided_slice %540 {offsets = [0, 0], sizes = [8, 128], strides = [1, 1]} : vector<8x512xf32> to vector<8x128xf32>
    %542 = arith.negf %541 : vector<8x128xf32>
    %543 = math.exp %542 : vector<8x128xf32>
    %cst_150 = arith.constant 1.000000e+00 : f32
    %544 = vector.broadcast %cst_150 : f32 to vector<8x128xf32>
    %545 = arith.addf %544, %543 : vector<8x128xf32>
    %546 = arith.divf %544, %545 : vector<8x128xf32>
    %547 = vector.extract_strided_slice %540 {offsets = [0, 128], sizes = [8, 128], strides = [1, 1]} : vector<8x512xf32> to vector<8x128xf32>
    %548 = arith.negf %547 : vector<8x128xf32>
    %549 = math.exp %548 : vector<8x128xf32>
    %cst_151 = arith.constant 1.000000e+00 : f32
    %550 = vector.broadcast %cst_151 : f32 to vector<8x128xf32>
    %551 = arith.addf %550, %549 : vector<8x128xf32>
    %552 = arith.divf %550, %551 : vector<8x128xf32>
    %553 = vector.extract_strided_slice %540 {offsets = [0, 256], sizes = [8, 128], strides = [1, 1]} : vector<8x512xf32> to vector<8x128xf32>
    %554 = math.tanh %553 : vector<8x128xf32>
    %555 = vector.extract_strided_slice %540 {offsets = [0, 384], sizes = [8, 128], strides = [1, 1]} : vector<8x512xf32> to vector<8x128xf32>
    %556 = arith.negf %555 : vector<8x128xf32>
    %557 = math.exp %556 : vector<8x128xf32>
    %cst_152 = arith.constant 1.000000e+00 : f32
    %558 = vector.broadcast %cst_152 : f32 to vector<8x128xf32>
    %559 = arith.addf %558, %557 : vector<8x128xf32>
    %560 = arith.divf %558, %559 : vector<8x128xf32>
    %561 = arith.mulf %552, %532 : vector<8x128xf32>
    %562 = arith.mulf %546, %554 : vector<8x128xf32>
    %563 = arith.addf %561, %562 : vector<8x128xf32>
    %564 = math.tanh %563 : vector<8x128xf32>
    %565 = arith.mulf %560, %564 : vector<8x128xf32>
    %c8_i32_153 = arith.constant 8 : i32
    %c0_154 = arith.constant 0 : index
    %c0_155 = arith.constant 0 : index
    %566 = vector.load %arg5[%c0_154, %c0_155] : memref<1x128xf32, #tpu.memory_space<vmem>>, vector<1x128xf32>
    %567 = vector.broadcast %566 : vector<1x128xf32> to vector<8x128xf32>
    %568 = arith.mulf %565, %567 : vector<8x128xf32>
    %cst_156 = arith.constant dense<0.000000e+00> : vector<8xf32>
    %569 = vector.multi_reduction <add>, %568, %cst_156 [1] : vector<8x128xf32> to vector<8xf32>
    %570 = vector.shape_cast %569 : vector<8xf32> to vector<8x1xf32>
    %c0_157 = arith.constant 0 : index
    %c0_158 = arith.constant 0 : index
    %571 = vector.load %arg6[%c0_157, %c0_158] : memref<1x1xf32, #tpu.memory_space<vmem>>, vector<1x1xf32>
    %572 = vector.broadcast %571 : vector<1x1xf32> to vector<8x1xf32>
    %573 = arith.addf %570, %572 : vector<8x1xf32>
    %574 = arith.negf %573 : vector<8x1xf32>
    %575 = math.exp %574 : vector<8x1xf32>
    %cst_159 = arith.constant 1.000000e+00 : f32
    %576 = vector.broadcast %cst_159 : f32 to vector<8x1xf32>
    %577 = arith.addf %576, %575 : vector<8x1xf32>
    %578 = arith.divf %576, %577 : vector<8x1xf32>
    %579 = vector.shape_cast %578 : vector<8x1xf32> to vector<8x1xf32>
    %580 = vector.broadcast %579 : vector<8x1xf32> to vector<8x128xf32>
    %c0_160 = arith.constant 0 : index
    %c0_161 = arith.constant 0 : index
    %581 = vector.load %arg7[%c0_160, %c0_161] : memref<8x128xf32, #tpu.memory_space<vmem>>, vector<8x128xf32>
    tpu.vector_store %arg7[%c0_160, %c0_161], %580 {strides = array<i32>} : memref<8x128xf32, #tpu.memory_space<vmem>>, vector<8x128xf32>,
    return
  }
  func.func @transform_0(%arg0: i32) -> (i32, i32, i32) {
    %c0_i32 = arith.constant 0 : i32
    %c0_i32_0 = arith.constant 0 : i32
    %c0_i32_1 = arith.constant 0 : i32
    return %c0_i32, %arg0, %c0_i32_0 : i32, i32, i32
  }
  func.func @transform_1(%arg0: i32) -> (i32, i32, i32) {
    %c0_i32 = arith.constant 0 : i32
    %c0_i32_0 = arith.constant 0 : i32
    %c0_i32_1 = arith.constant 0 : i32
    %c0_i32_2 = arith.constant 0 : i32
    return %c0_i32, %c0_i32_0, %c0_i32_1 : i32, i32, i32
  }
  func.func @transform_2(%arg0: i32) -> (i32, i32, i32) {
    %c0_i32 = arith.constant 0 : i32
    %c0_i32_0 = arith.constant 0 : i32
    %c0_i32_1 = arith.constant 0 : i32
    %c0_i32_2 = arith.constant 0 : i32
    return %c0_i32, %c0_i32_0, %c0_i32_1 : i32, i32, i32
  }
  func.func @transform_3(%arg0: i32) -> (i32, i32, i32) {
    %c0_i32 = arith.constant 0 : i32
    %c0_i32_0 = arith.constant 0 : i32
    %c0_i32_1 = arith.constant 0 : i32
    %c0_i32_2 = arith.constant 0 : i32
    return %c0_i32, %c0_i32_0, %c0_i32_1 : i32, i32, i32
  }
  func.func @transform_4(%arg0: i32) -> (i32, i32) {
    %c0_i32 = arith.constant 0 : i32
    %c0_i32_0 = arith.constant 0 : i32
    %c0_i32_1 = arith.constant 0 : i32
    return %c0_i32, %c0_i32_0 : i32, i32
  }
  func.func @transform_5(%arg0: i32) -> (i32, i32) {
    %c0_i32 = arith.constant 0 : i32
    %c0_i32_0 = arith.constant 0 : i32
    %c0_i32_1 = arith.constant 0 : i32
    return %c0_i32, %c0_i32_0 : i32, i32
  }
  func.func @transform_6(%arg0: i32) -> (i32, i32) {
    %c0_i32 = arith.constant 0 : i32
    %c0_i32_0 = arith.constant 0 : i32
    return %arg0, %c0_i32 : i32, i32
  }
}

</mosaic_0001>

<bundles_post_ra>
// kernel: lstm_multitask_forward.1
= control target key start
LH: loop header
LB: loop body
LE: loop exit
PB: predicated region body
PF: predicated region fallthrough
CT: control target
= control target key end

     0   :  { %s5150_s0 = inlined_call_operand.vmem [shape: bf16[8,8,128], index: 0, kind: input, shape index: {}]   ;;  %s5151_s1 = inlined_call_operand.hbm [shape: bf16[2,128,512], index: 1, kind: input, shape index: {}]   ;;  %s5152_s2 = inlined_call_operand.hbm [shape: bf16[2,128,512], index: 2, kind: input, shape index: {}]   ;;  %s5153_s3 = inlined_call_operand.vmem [shape: f32[2,1,512], index: 3, kind: input, shape index: {}]   ;;  %s5154_s4 = inlined_call_operand.vmem [shape: f32[1,128], index: 4, kind: input, shape index: {}]   ;;  %s5155_s5 = inlined_call_operand.<no memory space> [shape: f32[1,1], index: 5, kind: input, shape index: {}]   ;;  %s5156_s6 = inlined_call_operand.vmem [shape: f32[8,128], index: 6, kind: output, shape index: {}]  }
   0x1   :  { %v11_v0 = vstv %s5155_s5 }
   0x2   :  { %12 = vst [vmem:[#allocation5] sm:$0x1] %v11_v0 }
   0x3   :  { %13 = vsyncpa [#allocation7], 0 }
   0x4   :  { %14 = vsyncpa [#allocation9], 0  ;;  %s3948_s23 = smov [#allocation6]  }
   0x5   :  { %s22_s24 = sshll.u32 %s3948_s23, 4  ;;  %s23_s24 = int_to_ptr.vmem [resolvable:$true] %s22_s24 }
   0x6   :  { %s3912_s25 = scalar_lea.vmem %s23_s24, 8192  ;;  %p3917_p1 = scmp.lt.s32.totalorder %s23_s24, %s23_s24 }
   0x7   :  { %p3913_p0 = scmp.ne.s32.totalorder %s23_s24, %s3912_s25  ;;  %p3918_p2 = scmp.lt.s32.totalorder %s3912_s25, %s3912_s25 }
   0x9   :  { %p3919_p3 = por %p3918_p2, %p3917_p1 }
   0xb   :  { %p3920_p4 = pnand %p3919_p3, %p3913_p0 }
   0xd   :  { %3923 = shalt.err (!%p3920_p4)
}
   0xe   :  { %s3949_s26 = smov 256   ;;  %s3950_s27 = smov 16  }
   0xf   :  { %28 = dma.hbm_to_vmem [thread:$0]  %s5151_s1, 8192, %s23_s24, [#allocation7], %s3949_s26, %s3949_s26, %s3950_s27  }
  0x10   :  { %s3951_s5 = smov [#allocation8]  }
  0x11   :  { %s34_s30 = sshll.u32 %s3951_s5, 4  ;;  %s35_s30 = int_to_ptr.vmem [resolvable:$true] %s34_s30 }
  0x12   :  { %s3932_s7 = scalar_lea.vmem %s35_s30, 8192  ;;  %p3937_p6 = scmp.lt.s32.totalorder %s35_s30, %s35_s30 }
  0x13   :  { %p3933_p5 = scmp.ne.s32.totalorder %s35_s30, %s3932_s7  ;;  %p3938_p7 = scmp.lt.s32.totalorder %s3932_s7, %s3932_s7 }
  0x15   :  { %p3939_p8 = por %p3938_p7, %p3937_p6 }
  0x17   :  { %p3940_p9 = pnand %p3939_p8, %p3933_p5 }
  0x19   :  { %3943 = shalt.err (!%p3940_p9)
}
  0x1a   :  { %40 = dma.hbm_to_vmem [thread:$0]  %s5152_s2, 8192, %s35_s30, [#allocation9], %s3949_s26, %s3949_s26, %s3950_s27  }
  0x1b   :  { %3944 = dma.done.wait [#allocation7], 8192  }
  0x1c   :  { %3945 = vsyncadd [#allocation7], 4294959104 }
  0x1d   :  { %3946 = dma.done.wait [#allocation9], 8192  }
  0x1e   :  { %3947 = vsyncadd [#allocation9], 4294959104  ;;  %v5161_v1 = vmov 0   ;;  %v3380_v2 = vld [vmem:[#allocation6 + $0xe4] ss:$16 sps:$4 sm:$0xff]  }
  0x1f   :  { %332 = vmatprep.mubr.bf16.mxu0 %v5161_v1  ;;  %405 = vmatprep.mubr.bf16.mxu1 %v5161_v1  ;;  %v3382_v3 = vld [vmem:[#allocation6 + $0xec] ss:$16 sps:$4 sm:$0xff]   ;;  %v3384_v4 = vld [vmem:[#allocation6 + $0xe0] ss:$16 sps:$4 sm:$0xff]   ;;  %v3385_v5 = vld [vmem:[#allocation6 + $0xe8] ss:$16 sps:$4 sm:$0xff]  }
  0x20   :  { %3379 = vset.pattern.permute.xlu0 %v5161_v1  ;;  %300 = vmatprep.subr.bf16.mxu0 %v3380_v2  ;;  %v3386_v6 = vld [vmem:[#allocation6 + $0xc4] ss:$16 sps:$4 sm:$0xff]   ;;  %v3388_v7 = vld [vmem:[#allocation6 + $0xcc] ss:$16 sps:$4 sm:$0xff]   ;;  %v3390_v8 = vld [vmem:[#allocation6 + $0xc0] ss:$16 sps:$4 sm:$0xff]  }
  0x21   :  { %373 = vmatprep.subr.bf16.mxu1 %v3382_v3  ;;  %301 = vmatpush1.bf16.msra.mxu0 %v3384_v4  ;;  %v3391_v9 = vld [vmem:[#allocation6 + $0xc8] ss:$16 sps:$4 sm:$0xff]   ;;  %v3392_v10 = vld [vmem:[#allocation6 + $0xa4] ss:$16 sps:$4 sm:$0xff]   ;;  %v3394_v11 = vld [vmem:[#allocation6 + $0xac] ss:$16 sps:$4 sm:$0xff]  }
  0x22   :  { %374 = vmatpush1.bf16.msra.mxu1 %v3385_v5  ;;  %302 = vmatprep.subr.bf16.mxu0 %v3386_v6  ;;  %v3396_v12 = vld [vmem:[#allocation6 + $0xa0] ss:$16 sps:$4 sm:$0xff]   ;;  %v3397_v13 = vld [vmem:[#allocation6 + $0xa8] ss:$16 sps:$4 sm:$0xff]   ;;  %v3398_v14 = vld [vmem:[#allocation6 + $0x84] ss:$16 sps:$4 sm:$0xff]  }
  0x23   :  { %375 = vmatprep.subr.bf16.mxu1 %v3388_v7  ;;  %v3400_v15 = vld [vmem:[#allocation6 + $0x8c] ss:$16 sps:$4 sm:$0xff]   ;;  %v3402_v16 = vld [vmem:[#allocation6 + $0x80] ss:$16 sps:$4 sm:$0xff]   ;;  %v3403_v17 = vld [vmem:[#allocation6 + $0x88] ss:$16 sps:$4 sm:$0xff]   ;;  %v96_v7 = vlaneseq }
  0x24   :  { %v3404_v18 = vld [vmem:[#allocation6 + $0x64] ss:$16 sps:$4 sm:$0xff]   ;;  %v3406_v19 = vld [vmem:[#allocation6 + $0x6c] ss:$16 sps:$4 sm:$0xff]   ;;  %v3408_v20 = vld [vmem:[#allocation6 + $0x60] ss:$16 sps:$4 sm:$0xff]  }
  0x25   :  { %303 = vmatpush1.bf16.msra.mxu0 %v3390_v8  ;;  %v3409_v21 = vld [vmem:[#allocation6 + $0x68] ss:$16 sps:$4 sm:$0xff]   ;;  %v3410_v22 = vld [vmem:[#allocation6 + $0x44] ss:$16 sps:$4 sm:$0xff]   ;;  %v3412_v23 = vld [vmem:[#allocation6 + $0x4c] ss:$16 sps:$4 sm:$0xff]  }
  0x26   :  { %376 = vmatpush1.bf16.msra.mxu1 %v3391_v9  ;;  %304 = vmatprep.subr.bf16.mxu0 %v3392_v10  ;;  %v3414_v24 = vld [vmem:[#allocation6 + $0x40] ss:$16 sps:$4 sm:$0xff]   ;;  %v3415_v25 = vld [vmem:[#allocation6 + $0x48] ss:$16 sps:$4 sm:$0xff]   ;;  %v3416_v26 = vld [vmem:[#allocation6 + $0x24] ss:$16 sps:$4 sm:$0xff]  }
  0x27   :  { %377 = vmatprep.subr.bf16.mxu1 %v3394_v11  ;;  %v3418_v27 = vld [vmem:[#allocation6 + $0x2c] ss:$16 sps:$4 sm:$0xff]   ;;  %v3420_v28 = vld [vmem:[#allocation6 + $0x20] ss:$16 sps:$4 sm:$0xff]   ;;  %v3421_v29 = vld [vmem:[#allocation6 + $0x28] ss:$16 sps:$4 sm:$0xff]  }
  0x28   :  { %v3422_v30 = vld [vmem:[#allocation6 + $0x4] ss:$16 sps:$4 sm:$0xff]   ;;  %v3424_v31 = vld [vmem:[#allocation6 + $0xc] ss:$16 sps:$4 sm:$0xff]   ;;  %v3426_v32 = vld [vmem:[#allocation6] ss:$16 sps:$4 sm:$0xff]  }
  0x29   :  { %305 = vmatpush1.bf16.msra.mxu0 %v3396_v12  ;;  %v3427_v33 = vld [vmem:[#allocation6 + $0x8] ss:$16 sps:$4 sm:$0xff]   ;;  %v4000_v34 = vld [vmem:[#allocation8 + $0xe4] ss:$16 sps:$4 sm:$0xff]   ;;  %v4002_v35 = vld [vmem:[#allocation8 + $0xec] ss:$16 sps:$4 sm:$0xff]  }
  0x2a   :  { %378 = vmatpush1.bf16.msra.mxu1 %v3397_v13  ;;  %306 = vmatprep.subr.bf16.mxu0 %v3398_v14  ;;  %v3428_v36 = vld [vmem:[%s5150_s0] sm:$0xff]   ;;  %v4009_v38 = vld [vmem:[#allocation8 + $0xe8] ss:$16 sps:$4 sm:$0xff]   ;;  %v3454_v54 = vld [vmem:[%s5150_s0 + $0x10] sm:$0xff]   ;;  %v4154_v8 = vshrl.u32 %v96_v7, 7 }
  0x2b   :  { %379 = vmatprep.subr.bf16.mxu1 %v3400_v15  ;;  %v4007_v37 = vld [vmem:[#allocation8 + $0xe0] ss:$16 sps:$4 sm:$0xff]   ;;  %v4013_v39 = vld [vmem:[#allocation8 + $0xc4] ss:$16 sps:$4 sm:$0xff]   ;;  %v4015_v40 = vld [vmem:[#allocation8 + $0xcc] ss:$16 sps:$4 sm:$0xff]  }
  0x2c   :  { %v4017_v41 = vld [vmem:[#allocation8 + $0xc0] ss:$16 sps:$4 sm:$0xff]   ;;  %v4021_v42 = vld [vmem:[#allocation8 + $0xc8] ss:$16 sps:$4 sm:$0xff]   ;;  %v4025_v43 = vld [vmem:[#allocation8 + $0xa4] ss:$16 sps:$4 sm:$0xff]  }
  0x2d   :  { %307 = vmatpush1.bf16.msra.mxu0 %v3402_v16  ;;  %v4027_v44 = vld [vmem:[#allocation8 + $0xac] ss:$16 sps:$4 sm:$0xff]   ;;  %v4034_v46 = vld [vmem:[#allocation8 + $0xa0] ss:$16 sps:$4 sm:$0xff]   ;;  %v4036_v47 = vld [vmem:[#allocation8 + $0xa8] ss:$16 sps:$4 sm:$0xff]  }
  0x2e   :  { %380 = vmatpush1.bf16.msra.mxu1 %v3403_v17  ;;  %308 = vmatprep.subr.bf16.mxu0 %v3404_v18  ;;  %v3441_v45 = vld [vmem:[%s5150_s0 + $0x8] sm:$0xff]   ;;  %v4046_v50 = vld [vmem:[#allocation8 + $0x80] ss:$16 sps:$4 sm:$0xff]   ;;  %v3467_v63 = vld [vmem:[%s5150_s0 + $0x18] sm:$0xff]   ;;  %5165 = vst [vmem:[#allocation12_spill] sm:$0xff] %v4154_v8  ;;  %v5157_v9 = vsub.s32 2, %v4154_v8 }
  0x2f   :  { %381 = vmatprep.subr.bf16.mxu1 %v3406_v19  ;;  %v4040_v48 = vld [vmem:[#allocation8 + $0x84] ss:$16 sps:$4 sm:$0xff]   ;;  %v4044_v49 = vld [vmem:[#allocation8 + $0x8c] ss:$16 sps:$4 sm:$0xff]   ;;  %v4048_v51 = vld [vmem:[#allocation8 + $0x88] ss:$16 sps:$4 sm:$0xff]  }
  0x30   :  { %v4052_v52 = vld [vmem:[#allocation8 + $0x64] ss:$16 sps:$4 sm:$0xff]   ;;  %v4056_v53 = vld [vmem:[#allocation8 + $0x6c] ss:$16 sps:$4 sm:$0xff]   ;;  %v4063_v55 = vld [vmem:[#allocation8 + $0x60] ss:$16 sps:$4 sm:$0xff]  }
  0x31   :  { %309 = vmatpush1.bf16.msra.mxu0 %v3408_v20  ;;  %v4065_v56 = vld [vmem:[#allocation8 + $0x68] ss:$16 sps:$4 sm:$0xff]   ;;  %v4067_v57 = vld [vmem:[#allocation8 + $0x44] ss:$16 sps:$4 sm:$0xff]   ;;  %v4069_v58 = vld [vmem:[#allocation8 + $0x4c] ss:$16 sps:$4 sm:$0xff]  }
  0x32   :  { %382 = vmatpush1.bf16.msra.mxu1 %v3409_v21  ;;  %310 = vmatprep.subr.bf16.mxu0 %v3410_v22  ;;  %v4075_v59 = vld [vmem:[#allocation8 + $0x40] ss:$16 sps:$4 sm:$0xff]   ;;  %v4077_v60 = vld [vmem:[#allocation8 + $0x48] ss:$16 sps:$4 sm:$0xff]   ;;  %v4079_v61 = vld [vmem:[#allocation8 + $0x24] ss:$16 sps:$4 sm:$0xff]  }
  0x33   :  { %383 = vmatprep.subr.bf16.mxu1 %v3412_v23  ;;  %v4081_v62 = vld [vmem:[#allocation8 + $0x2c] ss:$16 sps:$4 sm:$0xff]   ;;  %v4092_v0 = vld [vmem:[#allocation8 + $0x20] ss:$16 sps:$4 sm:$0xff]   ;;  %v4094_v2 = vld [vmem:[#allocation8 + $0x28] ss:$16 sps:$4 sm:$0xff]  }
  0x34   :  { %v4096_v3 = vld [vmem:[#allocation8 + $0x4] ss:$16 sps:$4 sm:$0xff]   ;;  %v4098_v4 = vld [vmem:[#allocation8 + $0xc] ss:$16 sps:$4 sm:$0xff]   ;;  %v4104_v5 = vld [vmem:[#allocation8] ss:$16 sps:$4 sm:$0xff]  }
  0x35   :  { %311 = vmatpush1.bf16.msra.mxu0 %v3414_v24  ;;  %v4106_v6 = vld [vmem:[#allocation8 + $0x8] ss:$16 sps:$4 sm:$0xff]   ;;  %v5160_v10 = vsub.s32 0, %v4154_v8  ;;  %v5158_v11 = vsub.s32 3, %v4154_v8  ;;  %v94_v12 = vld [vmem:[%s5153_s3] sm:$0xf] }
  0x36   :  { %384 = vmatpush1.bf16.msra.mxu1 %v3415_v25  ;;  %312 = vmatprep.subr.bf16.mxu0 %v3416_v26  ;;  %v4168_v15 = vrot.slane %v94_v12, %v5157_v9  ;;  %v5159_v16 = vsub.s32 1, %v4154_v8 }
  0x37   :  { %385 = vmatprep.subr.bf16.mxu1 %v3418_v27  ;;  %v99_v19 = vrot.slane %v94_v12, %v5160_v10  ;;  %v4179_v20 = vrot.slane %v94_v12, %v5158_v11 }
  0x38   :  { %v103_v23 = vrot.slane %v94_v12, %v5159_v16 }
  0x39   :  { %313 = vmatpush1.bf16.msra.mxu0 %v3420_v28 }
  0x3a   :  { %386 = vmatpush1.bf16.msra.mxu1 %v3421_v29  ;;  %314 = vmatprep.subr.bf16.mxu0 %v3422_v30 }
  0x3b   :  { %387 = vmatprep.subr.bf16.mxu1 %v3424_v31 }
  0x3d   :  { %315 = vmatpush1.bf16.msra.mxu0 %v3426_v32 }
  0x3e   :  { %388 = vmatpush1.bf16.msra.mxu1 %v3427_v33  ;;  %674 = vmatprep.subr.bf16.mxu0 %v4000_v34 }
  0x3f   :  { %715 = vmatprep.subr.bf16.mxu1 %v4002_v35 }
  0x40   :  { %333 = vmatmul.mubr.bf16.vlgmr.msra.gmra.mxu0 %v3428_v36 }
  0x41   :  { %406 = vmatmul.mubr.bf16.vlgmr.msra.gmra.mxu1 %v3428_v36  ;;  %675 = vmatpush1.bf16.msra.mxu0 %v4007_v37 }
  0x42   :  { %716 = vmatpush1.bf16.msra.mxu1 %v4009_v38  ;;  %676 = vmatprep.subr.bf16.mxu0 %v4013_v39 }
  0x43   :  { %717 = vmatprep.subr.bf16.mxu1 %v4015_v40  ;;  %342 = vmatprep.mubr.bf16.mxu0 %v5161_v1 }
  0x44   :  { %415 = vmatprep.mubr.bf16.mxu1 %v5161_v1 }
  0x45   :  { %677 = vmatpush1.bf16.msra.mxu0 %v4017_v41 }
  0x46   :  { %718 = vmatpush1.bf16.msra.mxu1 %v4021_v42  ;;  %678 = vmatprep.subr.bf16.mxu0 %v4025_v43 }
  0x47   :  { %719 = vmatprep.subr.bf16.mxu1 %v4027_v44 }
  0x48   :  { %343 = vmatmul.mubr.bf16.gmra.mxu0 %v3441_v45 }
  0x49   :  { %416 = vmatmul.mubr.bf16.gmra.mxu1 %v3441_v45  ;;  %679 = vmatpush1.bf16.msra.mxu0 %v4034_v46 }
  0x4a   :  { %720 = vmatpush1.bf16.msra.mxu1 %v4036_v47  ;;  %680 = vmatprep.subr.bf16.mxu0 %v4040_v48 }
  0x4b   :  { %721 = vmatprep.subr.bf16.mxu1 %v4044_v49  ;;  %352 = vmatprep.mubr.bf16.mxu0 %v5161_v1 }
  0x4c   :  { %425 = vmatprep.mubr.bf16.mxu1 %v5161_v1 }
  0x4d   :  { %681 = vmatpush1.bf16.msra.mxu0 %v4046_v50 }
  0x4e   :  { %722 = vmatpush1.bf16.msra.mxu1 %v4048_v51  ;;  %682 = vmatprep.subr.bf16.mxu0 %v4052_v52 }
  0x4f   :  { %723 = vmatprep.subr.bf16.mxu1 %v4056_v53 }
  0x50   :  { %353 = vmatmul.mubr.bf16.gmra.mxu0 %v3454_v54 }
  0x51   :  { %426 = vmatmul.mubr.bf16.gmra.mxu1 %v3454_v54  ;;  %683 = vmatpush1.bf16.msra.mxu0 %v4063_v55 }
  0x52   :  { %724 = vmatpush1.bf16.msra.mxu1 %v4065_v56  ;;  %684 = vmatprep.subr.bf16.mxu0 %v4067_v57 }
  0x53   :  { %725 = vmatprep.subr.bf16.mxu1 %v4069_v58  ;;  %362 = vmatprep.mubr.bf16.mxu0 %v5161_v1 }
  0x54   :  { %435 = vmatprep.mubr.bf16.mxu1 %v5161_v1 }
  0x55   :  { %685 = vmatpush1.bf16.msra.mxu0 %v4075_v59 }
  0x56   :  { %726 = vmatpush1.bf16.msra.mxu1 %v4077_v60  ;;  %686 = vmatprep.subr.bf16.mxu0 %v4079_v61 }
  0x57   :  { %727 = vmatprep.subr.bf16.mxu1 %v4081_v62 }
  0x58   :  { %363 = vmatmul.mubr.bf16.gmra.mxu0 %v3467_v63 }
  0x59   :  { %436 = vmatmul.mubr.bf16.gmra.mxu1 %v3467_v63  ;;  %687 = vmatpush1.bf16.msra.mxu0 %v4092_v0 }
  0x5a   :  { %728 = vmatpush1.bf16.msra.mxu1 %v4094_v2  ;;  %688 = vmatprep.subr.bf16.mxu0 %v4096_v3 }
  0x5b   :  { %729 = vmatprep.subr.bf16.mxu1 %v4098_v4  ;;  %706 = vmatprep.mubr.bf16.mxu0 %v5161_v1 }
  0x5c   :  { %747 = vmatprep.mubr.bf16.mxu1 %v5161_v1 }
  0x5d   :  { %689 = vmatpush1.bf16.msra.mxu0 %v4104_v5 }
  0x5e   :  { %730 = vmatpush1.bf16.msra.mxu1 %v4106_v6  ;;  %791 = vmatprep.subr.bf16.mxu0 %v4000_v34 }
  0x5f   :  { %832 = vmatprep.subr.bf16.mxu1 %v4002_v35 }
  0x60   :  { %707 = vmatmul.mubr.bf16.vlgmr.msra.gmra.mxu0 %v5161_v1 }
  0x61   :  { %748 = vmatmul.mubr.bf16.vlgmr.msra.gmra.mxu1 %v5161_v1  ;;  %792 = vmatpush1.bf16.msra.mxu0 %v4007_v37 }
  0x62   :  { %833 = vmatpush1.bf16.msra.mxu1 %v4009_v38  ;;  %793 = vmatprep.subr.bf16.mxu0 %v4013_v39 }
  0x63   :  { %834 = vmatprep.subr.bf16.mxu1 %v4015_v40  ;;  %823 = vmatprep.mubr.bf16.mxu0 %v5161_v1 }
  0x64   :  { %864 = vmatprep.mubr.bf16.mxu1 %v5161_v1 }
  0x65   :  { %794 = vmatpush1.bf16.msra.mxu0 %v4017_v41 }
  0x66   :  { %835 = vmatpush1.bf16.msra.mxu1 %v4021_v42  ;;  %795 = vmatprep.subr.bf16.mxu0 %v4025_v43 }
  0x67   :  { %836 = vmatprep.subr.bf16.mxu1 %v4027_v44 }
  0x69   :  { %796 = vmatpush1.bf16.msra.mxu0 %v4034_v46 }
  0x6a   :  { %837 = vmatpush1.bf16.msra.mxu1 %v4036_v47  ;;  %797 = vmatprep.subr.bf16.mxu0 %v4040_v48 }
  0x6b   :  { %838 = vmatprep.subr.bf16.mxu1 %v4044_v49 }
  0x6d   :  { %798 = vmatpush1.bf16.msra.mxu0 %v4046_v50 }
  0x6e   :  { %839 = vmatpush1.bf16.msra.mxu1 %v4048_v51  ;;  %799 = vmatprep.subr.bf16.mxu0 %v4052_v52 }
  0x6f   :  { %840 = vmatprep.subr.bf16.mxu1 %v4056_v53 }
  0x71   :  { %800 = vmatpush1.bf16.msra.mxu0 %v4063_v55 }
  0x72   :  { %841 = vmatpush1.bf16.msra.mxu1 %v4065_v56  ;;  %801 = vmatprep.subr.bf16.mxu0 %v4067_v57 }
  0x73   :  { %842 = vmatprep.subr.bf16.mxu1 %v4069_v58 }
  0x75   :  { %802 = vmatpush1.bf16.msra.mxu0 %v4075_v59 }
  0x76   :  { %843 = vmatpush1.bf16.msra.mxu1 %v4077_v60  ;;  %803 = vmatprep.subr.bf16.mxu0 %v4079_v61 }
  0x77   :  { %844 = vmatprep.subr.bf16.mxu1 %v4081_v62 }
  0x79   :  { %804 = vmatpush1.bf16.msra.mxu0 %v4092_v0 }
  0x7a   :  { %845 = vmatpush1.bf16.msra.mxu1 %v4094_v2  ;;  %805 = vmatprep.subr.bf16.mxu0 %v4096_v3 }
  0x7b   :  { %846 = vmatprep.subr.bf16.mxu1 %v4098_v4 }
  0x7d   :  { %806 = vmatpush1.bf16.msra.mxu0 %v4104_v5 }
  0x7e   :  { %847 = vmatpush1.bf16.msra.mxu1 %v4106_v6  ;;  %909 = vmatprep.subr.bf16.mxu0 %v4000_v34 }
  0x7f   :  { %950 = vmatprep.subr.bf16.mxu1 %v4002_v35 }
 0x100   :  { %v4162_v13 = vpop.f32.mrf.mxu0 }
 0x101   :  { %v4164_v14 = vpop.f32.mrf.mxu1 }
 0x102   :  { %v4171_v17 = vpop.f32.mrf.mxu0 }
 0x103   :  { %v4173_v18 = vpop.f32.mrf.mxu1 }
 0x104   :  { %v338_v21 = vpop.f32.mrf.mxu0 }
 0x105   :  { %v411_v22 = vpop.f32.mrf.mxu1  ;;  %v4183_v24 = vadd.f32 %v338_v21, %v99_v19 }
 0x106   :  { %v4186_v25 = vadd.f32 %v411_v22, %v4168_v15  ;;  %v340_v26 = vpop.f32.mrf.mxu0 }
 0x107   :  { %v413_v27 = vpop.f32.mrf.mxu1  ;;  %v4188_v28 = vadd.f32 %v340_v26, %v103_v23 }
 0x108   :  { %v4191_v29 = vadd.f32 %v413_v27, %v4179_v20  ;;  %v344_v30 = vpop.f32.mrf.mxu0 }
 0x109   :  { %v417_v31 = vpop.f32.mrf.mxu1  ;;  %v4193_v32 = vadd.f32 %v344_v30, %v99_v19 }
 0x10a   :  { %v4196_v33 = vadd.f32 %v417_v31, %v4168_v15  ;;  %v346_v36 = vpop.f32.mrf.mxu0 }
 0x10b   :  { %v419_v45 = vpop.f32.mrf.mxu1  ;;  %v4198_v54 = vadd.f32 %v346_v36, %v103_v23 }
 0x10c   :  { %5166 = vst [vmem:[#allocation13_spill] sm:$0xff] %v4196_v33  ;;  %v4201_v63 = vadd.f32 %v419_v45, %v4179_v20  ;;  %v348_v7 = vpop.f32.mrf.mxu0 }
 0x10d   :  { %v421_v12 = vpop.f32.mrf.mxu1  ;;  %v4203_v21 = vadd.f32 %v348_v7, %v99_v19 }
 0x10e   :  { %v4206_v22 = vadd.f32 %v421_v12, %v4168_v15  ;;  %v350_v26 = vpop.f32.mrf.mxu0 }
 0x10f   :  { %5167 = vst [vmem:[#allocation14_spill] sm:$0xff] %v4203_v21  ;;  %v423_v27 = vpop.f32.mrf.mxu1  ;;  %v4208_v30 = vadd.f32 %v350_v26, %v103_v23 }
 0x110   :  { %5168 = vst [vmem:[#allocation15_spill] sm:$0xff] %v4206_v22  ;;  %v4211_v31 = vadd.f32 %v423_v27, %v4179_v20  ;;  %v354_v9 = vpop.f32.mrf.mxu0 }
 0x111   :  { %5169 = vst [vmem:[#allocation16_spill] sm:$0xff] %v4208_v30  ;;  %v427_v36 = vpop.f32.mrf.mxu1  ;;  %v4213_v11 = vadd.f32 %v354_v9, %v99_v19 }
 0x112   :  { %5170 = vst [vmem:[#allocation17_spill] sm:$0xff] %v4211_v31  ;;  %v4216_v45 = vadd.f32 %v427_v36, %v4168_v15  ;;  %v356_v16 = vpop.f32.mrf.mxu0 }
 0x113   :  { %5171 = vst [vmem:[#allocation18_spill] sm:$0xff] %v4213_v11  ;;  %v429_v7 = vpop.f32.mrf.mxu1  ;;  %v4218_v10 = vadd.f32 %v356_v16, %v103_v23 }
 0x114   :  { %5172 = vst [vmem:[#allocation19_spill] sm:$0xff] %v4216_v45  ;;  %v4221_v12 = vadd.f32 %v429_v7, %v4179_v20  ;;  %v358_v1 = vpop.f32.mrf.mxu0 }
 0x115   :  { %5173 = vst [vmem:[#allocation20_spill] sm:$0xff] %v4218_v10  ;;  %v431_v26 = vpop.f32.mrf.mxu1  ;;  %v4223_v8 = vadd.f32 %v358_v1, %v99_v19 }
 0x116   :  { %5174 = vst [vmem:[#allocation21_spill] sm:$0xff] %v4221_v12  ;;  %v4226_v27 = vadd.f32 %v431_v26, %v4168_v15  ;;  %v360_v22 = vpop.f32.mrf.mxu0 }
 0x117   :  { %5175 = vst [vmem:[#allocation22_spill] sm:$0xff] %v4223_v8  ;;  %v433_v9 = vpop.f32.mrf.mxu1  ;;  %v4228_v11 = vadd.f32 %v360_v22, %v103_v23 }
 0x118   :  { %5176 = vst [vmem:[#allocation23_spill] sm:$0xff] %v4226_v27  ;;  %v4231_v36 = vadd.f32 %v433_v9, %v4179_v20  ;;  %v364_v45 = vpop.f32.mrf.mxu0 }
 0x119   :  { %5177 = vst [vmem:[#allocation24_spill] sm:$0xff] %v4228_v11  ;;  %v437_v16 = vpop.f32.mrf.mxu1  ;;  %v4233_v10 = vadd.f32 %v364_v45, %v99_v19 }
 0x11a   :  { %5178 = vst [vmem:[#allocation25_spill] sm:$0xff] %v4231_v36  ;;  %v4236_v7 = vadd.f32 %v437_v16, %v4168_v15  ;;  %v366_v12 = vpop.f32.mrf.mxu0 }
 0x11b   :  { %5179 = vst [vmem:[#allocation26_spill] sm:$0xff] %v4233_v10  ;;  %v439_v1 = vpop.f32.mrf.mxu1  ;;  %v4238_v8 = vadd.f32 %v366_v12, %v103_v23  ;;  %v335_v10 = vadd.f32 %v4162_v13, %v99_v19 }
 0x11c   :  { %5180 = vst [vmem:[#allocation27_spill] sm:$0xff] %v4236_v7  ;;  %v4241_v26 = vadd.f32 %v439_v1, %v4179_v20  ;;  %v368_v27 = vpop.f32.mrf.mxu0  ;;  %v337_v1 = vadd.f32 %v4171_v17, %v103_v23 }
 0x11d   :  { %5181 = vst [vmem:[#allocation28_spill] sm:$0xff] %v4238_v8  ;;  %v441_v22 = vpop.f32.mrf.mxu1  ;;  %v4243_v11 = vadd.f32 %v368_v27, %v99_v19  ;;  %v410_v19 = vadd.f32 %v4173_v18, %v4179_v20 }
 0x11e   :  { %5182 = vst [vmem:[#allocation29_spill] sm:$0xff] %v4241_v26  ;;  %v4246_v9 = vadd.f32 %v441_v22, %v4168_v15  ;;  %v370_v36 = vpop.f32.mrf.mxu0 }
 0x11f   :  { %5183 = vst [vmem:[#allocation30_spill] sm:$0xff] %v4243_v11  ;;  %v443_v45 = vpop.f32.mrf.mxu1  ;;  %v4249_v16 = vadd.f32 %v370_v36, %v103_v23 }
 0x120   :  { %5184 = vst [vmem:[#allocation31_spill] sm:$0xff] %v4246_v9  ;;  %v4252_v7 = vadd.f32 %v443_v45, %v4179_v20  ;;  %v708_v12 = vpop.f32.mrf.mxu0  ;;  %v408_v45 = vadd.f32 %v4164_v14, %v4168_v15 }
 0x121   :  { %v749_v8 = vpop.f32.mrf.mxu1  ;;  %v756_v26 = vadd.f32 %v708_v12, %v335_v10 }
 0x122   :  { %v710_v31 = vpop.f32.mrf.mxu0  ;;  %v758_v23 = vadd.f32 %v749_v8, %v408_v45 }
 0x123   :  { %v751_v27 = vpop.f32.mrf.mxu1  ;;  %v3254_v11 = vmul.f32 -1.442695, %v756_v26  ;;  %v757_v30 = vadd.f32 %v710_v31, %v337_v1 }
 0x124   :  { %v712_v22 = vpop.f32.mrf.mxu0  ;;  %v759_v36 = vadd.f32 %v751_v27, %v410_v19 }
 0x125   :  { %v753_v9 = vpop.f32.mrf.mxu1  ;;  %3580 = vpow2.f32 %v3254_v11  ;;  %v3255_v21 = vmul.f32 -1.442695, %v757_v30  ;;  %v5185_v22 = vmov 0  }
 0x126   :  { %v713_v33 = vpop.f32.mrf.mxu0  ;;  %v3256_v17 = vmul.f32 -1.442695, %v759_v36 }
 0x127   :  { %v754_v13 = vpop.f32.mrf.mxu1  ;;  %3582 = vpow2.f32 %v3255_v21 }
 0x128   :  { %3584 = vpow2.f32 %v3256_v17 }
 0x132   :  { %v3581_v10 = vpop.eup %3580 }
 0x133   :  { %v763_v12 = vadd.f32 1.0, %v3581_v10 }
 0x134   :  { %v3583_v26 = vpop.eup %3582 }
 0x135   :  { %3586 = vrcp.f32 %v763_v12  ;;  %v769_v31 = vadd.f32 1.0, %v3583_v26  ;;  %v3585_v11 = vpop.eup %3584 }
 0x136   :  { %3588 = vtanh.f32 %v758_v23  ;;  %v776_v9 = vadd.f32 1.0, %v3585_v11 }
 0x137   :  { %3590 = vrcp.f32 %v769_v31 }
 0x138   :  { %3592 = vrcp.f32 %v776_v9 }
 0x142   :  { %v3587_v33 = vpop.eup %3586 }
 0x143   :  { %v3589_v21 = vpop.eup %3588 }
 0x144   :  { %v3591_v30 = vpop.eup %3590  ;;  %v780_v20 = vmul.f32 %v3589_v21, %v3587_v33 }
 0x145   :  { %v779_v18 = vmul.f32 0.0, %v3591_v30  ;;  %v3593_v8 = vpop.eup %3592 }
 0x147   :  { %v4259_v1 = vadd.f32 %v780_v20, %v779_v18 }
 0x149   :  { %3594 = vtanh.f32 %v4259_v1 }
 0x156   :  { %v3595_v14 = vpop.eup %3594 }
 0x157   :  { %v783_v15 = vmul.f32 %v3595_v14, %v3593_v8 }
 0x159   :  { %v784_v27 = vpack.c.bf16 %v783_v15, %v783_v15 }
 0x15b   :  { %785 = vst [vmem:[#allocation2] sm:$0xf] %v784_v27  ;;  %824 = vmatmul.mubr.bf16.vlgmr.msra.gmra.mxu0 %v784_v27  ;;  %865 = vmatmul.mubr.bf16.vlgmr.msra.gmra.mxu1 %v784_v27 }
 0x15c   :  { %910 = vmatpush1.bf16.msra.mxu0 %v4007_v37  ;;  %951 = vmatpush1.bf16.msra.mxu1 %v4009_v38 }
 0x15d   :  { %911 = vmatprep.subr.bf16.mxu0 %v4013_v39  ;;  %952 = vmatprep.subr.bf16.mxu1 %v4015_v40 }
 0x15e   :  { %941 = vmatprep.mubr.bf16.mxu0 %v5185_v22  ;;  %982 = vmatprep.mubr.bf16.mxu1 %v5185_v22 }
 0x160   :  { %912 = vmatpush1.bf16.msra.mxu0 %v4017_v41  ;;  %953 = vmatpush1.bf16.msra.mxu1 %v4021_v42 }
 0x161   :  { %913 = vmatprep.subr.bf16.mxu0 %v4025_v43  ;;  %954 = vmatprep.subr.bf16.mxu1 %v4027_v44 }
 0x164   :  { %914 = vmatpush1.bf16.msra.mxu0 %v4034_v46  ;;  %955 = vmatpush1.bf16.msra.mxu1 %v4036_v47 }
 0x165   :  { %915 = vmatprep.subr.bf16.mxu0 %v4040_v48  ;;  %956 = vmatprep.subr.bf16.mxu1 %v4044_v49 }
 0x168   :  { %916 = vmatpush1.bf16.msra.mxu0 %v4046_v50  ;;  %957 = vmatpush1.bf16.msra.mxu1 %v4048_v51 }
 0x169   :  { %917 = vmatprep.subr.bf16.mxu0 %v4052_v52  ;;  %958 = vmatprep.subr.bf16.mxu1 %v4056_v53 }
 0x16c   :  { %918 = vmatpush1.bf16.msra.mxu0 %v4063_v55  ;;  %959 = vmatpush1.bf16.msra.mxu1 %v4065_v56 }
 0x16d   :  { %919 = vmatprep.subr.bf16.mxu0 %v4067_v57  ;;  %960 = vmatprep.subr.bf16.mxu1 %v4069_v58 }
 0x170   :  { %920 = vmatpush1.bf16.msra.mxu0 %v4075_v59  ;;  %961 = vmatpush1.bf16.msra.mxu1 %v4077_v60 }
 0x171   :  { %921 = vmatprep.subr.bf16.mxu0 %v4079_v61  ;;  %962 = vmatprep.subr.bf16.mxu1 %v4081_v62 }
 0x174   :  { %922 = vmatpush1.bf16.msra.mxu0 %v4092_v0  ;;  %963 = vmatpush1.bf16.msra.mxu1 %v4094_v2 }
 0x175   :  { %923 = vmatprep.subr.bf16.mxu0 %v4096_v3  ;;  %964 = vmatprep.subr.bf16.mxu1 %v4098_v4 }
 0x178   :  { %924 = vmatpush1.bf16.msra.mxu0 %v4104_v5  ;;  %965 = vmatpush1.bf16.msra.mxu1 %v4106_v6 }
 0x179   :  { %1027 = vmatprep.subr.bf16.mxu0 %v4000_v34  ;;  %1068 = vmatprep.subr.bf16.mxu1 %v4002_v35 }
 0x21b   :  { %v825_v13 = vpop.f32.mrf.mxu0  ;;  %v866_v19 = vpop.f32.mrf.mxu1 }
 0x21c   :  { %v873_v36 = vadd.f32 %v825_v13, %v4183_v24  ;;  %v875_v30 = vadd.f32 %v866_v19, %v4186_v25 }
 0x21d   :  { %v827_v45 = vpop.f32.mrf.mxu0  ;;  %v868_v17 = vpop.f32.mrf.mxu1 }
 0x21e   :  { %v3257_v10 = vmul.f32 -1.442695, %v873_v36  ;;  %v874_v23 = vadd.f32 %v827_v45, %v4188_v28  ;;  %v876_v21 = vadd.f32 %v868_v17, %v4191_v29 }
 0x21f   :  { %v829_v12 = vpop.f32.mrf.mxu0  ;;  %v870_v26 = vpop.f32.mrf.mxu1 }
 0x220   :  { %3596 = vpow2.f32 %v3257_v10  ;;  %v3258_v31 = vmul.f32 -1.442695, %v874_v23  ;;  %v3259_v9 = vmul.f32 -1.442695, %v876_v21 }
 0x221   :  { %v830_v11 = vpop.f32.mrf.mxu0  ;;  %v871_v33 = vpop.f32.mrf.mxu1 }
 0x222   :  { %3598 = vpow2.f32 %v3258_v31 }
 0x223   :  { %3600 = vtanh.f32 %v875_v30 }
 0x224   :  { %3602 = vpow2.f32 %v3259_v9 }
 0x22d   :  { %v3597_v18 = vpop.eup %3596 }
 0x22e   :  { %v880_v20 = vadd.f32 1.0, %v3597_v18 }
 0x22f   :  { %v3599_v24 = vpop.eup %3598 }
 0x230   :  { %3604 = vrcp.f32 %v880_v20  ;;  %v886_v8 = vadd.f32 1.0, %v3599_v24  ;;  %v3601_v28 = vpop.eup %3600  ;;  %v5186_v24 = vld [vmem:[#allocation13_spill] sm:$0xff] }
 0x231   :  { %v3603_v14 = vpop.eup %3602 }
 0x232   :  { %3606 = vrcp.f32 %v886_v8  ;;  %v893_v36 = vadd.f32 1.0, %v3603_v14 }
 0x234   :  { %3608 = vrcp.f32 %v893_v36 }
 0x23d   :  { %v3605_v15 = vpop.eup %3604 }
 0x23e   :  { %v897_v27 = vmul.f32 %v3605_v15, %v3601_v28 }
 0x23f   :  { %v3607_v13 = vpop.eup %3606 }
 0x240   :  { %v896_v45 = vmul.f32 %v3607_v13, %v4259_v1 }
 0x241   :  { %v3609_v25 = vpop.eup %3608 }
 0x242   :  { %v4301_v29 = vadd.f32 %v897_v27, %v896_v45 }
 0x244   :  { %3610 = vtanh.f32 %v4301_v29 }
 0x251   :  { %v3611_v19 = vpop.eup %3610 }
 0x252   :  { %v900_v17 = vmul.f32 %v3611_v19, %v3609_v25 }
 0x254   :  { %v901_v10 = vpack.c.bf16 %v900_v17, %v900_v17 }
 0x256   :  { %903 = vst [vmem:[#allocation2 + $0x4] sm:$0xf] %v901_v10  ;;  %942 = vmatmul.mubr.bf16.vlgmr.msra.gmra.mxu0 %v901_v10  ;;  %983 = vmatmul.mubr.bf16.vlgmr.msra.gmra.mxu1 %v901_v10 }
 0x257   :  { %1028 = vmatpush1.bf16.msra.mxu0 %v4007_v37  ;;  %1069 = vmatpush1.bf16.msra.mxu1 %v4009_v38 }
 0x258   :  { %1029 = vmatprep.subr.bf16.mxu0 %v4013_v39  ;;  %1070 = vmatprep.subr.bf16.mxu1 %v4015_v40 }
 0x259   :  { %1059 = vmatprep.mubr.bf16.mxu0 %v5185_v22  ;;  %1100 = vmatprep.mubr.bf16.mxu1 %v5185_v22 }
 0x25b   :  { %1030 = vmatpush1.bf16.msra.mxu0 %v4017_v41  ;;  %1071 = vmatpush1.bf16.msra.mxu1 %v4021_v42 }
 0x25c   :  { %1031 = vmatprep.subr.bf16.mxu0 %v4025_v43  ;;  %1072 = vmatprep.subr.bf16.mxu1 %v4027_v44 }
 0x25f   :  { %1032 = vmatpush1.bf16.msra.mxu0 %v4034_v46  ;;  %1073 = vmatpush1.bf16.msra.mxu1 %v4036_v47 }
 0x260   :  { %1033 = vmatprep.subr.bf16.mxu0 %v4040_v48  ;;  %1074 = vmatprep.subr.bf16.mxu1 %v4044_v49 }
 0x263   :  { %1034 = vmatpush1.bf16.msra.mxu0 %v4046_v50  ;;  %1075 = vmatpush1.bf16.msra.mxu1 %v4048_v51 }
 0x264   :  { %1035 = vmatprep.subr.bf16.mxu0 %v4052_v52  ;;  %1076 = vmatprep.subr.bf16.mxu1 %v4056_v53 }
 0x267   :  { %1036 = vmatpush1.bf16.msra.mxu0 %v4063_v55  ;;  %1077 = vmatpush1.bf16.msra.mxu1 %v4065_v56 }
 0x268   :  { %1037 = vmatprep.subr.bf16.mxu0 %v4067_v57  ;;  %1078 = vmatprep.subr.bf16.mxu1 %v4069_v58 }
 0x26b   :  { %1038 = vmatpush1.bf16.msra.mxu0 %v4075_v59  ;;  %1079 = vmatpush1.bf16.msra.mxu1 %v4077_v60 }
 0x26c   :  { %1039 = vmatprep.subr.bf16.mxu0 %v4079_v61  ;;  %1080 = vmatprep.subr.bf16.mxu1 %v4081_v62 }
 0x26f   :  { %1040 = vmatpush1.bf16.msra.mxu0 %v4092_v0  ;;  %1081 = vmatpush1.bf16.msra.mxu1 %v4094_v2 }
 0x270   :  { %1041 = vmatprep.subr.bf16.mxu0 %v4096_v3  ;;  %1082 = vmatprep.subr.bf16.mxu1 %v4098_v4 }
 0x273   :  { %1042 = vmatpush1.bf16.msra.mxu0 %v4104_v5  ;;  %1083 = vmatpush1.bf16.msra.mxu1 %v4106_v6 }
 0x274   :  { %1145 = vmatprep.subr.bf16.mxu0 %v4000_v34  ;;  %1186 = vmatprep.subr.bf16.mxu1 %v4002_v35 }
 0x316   :  { %v943_v1 = vpop.f32.mrf.mxu0  ;;  %v984_v23 = vpop.f32.mrf.mxu1 }
 0x317   :  { %v991_v12 = vadd.f32 %v943_v1, %v4193_v32  ;;  %v993_v35 = vadd.f32 %v984_v23, %v5186_v24 }
 0x318   :  { %v945_v26 = vpop.f32.mrf.mxu0  ;;  %v986_v31 = vpop.f32.mrf.mxu1 }
 0x319   :  { %v3260_v11 = vmul.f32 -1.442695, %v991_v12  ;;  %v992_v33 = vadd.f32 %v945_v26, %v4198_v54  ;;  %v994_v34 = vadd.f32 %v986_v31, %v4201_v63  ;;  %v5190_v26 = vld [vmem:[#allocation15_spill] sm:$0xff] }
 0x31a   :  { %v947_v21 = vpop.f32.mrf.mxu0  ;;  %v988_v30 = vpop.f32.mrf.mxu1 }
 0x31b   :  { %3612 = vpow2.f32 %v3260_v11  ;;  %v3261_v9 = vmul.f32 -1.442695, %v992_v33  ;;  %v3262_v8 = vmul.f32 -1.442695, %v994_v34 }
 0x31c   :  { %v948_v18 = vpop.f32.mrf.mxu0  ;;  %v989_v20 = vpop.f32.mrf.mxu1 }
 0x31d   :  { %3614 = vpow2.f32 %v3261_v9 }
 0x31e   :  { %3616 = vtanh.f32 %v993_v35 }
 0x31f   :  { %3618 = vpow2.f32 %v3262_v8 }
 0x328   :  { %v3613_v28 = vpop.eup %3612 }
 0x329   :  { %v998_v14 = vadd.f32 1.0, %v3613_v28 }
 0x32a   :  { %v3615_v32 = vpop.eup %3614 }
 0x32b   :  { %3620 = vrcp.f32 %v998_v14  ;;  %v1004_v15 = vadd.f32 1.0, %v3615_v32  ;;  %v3617_v54 = vpop.eup %3616 }
 0x32c   :  { %v3619_v27 = vpop.eup %3618 }
 0x32d   :  { %3622 = vrcp.f32 %v1004_v15  ;;  %v1011_v25 = vadd.f32 1.0, %v3619_v27 }
 0x32f   :  { %3624 = vrcp.f32 %v1011_v25  ;;  %v4401_v25 = vld [vmem:[#allocation8 + $0xcc] ss:$16 sps:$4 sm:$0xff]  }
 0x338   :  { %v3621_v13 = vpop.eup %3620 }
 0x339   :  { %v1015_v36 = vmul.f32 %v3621_v13, %v3617_v54  ;;  %v4392_v13 = vld [vmem:[#allocation8 + $0xe0] ss:$16 sps:$4 sm:$0xff]  }
 0x33a   :  { %v3623_v45 = vpop.eup %3622 }
 0x33b   :  { %v1014_v19 = vmul.f32 %v3623_v45, %v4301_v29  ;;  %v5189_v29 = vld [vmem:[#allocation17_spill] sm:$0xff]  ;;  %v4398_v45 = vld [vmem:[#allocation8 + $0xc4] ss:$16 sps:$4 sm:$0xff]  }
 0x33c   :  { %v3625_v17 = vpop.eup %3624 }
 0x33d   :  { %v4343_v63 = vadd.f32 %v1015_v36, %v1014_v19  ;;  %v4395_v36 = vld [vmem:[#allocation8 + $0xe8] ss:$16 sps:$4 sm:$0xff]   ;;  %v4406_v19 = vld [vmem:[#allocation8 + $0xc0] ss:$16 sps:$4 sm:$0xff]  }
 0x33f   :  { %3626 = vtanh.f32 %v4343_v63 }
 0x34c   :  { %v3627_v10 = vpop.eup %3626 }
 0x34d   :  { %v1018_v1 = vmul.f32 %v3627_v10, %v3625_v17  ;;  %v4412_v17 = vld [vmem:[#allocation8 + $0xa4] ss:$16 sps:$4 sm:$0xff]   ;;  %v4415_v10 = vld [vmem:[#allocation8 + $0xac] ss:$16 sps:$4 sm:$0xff]  }
 0x34f   :  { %v1019_v23 = vpack.c.bf16 %v1018_v1, %v1018_v1  ;;  %v4418_v1 = vld [vmem:[#allocation8 + $0xa0] ss:$16 sps:$4 sm:$0xff]  }
 0x351   :  { %1021 = vst [vmem:[#allocation2 + $0x8] sm:$0xf] %v1019_v23  ;;  %1060 = vmatmul.mubr.bf16.vlgmr.msra.gmra.mxu0 %v1019_v23  ;;  %1101 = vmatmul.mubr.bf16.vlgmr.msra.gmra.mxu1 %v1019_v23  ;;  %v4421_v23 = vld [vmem:[#allocation8 + $0xa8] ss:$16 sps:$4 sm:$0xff]  }
 0x352   :  { %1146 = vmatpush1.bf16.msra.mxu0 %v4007_v37  ;;  %1187 = vmatpush1.bf16.msra.mxu1 %v4009_v38  ;;  %v4378_v37 = vld [vmem:[#allocation8 + $0xe4] ss:$16 sps:$4 sm:$0xff]   ;;  %v4381_v38 = vld [vmem:[#allocation8 + $0xec] ss:$16 sps:$4 sm:$0xff]  }
 0x353   :  { %1147 = vmatprep.subr.bf16.mxu0 %v4013_v39  ;;  %1188 = vmatprep.subr.bf16.mxu1 %v4015_v40 }
 0x354   :  { %1177 = vmatprep.mubr.bf16.mxu0 %v5185_v22  ;;  %1218 = vmatprep.mubr.bf16.mxu1 %v5185_v22 }
 0x356   :  { %1148 = vmatpush1.bf16.msra.mxu0 %v4017_v41  ;;  %1189 = vmatpush1.bf16.msra.mxu1 %v4021_v42  ;;  %v5187_v41 = vld [vmem:[#allocation14_spill] sm:$0xff] }
 0x357   :  { %1149 = vmatprep.subr.bf16.mxu0 %v4025_v43  ;;  %1190 = vmatprep.subr.bf16.mxu1 %v4027_v44 }
 0x35a   :  { %1150 = vmatpush1.bf16.msra.mxu0 %v4034_v46  ;;  %1191 = vmatpush1.bf16.msra.mxu1 %v4036_v47  ;;  %v5188_v47 = vld [vmem:[#allocation16_spill] sm:$0xff] }
 0x35b   :  { %1151 = vmatprep.subr.bf16.mxu0 %v4040_v48  ;;  %1192 = vmatprep.subr.bf16.mxu1 %v4044_v49 }
 0x35e   :  { %1152 = vmatpush1.bf16.msra.mxu0 %v4046_v50  ;;  %1193 = vmatpush1.bf16.msra.mxu1 %v4048_v51 }
 0x35f   :  { %1153 = vmatprep.subr.bf16.mxu0 %v4052_v52  ;;  %1194 = vmatprep.subr.bf16.mxu1 %v4056_v53 }
 0x362   :  { %1154 = vmatpush1.bf16.msra.mxu0 %v4063_v55  ;;  %1195 = vmatpush1.bf16.msra.mxu1 %v4065_v56 }
 0x363   :  { %1155 = vmatprep.subr.bf16.mxu0 %v4067_v57  ;;  %1196 = vmatprep.subr.bf16.mxu1 %v4069_v58 }
 0x366   :  { %1156 = vmatpush1.bf16.msra.mxu0 %v4075_v59  ;;  %1197 = vmatpush1.bf16.msra.mxu1 %v4077_v60 }
 0x367   :  { %1157 = vmatprep.subr.bf16.mxu0 %v4079_v61  ;;  %1198 = vmatprep.subr.bf16.mxu1 %v4081_v62 }
 0x36a   :  { %1158 = vmatpush1.bf16.msra.mxu0 %v4092_v0  ;;  %1199 = vmatpush1.bf16.msra.mxu1 %v4094_v2 }
 0x36b   :  { %1159 = vmatprep.subr.bf16.mxu0 %v4096_v3  ;;  %1200 = vmatprep.subr.bf16.mxu1 %v4098_v4 }
 0x36e   :  { %1160 = vmatpush1.bf16.msra.mxu0 %v4104_v5  ;;  %1201 = vmatpush1.bf16.msra.mxu1 %v4106_v6 }
 0x36f   :  { %1263 = vmatprep.subr.bf16.mxu0 %v4378_v37  ;;  %1304 = vmatprep.subr.bf16.mxu1 %v4381_v38 }
 0x411   :  { %v1061_v39 = vpop.f32.mrf.mxu0  ;;  %v1102_v40 = vpop.f32.mrf.mxu1 }
 0x412   :  { %v1109_v42 = vadd.f32 %v1061_v39, %v5187_v41  ;;  %v1111_v31 = vadd.f32 %v1102_v40, %v5190_v26  ;;  %v4424_v39 = vld [vmem:[#allocation8 + $0x84] ss:$16 sps:$4 sm:$0xff]   ;;  %v4427_v40 = vld [vmem:[#allocation8 + $0x8c] ss:$16 sps:$4 sm:$0xff]   ;;  %v4430_v41 = vld [vmem:[#allocation8 + $0x80] ss:$16 sps:$4 sm:$0xff]  }
 0x413   :  { %v1063_v43 = vpop.f32.mrf.mxu0  ;;  %v1104_v44 = vpop.f32.mrf.mxu1 }
 0x414   :  { %v3263_v46 = vmul.f32 -1.442695, %v1109_v42  ;;  %v1110_v48 = vadd.f32 %v1063_v43, %v5188_v47  ;;  %v1112_v12 = vadd.f32 %v1104_v44, %v5189_v29  ;;  %v4433_v42 = vld [vmem:[#allocation8 + $0x88] ss:$16 sps:$4 sm:$0xff]   ;;  %v4436_v43 = vld [vmem:[#allocation8 + $0x64] ss:$16 sps:$4 sm:$0xff]  }
 0x415   :  { %v1065_v49 = vpop.f32.mrf.mxu0  ;;  %v1106_v50 = vpop.f32.mrf.mxu1  ;;  %v4439_v44 = vld [vmem:[#allocation8 + $0x6c] ss:$16 sps:$4 sm:$0xff]  }
 0x416   :  { %3628 = vpow2.f32 %v3263_v46  ;;  %v3264_v51 = vmul.f32 -1.442695, %v1110_v48  ;;  %v3265_v11 = vmul.f32 -1.442695, %v1112_v12  ;;  %v5194_v48 = vld [vmem:[#allocation19_spill] sm:$0xff] }
 0x417   :  { %v1066_v52 = vpop.f32.mrf.mxu0  ;;  %v1107_v53 = vpop.f32.mrf.mxu1 }
 0x418   :  { %3630 = vpow2.f32 %v3264_v51 }
 0x419   :  { %3632 = vtanh.f32 %v1111_v31 }
 0x41a   :  { %3634 = vpow2.f32 %v3265_v11 }
 0x423   :  { %v3629_v33 = vpop.eup %3628 }
 0x424   :  { %v1116_v21 = vadd.f32 1.0, %v3629_v33 }
 0x425   :  { %v3631_v30 = vpop.eup %3630 }
 0x426   :  { %3636 = vrcp.f32 %v1116_v21  ;;  %v1122_v9 = vadd.f32 1.0, %v3631_v30  ;;  %v3633_v18 = vpop.eup %3632 }
 0x427   :  { %v3635_v20 = vpop.eup %3634 }
 0x428   :  { %3638 = vrcp.f32 %v1122_v9  ;;  %v1129_v8 = vadd.f32 1.0, %v3635_v20 }
 0x42a   :  { %3640 = vrcp.f32 %v1129_v8  ;;  %v4487_v8 = vld [vmem:[#allocation8 + $0x68] ss:$16 sps:$4 sm:$0xff]  }
 0x433   :  { %v3637_v34 = vpop.eup %3636 }
 0x434   :  { %v1133_v24 = vmul.f32 %v3637_v34, %v3633_v18 }
 0x435   :  { %v3639_v35 = vpop.eup %3638 }
 0x436   :  { %v1132_v28 = vmul.f32 %v3639_v35, %v4343_v63  ;;  %v4409_v63 = vld [vmem:[#allocation8 + $0xc8] ss:$16 sps:$4 sm:$0xff]   ;;  %v4484_v35 = vld [vmem:[#allocation8 + $0x60] ss:$16 sps:$4 sm:$0xff]  }
 0x437   :  { %v3641_v32 = vpop.eup %3640 }
 0x438   :  { %v4389_v14 = vadd.f32 %v1133_v24, %v1132_v28  ;;  %v4490_v28 = vld [vmem:[#allocation8 + $0x44] ss:$16 sps:$4 sm:$0xff]  }
 0x43a   :  { %3642 = vtanh.f32 %v4389_v14 }
 0x447   :  { %v3643_v15 = vpop.eup %3642 }
 0x448   :  { %v1136_v54 = vmul.f32 %v3643_v15, %v3641_v32  ;;  %v4496_v32 = vld [vmem:[#allocation8 + $0x40] ss:$16 sps:$4 sm:$0xff]   ;;  %v4499_v15 = vld [vmem:[#allocation8 + $0x48] ss:$16 sps:$4 sm:$0xff]  }
 0x44a   :  { %v1137_v27 = vpack.c.bf16 %v1136_v54, %v1136_v54  ;;  %v4502_v54 = vld [vmem:[#allocation8 + $0x24] ss:$16 sps:$4 sm:$0xff]  }
 0x44c   :  { %1139 = vst [vmem:[#allocation2 + $0xc] sm:$0xf] %v1137_v27  ;;  %1178 = vmatmul.mubr.bf16.vlgmr.msra.gmra.mxu0 %v1137_v27  ;;  %1219 = vmatmul.mubr.bf16.vlgmr.msra.gmra.mxu1 %v1137_v27  ;;  %v4505_v27 = vld [vmem:[#allocation8 + $0x2c] ss:$16 sps:$4 sm:$0xff]  }
 0x44d   :  { %1264 = vmatpush1.bf16.msra.mxu0 %v4392_v13  ;;  %1305 = vmatpush1.bf16.msra.mxu1 %v4395_v36 }
 0x44e   :  { %1265 = vmatprep.subr.bf16.mxu0 %v4398_v45  ;;  %1306 = vmatprep.subr.bf16.mxu1 %v4401_v25 }
 0x44f   :  { %1295 = vmatprep.mubr.bf16.mxu0 %v5185_v22  ;;  %1336 = vmatprep.mubr.bf16.mxu1 %v5185_v22 }
 0x451   :  { %1266 = vmatpush1.bf16.msra.mxu0 %v4406_v19  ;;  %1307 = vmatpush1.bf16.msra.mxu1 %v4409_v63 }
 0x452   :  { %1267 = vmatprep.subr.bf16.mxu0 %v4412_v17  ;;  %1308 = vmatprep.subr.bf16.mxu1 %v4415_v10 }
 0x455   :  { %1268 = vmatpush1.bf16.msra.mxu0 %v4418_v1  ;;  %1309 = vmatpush1.bf16.msra.mxu1 %v4421_v23 }
 0x456   :  { %1269 = vmatprep.subr.bf16.mxu0 %v4424_v39  ;;  %1310 = vmatprep.subr.bf16.mxu1 %v4427_v40 }
 0x459   :  { %1270 = vmatpush1.bf16.msra.mxu0 %v4430_v41  ;;  %1311 = vmatpush1.bf16.msra.mxu1 %v4433_v42 }
 0x45a   :  { %1271 = vmatprep.subr.bf16.mxu0 %v4436_v43  ;;  %1312 = vmatprep.subr.bf16.mxu1 %v4439_v44 }
 0x45d   :  { %1272 = vmatpush1.bf16.msra.mxu0 %v4063_v55  ;;  %1313 = vmatpush1.bf16.msra.mxu1 %v4065_v56 }
 0x45e   :  { %1273 = vmatprep.subr.bf16.mxu0 %v4067_v57  ;;  %1314 = vmatprep.subr.bf16.mxu1 %v4069_v58  ;;  %v5191_v57 = vld [vmem:[#allocation18_spill] sm:$0xff] }
 0x461   :  { %1274 = vmatpush1.bf16.msra.mxu0 %v4075_v59  ;;  %1315 = vmatpush1.bf16.msra.mxu1 %v4077_v60 }
 0x462   :  { %1275 = vmatprep.subr.bf16.mxu0 %v4079_v61  ;;  %1316 = vmatprep.subr.bf16.mxu1 %v4081_v62  ;;  %v5192_v62 = vld [vmem:[#allocation20_spill] sm:$0xff] }
 0x465   :  { %1276 = vmatpush1.bf16.msra.mxu0 %v4092_v0  ;;  %1317 = vmatpush1.bf16.msra.mxu1 %v4094_v2 }
 0x466   :  { %1277 = vmatprep.subr.bf16.mxu0 %v4096_v3  ;;  %1318 = vmatprep.subr.bf16.mxu1 %v4098_v4 }
 0x469   :  { %1278 = vmatpush1.bf16.msra.mxu0 %v4104_v5  ;;  %1319 = vmatpush1.bf16.msra.mxu1 %v4106_v6  ;;  %v5193_v6 = vld [vmem:[#allocation21_spill] sm:$0xff] }
 0x46a   :  { %1381 = vmatprep.subr.bf16.mxu0 %v4378_v37  ;;  %1422 = vmatprep.subr.bf16.mxu1 %v4381_v38 }
 0x50c   :  { %v1179_v55 = vpop.f32.mrf.mxu0  ;;  %v1220_v56 = vpop.f32.mrf.mxu1 }
 0x50d   :  { %v1227_v58 = vadd.f32 %v1179_v55, %v5191_v57  ;;  %v1229_v49 = vadd.f32 %v1220_v56, %v5194_v48  ;;  %v4508_v55 = vld [vmem:[#allocation8 + $0x20] ss:$16 sps:$4 sm:$0xff]   ;;  %v4511_v56 = vld [vmem:[#allocation8 + $0x28] ss:$16 sps:$4 sm:$0xff]   ;;  %v4514_v57 = vld [vmem:[#allocation8 + $0x4] ss:$16 sps:$4 sm:$0xff]  }
 0x50e   :  { %v1181_v59 = vpop.f32.mrf.mxu0  ;;  %v1222_v60 = vpop.f32.mrf.mxu1 }
 0x50f   :  { %v3266_v61 = vmul.f32 -1.442695, %v1227_v58  ;;  %v1228_v0 = vadd.f32 %v1181_v59, %v5192_v62  ;;  %v1230_v47 = vadd.f32 %v1222_v60, %v5193_v6  ;;  %v4517_v58 = vld [vmem:[#allocation8 + $0xc] ss:$16 sps:$4 sm:$0xff]   ;;  %v4520_v59 = vld [vmem:[#allocation8] ss:$16 sps:$4 sm:$0xff]  }
 0x510   :  { %v1183_v2 = vpop.f32.mrf.mxu0  ;;  %v1224_v3 = vpop.f32.mrf.mxu1  ;;  %v4523_v60 = vld [vmem:[#allocation8 + $0x8] ss:$16 sps:$4 sm:$0xff]  }
 0x511   :  { %3644 = vpow2.f32 %v3266_v61  ;;  %v3267_v4 = vmul.f32 -1.442695, %v1228_v0  ;;  %v3268_v50 = vmul.f32 -1.442695, %v1230_v47  ;;  %v5195_v0 = vld [vmem:[#allocation22_spill] sm:$0xff] }
 0x512   :  { %v1184_v5 = vpop.f32.mrf.mxu0  ;;  %v1225_v46 = vpop.f32.mrf.mxu1 }
 0x513   :  { %3646 = vpow2.f32 %v3267_v4  ;;  %v5196_v46 = vld [vmem:[#allocation24_spill] sm:$0xff] }
 0x514   :  { %3648 = vtanh.f32 %v1229_v49 }
 0x515   :  { %3650 = vpow2.f32 %v3268_v50 }
 0x51e   :  { %v3645_v51 = vpop.eup %3644 }
 0x51f   :  { %v1234_v52 = vadd.f32 1.0, %v3645_v51 }
 0x520   :  { %v3647_v53 = vpop.eup %3646 }
 0x521   :  { %3652 = vrcp.f32 %v1234_v52  ;;  %v1240_v29 = vadd.f32 1.0, %v3647_v53  ;;  %v3649_v12 = vpop.eup %3648  ;;  %v5197_v52 = vld [vmem:[#allocation25_spill] sm:$0xff]  ;;  %v5198_v53 = vld [vmem:[#allocation23_spill] sm:$0xff] }
 0x522   :  { %v3651_v26 = vpop.eup %3650 }
 0x523   :  { %3654 = vrcp.f32 %v1240_v29  ;;  %v1247_v21 = vadd.f32 1.0, %v3651_v26 }
 0x525   :  { %3656 = vrcp.f32 %v1247_v21 }
 0x52e   :  { %v3653_v31 = vpop.eup %3652 }
 0x52f   :  { %v1251_v11 = vmul.f32 %v3653_v31, %v3649_v12 }
 0x530   :  { %v3655_v33 = vpop.eup %3654 }
 0x531   :  { %v1250_v30 = vmul.f32 %v3655_v33, %v4389_v14  ;;  %v4493_v14 = vld [vmem:[#allocation8 + $0x4c] ss:$16 sps:$4 sm:$0xff]  }
 0x532   :  { %v3657_v18 = vpop.eup %3656 }
 0x533   :  { %v4463_v9 = vadd.f32 %v1251_v11, %v1250_v30 }
 0x535   :  { %3658 = vtanh.f32 %v4463_v9 }
 0x542   :  { %v3659_v20 = vpop.eup %3658 }
 0x543   :  { %v1254_v34 = vmul.f32 %v3659_v20, %v3657_v18 }
 0x545   :  { %v1255_v24 = vpack.c.bf16 %v1254_v34, %v1254_v34 }
 0x547   :  { %1257 = vst [vmem:[#allocation2 + $0x10] sm:$0xf] %v1255_v24  ;;  %1296 = vmatmul.mubr.bf16.vlgmr.msra.gmra.mxu0 %v1255_v24  ;;  %1337 = vmatmul.mubr.bf16.vlgmr.msra.gmra.mxu1 %v1255_v24 }
 0x548   :  { %1382 = vmatpush1.bf16.msra.mxu0 %v4392_v13  ;;  %1423 = vmatpush1.bf16.msra.mxu1 %v4395_v36 }
 0x549   :  { %1383 = vmatprep.subr.bf16.mxu0 %v4398_v45  ;;  %1424 = vmatprep.subr.bf16.mxu1 %v4401_v25 }
 0x54a   :  { %1413 = vmatprep.mubr.bf16.mxu0 %v5185_v22  ;;  %1454 = vmatprep.mubr.bf16.mxu1 %v5185_v22 }
 0x54c   :  { %1384 = vmatpush1.bf16.msra.mxu0 %v4406_v19  ;;  %1425 = vmatpush1.bf16.msra.mxu1 %v4409_v63 }
 0x54d   :  { %1385 = vmatprep.subr.bf16.mxu0 %v4412_v17  ;;  %1426 = vmatprep.subr.bf16.mxu1 %v4415_v10 }
 0x550   :  { %1386 = vmatpush1.bf16.msra.mxu0 %v4418_v1  ;;  %1427 = vmatpush1.bf16.msra.mxu1 %v4421_v23 }
 0x551   :  { %1387 = vmatprep.subr.bf16.mxu0 %v4424_v39  ;;  %1428 = vmatprep.subr.bf16.mxu1 %v4427_v40 }
 0x554   :  { %1388 = vmatpush1.bf16.msra.mxu0 %v4430_v41  ;;  %1429 = vmatpush1.bf16.msra.mxu1 %v4433_v42 }
 0x555   :  { %1389 = vmatprep.subr.bf16.mxu0 %v4436_v43  ;;  %1430 = vmatprep.subr.bf16.mxu1 %v4439_v44 }
 0x558   :  { %1390 = vmatpush1.bf16.msra.mxu0 %v4484_v35  ;;  %1431 = vmatpush1.bf16.msra.mxu1 %v4487_v8 }
 0x559   :  { %1391 = vmatprep.subr.bf16.mxu0 %v4490_v28  ;;  %1432 = vmatprep.subr.bf16.mxu1 %v4493_v14 }
 0x55c   :  { %1392 = vmatpush1.bf16.msra.mxu0 %v4496_v32  ;;  %1433 = vmatpush1.bf16.msra.mxu1 %v4499_v15 }
 0x55d   :  { %1393 = vmatprep.subr.bf16.mxu0 %v4502_v54  ;;  %1434 = vmatprep.subr.bf16.mxu1 %v4505_v27 }
 0x560   :  { %1394 = vmatpush1.bf16.msra.mxu0 %v4508_v55  ;;  %1435 = vmatpush1.bf16.msra.mxu1 %v4511_v56 }
 0x561   :  { %1395 = vmatprep.subr.bf16.mxu0 %v4514_v57  ;;  %1436 = vmatprep.subr.bf16.mxu1 %v4517_v58 }
 0x564   :  { %1396 = vmatpush1.bf16.msra.mxu0 %v4520_v59  ;;  %1437 = vmatpush1.bf16.msra.mxu1 %v4523_v60 }
 0x565   :  { %1499 = vmatprep.subr.bf16.mxu0 %v4378_v37  ;;  %1540 = vmatprep.subr.bf16.mxu1 %v4381_v38 }
 0x607   :  { %v1297_v61 = vpop.f32.mrf.mxu0  ;;  %v1338_v62 = vpop.f32.mrf.mxu1 }
 0x608   :  { %v1345_v2 = vadd.f32 %v1297_v61, %v5195_v0  ;;  %v1347_v38 = vadd.f32 %v1338_v62, %v5198_v53  ;;  %v3489_v53 = vld [vmem:[#allocation6 + $0x1c8] ss:$16 sps:$4 sm:$0xff]  }
 0x609   :  { %v1299_v3 = vpop.f32.mrf.mxu0  ;;  %v1340_v4 = vpop.f32.mrf.mxu1 }
 0x60a   :  { %v3269_v5 = vmul.f32 -1.442695, %v1345_v2  ;;  %v1346_v6 = vadd.f32 %v1299_v3, %v5196_v46  ;;  %v1348_v37 = vadd.f32 %v1340_v4, %v5197_v52  ;;  %v3491_v52 = vld [vmem:[#allocation6 + $0x1cc] ss:$16 sps:$4 sm:$0xff]  }
 0x60b   :  { %v1301_v47 = vpop.f32.mrf.mxu0  ;;  %v1342_v48 = vpop.f32.mrf.mxu1 }
 0x60c   :  { %3660 = vpow2.f32 %v3269_v5  ;;  %v3270_v49 = vmul.f32 -1.442695, %v1346_v6  ;;  %v3271_v29 = vmul.f32 -1.442695, %v1348_v37  ;;  %v3480_v48 = vld [vmem:[#allocation6 + $0x1e0] ss:$16 sps:$4 sm:$0xff]  }
 0x60d   :  { %v1302_v50 = vpop.f32.mrf.mxu0  ;;  %v1343_v51 = vpop.f32.mrf.mxu1  ;;  %v3486_v37 = vld [vmem:[#allocation6 + $0x1c0] ss:$16 sps:$4 sm:$0xff]  }
 0x60e   :  { %3662 = vpow2.f32 %v3270_v49  ;;  %v3483_v49 = vld [vmem:[#allocation6 + $0x1e8] ss:$16 sps:$4 sm:$0xff]   ;;  %v3488_v51 = vld [vmem:[#allocation6 + $0x1c4] ss:$16 sps:$4 sm:$0xff]  }
 0x60f   :  { %3664 = vtanh.f32 %v1347_v38  ;;  %v3494_v38 = vld [vmem:[#allocation6 + $0x1a4] ss:$16 sps:$4 sm:$0xff]  }
 0x610   :  { %3666 = vpow2.f32 %v3271_v29  ;;  %v3497_v29 = vld [vmem:[#allocation6 + $0x1ac] ss:$16 sps:$4 sm:$0xff]  }
 0x619   :  { %v3661_v12 = vpop.eup %3660 }
 0x61a   :  { %v1352_v26 = vadd.f32 1.0, %v3661_v12  ;;  %v3492_v12 = vld [vmem:[#allocation6 + $0x1a0] ss:$16 sps:$4 sm:$0xff]  }
 0x61b   :  { %v3663_v31 = vpop.eup %3662 }
 0x61c   :  { %3668 = vrcp.f32 %v1352_v26  ;;  %v1358_v11 = vadd.f32 1.0, %v3663_v31  ;;  %v3665_v33 = vpop.eup %3664  ;;  %v3495_v26 = vld [vmem:[#allocation6 + $0x1a8] ss:$16 sps:$4 sm:$0xff]   ;;  %v3500_v31 = vld [vmem:[#allocation6 + $0x184] ss:$16 sps:$4 sm:$0xff]  }
 0x61d   :  { %v3667_v21 = vpop.eup %3666 }
 0x61e   :  { %3670 = vrcp.f32 %v1358_v11  ;;  %v1365_v34 = vadd.f32 1.0, %v3667_v21  ;;  %v3503_v11 = vld [vmem:[#allocation6 + $0x18c] ss:$16 sps:$4 sm:$0xff]   ;;  %v3501_v21 = vld [vmem:[#allocation6 + $0x188] ss:$16 sps:$4 sm:$0xff]  }
 0x620   :  { %3672 = vrcp.f32 %v1365_v34  ;;  %v3507_v34 = vld [vmem:[#allocation6 + $0x168] ss:$16 sps:$4 sm:$0xff]  }
 0x629   :  { %v3669_v30 = vpop.eup %3668 }
 0x62a   :  { %v1369_v18 = vmul.f32 %v3669_v30, %v3665_v33  ;;  %v3498_v33 = vld [vmem:[#allocation6 + $0x180] ss:$16 sps:$4 sm:$0xff]   ;;  %v3506_v30 = vld [vmem:[#allocation6 + $0x164] ss:$16 sps:$4 sm:$0xff]  }
 0x62b   :  { %v3671_v20 = vpop.eup %3670 }
 0x62c   :  { %v1368_v24 = vmul.f32 %v3671_v20, %v4463_v9  ;;  %v5201_v9 = vld [vmem:[#allocation29_spill] sm:$0xff]  ;;  %v3504_v20 = vld [vmem:[#allocation6 + $0x160] ss:$16 sps:$4 sm:$0xff]  }
 0x62d   :  { %v3673_v62 = vpop.eup %3672 }
 0x62e   :  { %v4533_v61 = vadd.f32 %v1369_v18, %v1368_v24  ;;  %v3509_v18 = vld [vmem:[#allocation6 + $0x16c] ss:$16 sps:$4 sm:$0xff]   ;;  %v3512_v24 = vld [vmem:[#allocation6 + $0x144] ss:$16 sps:$4 sm:$0xff]  }
 0x630   :  { %3674 = vtanh.f32 %v4533_v61 }
 0x63d   :  { %v3675_v0 = vpop.eup %3674 }
 0x63e   :  { %v1372_v2 = vmul.f32 %v3675_v0, %v3673_v62  ;;  %v3510_v62 = vld [vmem:[#allocation6 + $0x140] ss:$16 sps:$4 sm:$0xff]   ;;  %v3513_v0 = vld [vmem:[#allocation6 + $0x148] ss:$16 sps:$4 sm:$0xff]  }
 0x640   :  { %v1373_v3 = vpack.c.bf16 %v1372_v2, %v1372_v2  ;;  %v3518_v2 = vld [vmem:[#allocation6 + $0x124] ss:$16 sps:$4 sm:$0xff]  }
 0x642   :  { %1375 = vst [vmem:[#allocation2 + $0x14] sm:$0xf] %v1373_v3  ;;  %1414 = vmatmul.mubr.bf16.vlgmr.msra.gmra.mxu0 %v1373_v3  ;;  %1455 = vmatmul.mubr.bf16.vlgmr.msra.gmra.mxu1 %v1373_v3  ;;  %v3521_v3 = vld [vmem:[#allocation6 + $0x12c] ss:$16 sps:$4 sm:$0xff]  }
 0x643   :  { %1500 = vmatpush1.bf16.msra.mxu0 %v4392_v13  ;;  %1541 = vmatpush1.bf16.msra.mxu1 %v4395_v36  ;;  %v3482_v13 = vld [vmem:[#allocation6 + $0x1e4] ss:$16 sps:$4 sm:$0xff]   ;;  %v3485_v36 = vld [vmem:[#allocation6 + $0x1ec] ss:$16 sps:$4 sm:$0xff]  }
 0x644   :  { %1501 = vmatprep.subr.bf16.mxu0 %v4398_v45  ;;  %1542 = vmatprep.subr.bf16.mxu1 %v4401_v25 }
 0x645   :  { %1531 = vmatprep.mubr.bf16.mxu0 %v5185_v22  ;;  %1572 = vmatprep.mubr.bf16.mxu1 %v5185_v22 }
 0x647   :  { %1502 = vmatpush1.bf16.msra.mxu0 %v4406_v19  ;;  %1543 = vmatpush1.bf16.msra.mxu1 %v4409_v63  ;;  %v5199_v19 = vld [vmem:[#allocation26_spill] sm:$0xff] }
 0x648   :  { %1503 = vmatprep.subr.bf16.mxu0 %v4412_v17  ;;  %1544 = vmatprep.subr.bf16.mxu1 %v4415_v10 }
 0x64b   :  { %1504 = vmatpush1.bf16.msra.mxu0 %v4418_v1  ;;  %1545 = vmatpush1.bf16.msra.mxu1 %v4421_v23  ;;  %v5200_v23 = vld [vmem:[#allocation28_spill] sm:$0xff] }
 0x64c   :  { %1505 = vmatprep.subr.bf16.mxu0 %v4424_v39  ;;  %1546 = vmatprep.subr.bf16.mxu1 %v4427_v40 }
 0x64f   :  { %1506 = vmatpush1.bf16.msra.mxu0 %v4430_v41  ;;  %1547 = vmatpush1.bf16.msra.mxu1 %v4433_v42 }
 0x650   :  { %1507 = vmatprep.subr.bf16.mxu0 %v4436_v43  ;;  %1548 = vmatprep.subr.bf16.mxu1 %v4439_v44 }
 0x653   :  { %1508 = vmatpush1.bf16.msra.mxu0 %v4484_v35  ;;  %1549 = vmatpush1.bf16.msra.mxu1 %v4487_v8  ;;  %v5202_v8 = vld [vmem:[#allocation27_spill] sm:$0xff] }
 0x654   :  { %1509 = vmatprep.subr.bf16.mxu0 %v4490_v28  ;;  %1550 = vmatprep.subr.bf16.mxu1 %v4493_v14 }
 0x657   :  { %1510 = vmatpush1.bf16.msra.mxu0 %v4496_v32  ;;  %1551 = vmatpush1.bf16.msra.mxu1 %v4499_v15 }
 0x658   :  { %1511 = vmatprep.subr.bf16.mxu0 %v4502_v54  ;;  %1552 = vmatprep.subr.bf16.mxu1 %v4505_v27 }
 0x65b   :  { %1512 = vmatpush1.bf16.msra.mxu0 %v4508_v55  ;;  %1553 = vmatpush1.bf16.msra.mxu1 %v4511_v56 }
 0x65c   :  { %1513 = vmatprep.subr.bf16.mxu0 %v4514_v57  ;;  %1554 = vmatprep.subr.bf16.mxu1 %v4517_v58 }
 0x65f   :  { %1514 = vmatpush1.bf16.msra.mxu0 %v4520_v59  ;;  %1555 = vmatpush1.bf16.msra.mxu1 %v4523_v60 }
 0x660   :  { %1860 = vmatprep.subr.bf16.mxu0 %v3482_v13  ;;  %1933 = vmatprep.subr.bf16.mxu1 %v3485_v36  ;;  %v3516_v13 = vld [vmem:[#allocation6 + $0x120] ss:$16 sps:$4 sm:$0xff]   ;;  %v3519_v36 = vld [vmem:[#allocation6 + $0x128] ss:$16 sps:$4 sm:$0xff]  }
 0x702   :  { %v1415_v45 = vpop.f32.mrf.mxu0  ;;  %v1456_v25 = vpop.f32.mrf.mxu1 }
 0x703   :  { %v1463_v63 = vadd.f32 %v1415_v45, %v5199_v19  ;;  %v1465_v28 = vadd.f32 %v1456_v25, %v5202_v8  ;;  %v3524_v45 = vld [vmem:[#allocation6 + $0x104] ss:$16 sps:$4 sm:$0xff]   ;;  %v3527_v25 = vld [vmem:[#allocation6 + $0x10c] ss:$16 sps:$4 sm:$0xff]   ;;  %v3522_v19 = vld [vmem:[#allocation6 + $0x100] ss:$16 sps:$4 sm:$0xff]  }
 0x704   :  { %v1417_v17 = vpop.f32.mrf.mxu0  ;;  %v1458_v10 = vpop.f32.mrf.mxu1  ;;  %v4610_v8 = vld [vmem:[#allocation8 + $0x1ac] ss:$16 sps:$4 sm:$0xff]  }
 0x705   :  { %v3272_v1 = vmul.f32 -1.442695, %v1463_v63  ;;  %v1464_v39 = vadd.f32 %v1417_v17, %v5200_v23  ;;  %v1466_v35 = vadd.f32 %v1458_v10, %v5201_v9  ;;  %v3525_v63 = vld [vmem:[#allocation6 + $0x108] ss:$16 sps:$4 sm:$0xff]   ;;  %v3528_v17 = vld [vmem:[#allocation2] sm:$0xff]  }
 0x706   :  { %v1419_v40 = vpop.f32.mrf.mxu0  ;;  %v1460_v41 = vpop.f32.mrf.mxu1  ;;  %v3529_v10 = vld [vmem:[#allocation2 + $0x8] sm:$0xff]  }
 0x707   :  { %3676 = vpow2.f32 %v3272_v1  ;;  %v3273_v42 = vmul.f32 -1.442695, %v1464_v39  ;;  %v3274_v14 = vmul.f32 -1.442695, %v1466_v35  ;;  %v3530_v1 = vld [vmem:[#allocation2 + $0x10] sm:$0xff]  }
 0x708   :  { %v1420_v43 = vpop.f32.mrf.mxu0  ;;  %v1461_v44 = vpop.f32.mrf.mxu1  ;;  %v4584_v23 = vld [vmem:[#allocation8 + $0x1e4] ss:$16 sps:$4 sm:$0xff]   ;;  %v4586_v39 = vld [vmem:[#allocation8 + $0x1ec] ss:$16 sps:$4 sm:$0xff]   ;;  %v4588_v40 = vld [vmem:[#allocation8 + $0x1e0] ss:$16 sps:$4 sm:$0xff]  }
 0x709   :  { %3678 = vpow2.f32 %v3273_v42  ;;  %v4590_v41 = vld [vmem:[#allocation8 + $0x1e8] ss:$16 sps:$4 sm:$0xff]   ;;  %v4596_v42 = vld [vmem:[#allocation8 + $0x1c4] ss:$16 sps:$4 sm:$0xff]   ;;  %v4598_v43 = vld [vmem:[#allocation8 + $0x1cc] ss:$16 sps:$4 sm:$0xff]  }
 0x70a   :  { %3680 = vtanh.f32 %v1465_v28  ;;  %v4600_v44 = vld [vmem:[#allocation8 + $0x1c0] ss:$16 sps:$4 sm:$0xff]   ;;  %v4602_v9 = vld [vmem:[#allocation8 + $0x1c8] ss:$16 sps:$4 sm:$0xff]   ;;  %v4608_v35 = vld [vmem:[#allocation8 + $0x1a4] ss:$16 sps:$4 sm:$0xff]  }
 0x70b   :  { %3682 = vpow2.f32 %v3274_v14  ;;  %v4612_v28 = vld [vmem:[#allocation8 + $0x1a0] ss:$16 sps:$4 sm:$0xff]   ;;  %v4614_v14 = vld [vmem:[#allocation8 + $0x1a8] ss:$16 sps:$4 sm:$0xff]  }
 0x714   :  { %v3677_v32 = vpop.eup %3676 }
 0x715   :  { %v1470_v15 = vadd.f32 1.0, %v3677_v32  ;;  %v4620_v32 = vld [vmem:[#allocation8 + $0x184] ss:$16 sps:$4 sm:$0xff]  }
 0x716   :  { %v3679_v54 = vpop.eup %3678 }
 0x717   :  { %3684 = vrcp.f32 %v1470_v15  ;;  %v1476_v27 = vadd.f32 1.0, %v3679_v54  ;;  %v3681_v55 = vpop.eup %3680  ;;  %v4622_v15 = vld [vmem:[#allocation8 + $0x18c] ss:$16 sps:$4 sm:$0xff]   ;;  %v4624_v54 = vld [vmem:[#allocation8 + $0x180] ss:$16 sps:$4 sm:$0xff]  }
 0x718   :  { %v3683_v56 = vpop.eup %3682 }
 0x719   :  { %3686 = vrcp.f32 %v1476_v27  ;;  %v1483_v60 = vadd.f32 1.0, %v3683_v56  ;;  %v4626_v27 = vld [vmem:[#allocation8 + $0x188] ss:$16 sps:$4 sm:$0xff]   ;;  %v4634_v56 = vld [vmem:[#allocation8 + $0x16c] ss:$16 sps:$4 sm:$0xff]  }
 0x71b   :  { %3688 = vrcp.f32 %v1483_v60  ;;  %v4642_v60 = vld [vmem:[#allocation8 + $0x14c] ss:$16 sps:$4 sm:$0xff]  }
 0x724   :  { %v3685_v57 = vpop.eup %3684 }
 0x725   :  { %v1487_v58 = vmul.f32 %v3685_v57, %v3681_v55  ;;  %v4632_v55 = vld [vmem:[#allocation8 + $0x164] ss:$16 sps:$4 sm:$0xff]   ;;  %v4636_v57 = vld [vmem:[#allocation8 + $0x160] ss:$16 sps:$4 sm:$0xff]  }
 0x726   :  { %v3687_v59 = vpop.eup %3686 }
 0x727   :  { %v1486_v4 = vmul.f32 %v3687_v59, %v4533_v61  ;;  %v3515_v61 = vld [vmem:[#allocation6 + $0x14c] ss:$16 sps:$4 sm:$0xff]   ;;  %v4640_v59 = vld [vmem:[#allocation8 + $0x144] ss:$16 sps:$4 sm:$0xff]  }
 0x728   :  { %v3689_v46 = vpop.eup %3688 }
 0x729   :  { %v4573_v5 = vadd.f32 %v1487_v58, %v1486_v4  ;;  %v4638_v58 = vld [vmem:[#allocation8 + $0x168] ss:$16 sps:$4 sm:$0xff]   ;;  %v4648_v4 = vld [vmem:[#allocation8 + $0x140] ss:$16 sps:$4 sm:$0xff]  }
 0x72b   :  { %3690 = vtanh.f32 %v4573_v5 }
 0x738   :  { %v3691_v6 = vpop.eup %3690 }
 0x739   :  { %v1490_v47 = vmul.f32 %v3691_v6, %v3689_v46  ;;  %v4650_v46 = vld [vmem:[#allocation8 + $0x148] ss:$16 sps:$4 sm:$0xff]   ;;  %v4656_v6 = vld [vmem:[#allocation8 + $0x124] ss:$16 sps:$4 sm:$0xff]  }
 0x73b   :  { %v1491_v50 = vpack.c.bf16 %v1490_v47, %v1490_v47  ;;  %v4658_v47 = vld [vmem:[#allocation8 + $0x12c] ss:$16 sps:$4 sm:$0xff]  }
 0x73d   :  { %1493 = vst [vmem:[#allocation2 + $0x18] sm:$0xf] %v1491_v50  ;;  %1532 = vmatmul.mubr.bf16.vlgmr.msra.gmra.mxu0 %v1491_v50  ;;  %1573 = vmatmul.mubr.bf16.vlgmr.msra.gmra.mxu1 %v1491_v50  ;;  %v4664_v50 = vld [vmem:[#allocation8 + $0x104] ss:$16 sps:$4 sm:$0xff]  }
 0x73e   :  { %1861 = vmatpush1.bf16.msra.mxu0 %v3480_v48  ;;  %1934 = vmatpush1.bf16.msra.mxu1 %v3483_v49  ;;  %v4660_v48 = vld [vmem:[#allocation8 + $0x120] ss:$16 sps:$4 sm:$0xff]   ;;  %v4662_v49 = vld [vmem:[#allocation8 + $0x128] ss:$16 sps:$4 sm:$0xff]  }
 0x73f   :  { %1862 = vmatprep.subr.bf16.mxu0 %v3488_v51  ;;  %1935 = vmatprep.subr.bf16.mxu1 %v3491_v52  ;;  %v4668_v51 = vld [vmem:[#allocation8 + $0x10c] ss:$16 sps:$4 sm:$0xff]   ;;  %v4672_v52 = vld [vmem:[#allocation8 + $0x100] ss:$16 sps:$4 sm:$0xff]  }
 0x740   :  { %1892 = vmatprep.mubr.bf16.mxu0 %v5185_v22  ;;  %1965 = vmatprep.mubr.bf16.mxu1 %v5185_v22 }
 0x742   :  { %1863 = vmatpush1.bf16.msra.mxu0 %v3486_v37  ;;  %1936 = vmatpush1.bf16.msra.mxu1 %v3489_v53  ;;  %v4674_v37 = vld [vmem:[#allocation8 + $0x108] ss:$16 sps:$4 sm:$0xff]  }
 0x743   :  { %1864 = vmatprep.subr.bf16.mxu0 %v3494_v38  ;;  %1937 = vmatprep.subr.bf16.mxu1 %v3497_v29  ;;  %v5203_v29 = vld [vmem:[#allocation30_spill] sm:$0xff] }
 0x746   :  { %1865 = vmatpush1.bf16.msra.mxu0 %v3492_v12  ;;  %1938 = vmatpush1.bf16.msra.mxu1 %v3495_v26 }
 0x747   :  { %1866 = vmatprep.subr.bf16.mxu0 %v3500_v31  ;;  %1939 = vmatprep.subr.bf16.mxu1 %v3503_v11 }
 0x74a   :  { %1867 = vmatpush1.bf16.msra.mxu0 %v3498_v33  ;;  %1940 = vmatpush1.bf16.msra.mxu1 %v3501_v21 }
 0x74b   :  { %1868 = vmatprep.subr.bf16.mxu0 %v3506_v30  ;;  %1941 = vmatprep.subr.bf16.mxu1 %v3509_v18 }
 0x74e   :  { %1869 = vmatpush1.bf16.msra.mxu0 %v3504_v20  ;;  %1942 = vmatpush1.bf16.msra.mxu1 %v3507_v34 }
 0x74f   :  { %1870 = vmatprep.subr.bf16.mxu0 %v3512_v24  ;;  %1943 = vmatprep.subr.bf16.mxu1 %v3515_v61  ;;  %v5204_v61 = vld [vmem:[#allocation31_spill] sm:$0xff] }
 0x752   :  { %1871 = vmatpush1.bf16.msra.mxu0 %v3510_v62  ;;  %1944 = vmatpush1.bf16.msra.mxu1 %v3513_v0 }
 0x753   :  { %1872 = vmatprep.subr.bf16.mxu0 %v3518_v2  ;;  %1945 = vmatprep.subr.bf16.mxu1 %v3521_v3 }
 0x756   :  { %1873 = vmatpush1.bf16.msra.mxu0 %v3516_v13  ;;  %1946 = vmatpush1.bf16.msra.mxu1 %v3519_v36 }
 0x757   :  { %1874 = vmatprep.subr.bf16.mxu0 %v3524_v45  ;;  %1947 = vmatprep.subr.bf16.mxu1 %v3527_v25 }
 0x75a   :  { %1875 = vmatpush1.bf16.msra.mxu0 %v3522_v19  ;;  %1948 = vmatpush1.bf16.msra.mxu1 %v3525_v63 }
 0x75b   :  { %2235 = vmatprep.subr.bf16.mxu0 %v4584_v23  ;;  %2276 = vmatprep.subr.bf16.mxu1 %v4586_v39 }
 0x75d   :  { %1893 = vmatmul.mubr.bf16.vlgmr.msra.gmra.mxu0 %v3528_v17  ;;  %1966 = vmatmul.mubr.bf16.vlgmr.msra.gmra.mxu1 %v3528_v17 }
 0x75e   :  { %1902 = vmatprep.mubr.bf16.mxu0 %v5185_v22  ;;  %1975 = vmatprep.mubr.bf16.mxu1 %v5185_v22 }
 0x75f   :  { %2236 = vmatpush1.bf16.msra.mxu0 %v4588_v40  ;;  %2277 = vmatpush1.bf16.msra.mxu1 %v4590_v41 }
 0x760   :  { %2237 = vmatprep.subr.bf16.mxu0 %v4596_v42  ;;  %2278 = vmatprep.subr.bf16.mxu1 %v4598_v43 }
 0x763   :  { %2238 = vmatpush1.bf16.msra.mxu0 %v4600_v44  ;;  %2279 = vmatpush1.bf16.msra.mxu1 %v4602_v9 }
 0x764   :  { %2239 = vmatprep.subr.bf16.mxu0 %v4608_v35  ;;  %2280 = vmatprep.subr.bf16.mxu1 %v4610_v8 }
 0x765   :  { %1903 = vmatmul.mubr.bf16.gmra.mxu0 %v3529_v10  ;;  %1976 = vmatmul.mubr.bf16.gmra.mxu1 %v3529_v10 }
 0x766   :  { %1912 = vmatprep.mubr.bf16.mxu0 %v5185_v22  ;;  %1985 = vmatprep.mubr.bf16.mxu1 %v5185_v22 }
 0x767   :  { %2240 = vmatpush1.bf16.msra.mxu0 %v4612_v28  ;;  %2281 = vmatpush1.bf16.msra.mxu1 %v4614_v14 }
 0x768   :  { %2241 = vmatprep.subr.bf16.mxu0 %v4620_v32  ;;  %2282 = vmatprep.subr.bf16.mxu1 %v4622_v15 }
 0x76b   :  { %2242 = vmatpush1.bf16.msra.mxu0 %v4624_v54  ;;  %2283 = vmatpush1.bf16.msra.mxu1 %v4626_v27 }
 0x76c   :  { %2243 = vmatprep.subr.bf16.mxu0 %v4632_v55  ;;  %2284 = vmatprep.subr.bf16.mxu1 %v4634_v56 }
 0x76d   :  { %1913 = vmatmul.mubr.bf16.gmra.mxu0 %v3530_v1  ;;  %1986 = vmatmul.mubr.bf16.gmra.mxu1 %v3530_v1 }
 0x76e   :  { %1922 = vmatprep.mubr.bf16.mxu0 %v5185_v22  ;;  %1995 = vmatprep.mubr.bf16.mxu1 %v5185_v22 }
 0x76f   :  { %2244 = vmatpush1.bf16.msra.mxu0 %v4636_v57  ;;  %2285 = vmatpush1.bf16.msra.mxu1 %v4638_v58 }
 0x770   :  { %2245 = vmatprep.subr.bf16.mxu0 %v4640_v59  ;;  %2286 = vmatprep.subr.bf16.mxu1 %v4642_v60 }
 0x773   :  { %2246 = vmatpush1.bf16.msra.mxu0 %v4648_v4  ;;  %2287 = vmatpush1.bf16.msra.mxu1 %v4650_v46 }
 0x774   :  { %2247 = vmatprep.subr.bf16.mxu0 %v4656_v6  ;;  %2288 = vmatprep.subr.bf16.mxu1 %v4658_v47 }
 0x777   :  { %2248 = vmatpush1.bf16.msra.mxu0 %v4660_v48  ;;  %2289 = vmatpush1.bf16.msra.mxu1 %v4662_v49 }
 0x778   :  { %2249 = vmatprep.subr.bf16.mxu0 %v4664_v50  ;;  %2290 = vmatprep.subr.bf16.mxu1 %v4668_v51 }
 0x77b   :  { %2250 = vmatpush1.bf16.msra.mxu0 %v4672_v52  ;;  %2291 = vmatpush1.bf16.msra.mxu1 %v4674_v37 }
 0x77c   :  { %2350 = vmatprep.subr.bf16.mxu0 %v4584_v23  ;;  %2391 = vmatprep.subr.bf16.mxu1 %v4586_v39 }
 0x7fd   :  { %v1533_v53 = vpop.f32.mrf.mxu0  ;;  %v1574_v38 = vpop.f32.mrf.mxu1 }
 0x7fe   :  { %v1581_v12 = vadd.f32 %v1533_v53, %v5203_v29  ;;  %v1583_v62 = vadd.f32 %v1574_v38, %v5204_v61 }
 0x7ff   :  { %v1535_v26 = vpop.f32.mrf.mxu0  ;;  %v1576_v31 = vpop.f32.mrf.mxu1 }
 0x800   :  { %v3275_v11 = vmul.f32 -1.442695, %v1581_v12  ;;  %v1582_v33 = vadd.f32 %v1535_v26, %v4249_v16  ;;  %v1584_v24 = vadd.f32 %v1576_v31, %v4252_v7 }
 0x801   :  { %v1537_v21 = vpop.f32.mrf.mxu0  ;;  %v1578_v30 = vpop.f32.mrf.mxu1 }
 0x802   :  { %3692 = vpow2.f32 %v3275_v11  ;;  %v3276_v18 = vmul.f32 -1.442695, %v1582_v33  ;;  %v3277_v0 = vmul.f32 -1.442695, %v1584_v24 }
 0x803   :  { %v1538_v20 = vpop.f32.mrf.mxu0  ;;  %v1579_v34 = vpop.f32.mrf.mxu1 }
 0x804   :  { %3694 = vpow2.f32 %v3276_v18 }
 0x805   :  { %3696 = vtanh.f32 %v1583_v62 }
 0x806   :  { %3698 = vpow2.f32 %v3277_v0 }
 0x80f   :  { %v3693_v2 = vpop.eup %3692 }
 0x810   :  { %v1588_v3 = vadd.f32 1.0, %v3693_v2 }
 0x811   :  { %v3695_v13 = vpop.eup %3694 }
 0x812   :  { %3700 = vrcp.f32 %v1588_v3  ;;  %v1594_v36 = vadd.f32 1.0, %v3695_v13  ;;  %v3697_v16 = vpop.eup %3696 }
 0x813   :  { %v3699_v45 = vpop.eup %3698 }
 0x814   :  { %3702 = vrcp.f32 %v1594_v36  ;;  %v1601_v17 = vadd.f32 1.0, %v3699_v45 }
 0x816   :  { %3704 = vrcp.f32 %v1601_v17 }
 0x81d   :  { %v1967_v26 = vpop.f32.mrf.mxu1 }
 0x81f   :  { %v3701_v25 = vpop.eup %3700  ;;  %v1969_v11 = vpop.f32.mrf.mxu1 }
 0x820   :  { %v1605_v19 = vmul.f32 %v3701_v25, %v3697_v16 }
 0x821   :  { %v3703_v63 = vpop.eup %3702  ;;  %v4727_v21 = vpop.f32.mrf.mxu1 }
 0x822   :  { %v1604_v10 = vmul.f32 %v3703_v63, %v4573_v5  ;;  %v1894_v5 = vpop.f32.mrf.mxu0 }
 0x823   :  { %v3705_v1 = vpop.eup %3704  ;;  %v4731_v18 = vpop.f32.mrf.mxu1 }
 0x824   :  { %v1606_v7 = vadd.f32 %v1605_v19, %v1604_v10  ;;  %v1896_v31 = vpop.f32.mrf.mxu0  ;;  %v3278_v10 = vld [vmem:[%s5153_s3 + $0x4] sm:$0xf] }
 0x825   :  { %v4735_v34 = vpop.f32.mrf.mxu1 }
 0x826   :  { %3706 = vtanh.f32 %v1606_v7  ;;  %v4725_v33 = vpop.f32.mrf.mxu0  ;;  %5205 = vst [vmem:[#allocation13_spill] sm:$0xff] %v4735_v34 }
 0x827   :  { %v4739_v61 = vpop.f32.mrf.mxu1 }
 0x828   :  { %v4729_v30 = vpop.f32.mrf.mxu0 }
 0x829   :  { %v4743_v0 = vpop.f32.mrf.mxu1 }
 0x82a   :  { %v4733_v20 = vpop.f32.mrf.mxu0  ;;  %5207 = vst [vmem:[#allocation16_spill] sm:$0xff] %v4743_v0 }
 0x82b   :  { %v4747_v3 = vpop.f32.mrf.mxu1 }
 0x82c   :  { %v4737_v24 = vpop.f32.mrf.mxu0  ;;  %5209 = vst [vmem:[#allocation15_spill] sm:$0xff] %v4747_v3 }
 0x82d   :  { %v4751_v36 = vpop.f32.mrf.mxu1 }
 0x82e   :  { %v4741_v62 = vpop.f32.mrf.mxu0  ;;  %5211 = vst [vmem:[#allocation20_spill] sm:$0xff] %v4751_v36 }
 0x82f   :  { %5206 = vst [vmem:[#allocation14_spill] sm:$0xff] %v4741_v62  ;;  %v4755_v45 = vpop.f32.mrf.mxu1 }
 0x830   :  { %v4745_v2 = vpop.f32.mrf.mxu0  ;;  %5213 = vst [vmem:[#allocation19_spill] sm:$0xff] %v4755_v45 }
 0x831   :  { %5208 = vst [vmem:[#allocation17_spill] sm:$0xff] %v4745_v2  ;;  %v4759_v19 = vpop.f32.mrf.mxu1 }
 0x832   :  { %v4749_v13 = vpop.f32.mrf.mxu0  ;;  %5215 = vst [vmem:[#allocation24_spill] sm:$0xff] %v4759_v19 }
 0x833   :  { %v3707_v53 = vpop.eup %3706  ;;  %5210 = vst [vmem:[#allocation18_spill] sm:$0xff] %v4749_v13  ;;  %v4763_v17 = vpop.f32.mrf.mxu1 }
 0x834   :  { %v1608_v38 = vmul.f32 %v3707_v53, %v3705_v1  ;;  %v4753_v16 = vpop.f32.mrf.mxu0  ;;  %5217 = vst [vmem:[#allocation23_spill] sm:$0xff] %v4763_v17 }
 0x835   :  { %5212 = vst [vmem:[#allocation21_spill] sm:$0xff] %v4753_v16 }
 0x836   :  { %v1609_v29 = vpack.c.bf16 %v1608_v38, %v1608_v38  ;;  %v4757_v25 = vpop.f32.mrf.mxu0 }
 0x837   :  { %5214 = vst [vmem:[#allocation22_spill] sm:$0xff] %v4757_v25 }
 0x838   :  { %1611 = vst [vmem:[#allocation2 + $0x1c] sm:$0xf] %v1609_v29  ;;  %v4761_v63 = vpop.f32.mrf.mxu0  ;;  %v5222_v29 = vld [vmem:[#allocation12_spill] sm:$0xff] }
 0x839   :  { %5216 = vst [vmem:[#allocation25_spill] sm:$0xff] %v4761_v63  ;;  %v5226_v17 = vsub.s32 1, %v5222_v29  ;;  %v5229_v62 = vsub.s32 3, %v5222_v29 }
 0x83b   :  { %v4786_v36 = vrot.slane %v3278_v10, %v5226_v17 }
 0x83d   :  { %v1897_v16 = vadd.f32 %v1896_v31, %v4786_v36  ;;  %v5230_v31 = vsub.s32 2, %v5222_v29 }
 0x83f   :  { %v3567_v12 = vld [vmem:[#allocation2 + $0x18] sm:$0xff]  }
 0x840   :  { %1923 = vmatmul.mubr.bf16.gmra.mxu0 %v3567_v12  ;;  %1996 = vmatmul.mubr.bf16.gmra.mxu1 %v3567_v12  ;;  %v5223_v12 = vsub.s32 0, %v5222_v29 }
 0x841   :  { %2267 = vmatprep.mubr.bf16.mxu0 %v5185_v22  ;;  %2308 = vmatprep.mubr.bf16.mxu1 %v5185_v22 }
 0x842   :  { %v4778_v25 = vrot.slane %v3278_v10, %v5223_v12 }
 0x848   :  { %2268 = vmatmul.mubr.bf16.vlgmr.msra.gmra.mxu0 %v5185_v22  ;;  %2309 = vmatmul.mubr.bf16.vlgmr.msra.gmra.mxu1 %v5185_v22 }
 0x849   :  { %2351 = vmatpush1.bf16.msra.mxu0 %v4588_v40  ;;  %2392 = vmatpush1.bf16.msra.mxu1 %v4590_v41 }
 0x84a   :  { %2352 = vmatprep.subr.bf16.mxu0 %v4596_v42  ;;  %2393 = vmatprep.subr.bf16.mxu1 %v4598_v43 }
 0x84b   :  { %2382 = vmatprep.mubr.bf16.mxu0 %v5185_v22  ;;  %2423 = vmatprep.mubr.bf16.mxu1 %v5185_v22 }
 0x84d   :  { %2353 = vmatpush1.bf16.msra.mxu0 %v4600_v44  ;;  %2394 = vmatpush1.bf16.msra.mxu1 %v4602_v9 }
 0x84e   :  { %2354 = vmatprep.subr.bf16.mxu0 %v4608_v35  ;;  %2395 = vmatprep.subr.bf16.mxu1 %v4610_v8 }
 0x851   :  { %2355 = vmatpush1.bf16.msra.mxu0 %v4612_v28  ;;  %2396 = vmatpush1.bf16.msra.mxu1 %v4614_v14 }
 0x852   :  { %2356 = vmatprep.subr.bf16.mxu0 %v4620_v32  ;;  %2397 = vmatprep.subr.bf16.mxu1 %v4622_v15 }
 0x855   :  { %2357 = vmatpush1.bf16.msra.mxu0 %v4624_v54  ;;  %2398 = vmatpush1.bf16.msra.mxu1 %v4626_v27 }
 0x856   :  { %2358 = vmatprep.subr.bf16.mxu0 %v4632_v55  ;;  %2399 = vmatprep.subr.bf16.mxu1 %v4634_v56 }
 0x859   :  { %2359 = vmatpush1.bf16.msra.mxu0 %v4636_v57  ;;  %2400 = vmatpush1.bf16.msra.mxu1 %v4638_v58 }
 0x85a   :  { %2360 = vmatprep.subr.bf16.mxu0 %v4640_v59  ;;  %2401 = vmatprep.subr.bf16.mxu1 %v4642_v60 }
 0x85d   :  { %2361 = vmatpush1.bf16.msra.mxu0 %v4648_v4  ;;  %2402 = vmatpush1.bf16.msra.mxu1 %v4650_v46 }
 0x85e   :  { %2362 = vmatprep.subr.bf16.mxu0 %v4656_v6  ;;  %2403 = vmatprep.subr.bf16.mxu1 %v4658_v47 }
 0x861   :  { %2363 = vmatpush1.bf16.msra.mxu0 %v4660_v48  ;;  %2404 = vmatpush1.bf16.msra.mxu1 %v4662_v49 }
 0x862   :  { %2364 = vmatprep.subr.bf16.mxu0 %v4664_v50  ;;  %2405 = vmatprep.subr.bf16.mxu1 %v4668_v51 }
 0x865   :  { %2365 = vmatpush1.bf16.msra.mxu0 %v4672_v52  ;;  %2406 = vmatpush1.bf16.msra.mxu1 %v4674_v37 }
 0x866   :  { %2465 = vmatprep.subr.bf16.mxu0 %v4584_v23  ;;  %2506 = vmatprep.subr.bf16.mxu1 %v4586_v39 }
 0x900   :  { %v4768_v7 = vpop.f32.mrf.mxu0  ;;  %v4770_v1 = vpop.f32.mrf.mxu1 }
 0x901   :  { %5218 = vst [vmem:[#allocation26_spill] sm:$0xff] %v4768_v7  ;;  %5219 = vst [vmem:[#allocation28_spill] sm:$0xff] %v4770_v1  ;;  %v1895_v1 = vadd.f32 %v1894_v5, %v4778_v25 }
 0x902   :  { %v4772_v53 = vpop.f32.mrf.mxu0  ;;  %v4774_v38 = vpop.f32.mrf.mxu1 }
 0x903   :  { %5220 = vst [vmem:[#allocation29_spill] sm:$0xff] %v4772_v53  ;;  %5221 = vst [vmem:[#allocation27_spill] sm:$0xff] %v4774_v38 }
 0x904   :  { %v4780_v19 = vpop.f32.mrf.mxu0  ;;  %v4782_v63 = vpop.f32.mrf.mxu1 }
 0x905   :  { %5224 = vst [vmem:[#allocation30_spill] sm:$0xff] %v4780_v19  ;;  %5225 = vst [vmem:[#allocation31_spill] sm:$0xff] %v4782_v63 }
 0x906   :  { %v4788_v45 = vpop.f32.mrf.mxu0  ;;  %v4790_v7 = vpop.f32.mrf.mxu1 }
 0x907   :  { %5227 = vst [vmem:[#allocation12_spill] sm:$0xff] %v4788_v45  ;;  %5228 = vst [vmem:[#allocation32_spill] sm:$0xff] %v4790_v7  ;;  %v4796_v45 = vrot.slane %v3278_v10, %v5229_v62 }
 0x908   :  { %v2269_v53 = vpop.f32.mrf.mxu0  ;;  %v2310_v38 = vpop.f32.mrf.mxu1 }
 0x909   :  { %v2317_v12 = vadd.f32 %v2269_v53, %v1895_v1  ;;  %v1970_v5 = vadd.f32 %v1969_v11, %v4796_v45  ;;  %v4801_v1 = vrot.slane %v3278_v10, %v5230_v31 }
 0x90a   :  { %v2271_v13 = vpop.f32.mrf.mxu0  ;;  %v2312_v0 = vpop.f32.mrf.mxu1 }
 0x90b   :  { %v3347_v19 = vmul.f32 -1.442695, %v2317_v12  ;;  %v2318_v3 = vadd.f32 %v2271_v13, %v1897_v16  ;;  %v2320_v53 = vadd.f32 %v2312_v0, %v1970_v5  ;;  %v1968_v13 = vadd.f32 %v1967_v26, %v4801_v1 }
 0x90c   :  { %v2273_v63 = vpop.f32.mrf.mxu0  ;;  %v2314_v2 = vpop.f32.mrf.mxu1 }
 0x90d   :  { %3708 = vpow2.f32 %v3347_v19  ;;  %v3348_v17 = vmul.f32 -1.442695, %v2318_v3  ;;  %v3349_v16 = vmul.f32 -1.442695, %v2320_v53  ;;  %v2319_v19 = vadd.f32 %v2310_v38, %v1968_v13 }
 0x90e   :  { %v2274_v7 = vpop.f32.mrf.mxu0  ;;  %v2315_v34 = vpop.f32.mrf.mxu1  ;;  %v1899_v53 = vadd.f32 %v4725_v33, %v4778_v25  ;;  %v1974_v33 = vadd.f32 %v4731_v18, %v4796_v45 }
 0x90f   :  { %3710 = vpow2.f32 %v3348_v17 }
 0x910   :  { %3712 = vpow2.f32 %v3349_v16 }
 0x91a   :  { %v3709_v2 = vpop.eup %3708 }
 0x91b   :  { %v2324_v3 = vadd.f32 1.0, %v3709_v2  ;;  %v1901_v2 = vadd.f32 %v4729_v30, %v4786_v36 }
 0x91c   :  { %v3711_v63 = vpop.eup %3710 }
 0x91d   :  { %3714 = vrcp.f32 %v2324_v3  ;;  %v2330_v62 = vadd.f32 1.0, %v3711_v63  ;;  %v3713_v34 = vpop.eup %3712 }
 0x91e   :  { %3716 = vtanh.f32 %v2319_v19  ;;  %v2337_v29 = vadd.f32 1.0, %v3713_v34 }
 0x91f   :  { %3718 = vrcp.f32 %v2330_v62 }
 0x920   :  { %3720 = vrcp.f32 %v2337_v29 }
 0x92a   :  { %v3715_v7 = vpop.eup %3714 }
 0x92b   :  { %v3717_v11 = vpop.eup %3716 }
 0x92c   :  { %v3719_v12 = vpop.eup %3718  ;;  %v2341_v17 = vmul.f32 %v3717_v11, %v3715_v7 }
 0x92d   :  { %v2340_v10 = vmul.f32 0.0, %v3719_v12  ;;  %v3721_v26 = vpop.eup %3720 }
 0x92f   :  { %v4804_v0 = vadd.f32 %v2341_v17, %v2340_v10 }
 0x931   :  { %3722 = vtanh.f32 %v4804_v0 }
 0x93e   :  { %v3723_v38 = vpop.eup %3722 }
 0x93f   :  { %v2344_v5 = vmul.f32 %v3723_v38, %v3721_v26  ;;  %v1972_v26 = vadd.f32 %v4727_v21, %v4801_v1 }
 0x941   :  { %v2349_v31 = vpack.c.bf16 %v2344_v5, %v2344_v5 }
 0x943   :  { %2383 = vmatmul.mubr.bf16.vlgmr.msra.gmra.mxu0 %v2349_v31  ;;  %2424 = vmatmul.mubr.bf16.vlgmr.msra.gmra.mxu1 %v2349_v31 }
 0x944   :  { %2466 = vmatpush1.bf16.msra.mxu0 %v4588_v40  ;;  %2507 = vmatpush1.bf16.msra.mxu1 %v4590_v41 }
 0x945   :  { %2467 = vmatprep.subr.bf16.mxu0 %v4596_v42  ;;  %2508 = vmatprep.subr.bf16.mxu1 %v4598_v43 }
 0x946   :  { %2497 = vmatprep.mubr.bf16.mxu0 %v5185_v22  ;;  %2538 = vmatprep.mubr.bf16.mxu1 %v5185_v22 }
 0x948   :  { %2468 = vmatpush1.bf16.msra.mxu0 %v4600_v44  ;;  %2509 = vmatpush1.bf16.msra.mxu1 %v4602_v9 }
 0x949   :  { %2469 = vmatprep.subr.bf16.mxu0 %v4608_v35  ;;  %2510 = vmatprep.subr.bf16.mxu1 %v4610_v8 }
 0x94c   :  { %2470 = vmatpush1.bf16.msra.mxu0 %v4612_v28  ;;  %2511 = vmatpush1.bf16.msra.mxu1 %v4614_v14 }
 0x94d   :  { %2471 = vmatprep.subr.bf16.mxu0 %v4620_v32  ;;  %2512 = vmatprep.subr.bf16.mxu1 %v4622_v15 }
 0x950   :  { %2472 = vmatpush1.bf16.msra.mxu0 %v4624_v54  ;;  %2513 = vmatpush1.bf16.msra.mxu1 %v4626_v27 }
 0x951   :  { %2473 = vmatprep.subr.bf16.mxu0 %v4632_v55  ;;  %2514 = vmatprep.subr.bf16.mxu1 %v4634_v56 }
 0x954   :  { %2474 = vmatpush1.bf16.msra.mxu0 %v4636_v57  ;;  %2515 = vmatpush1.bf16.msra.mxu1 %v4638_v58 }
 0x955   :  { %2475 = vmatprep.subr.bf16.mxu0 %v4640_v59  ;;  %2516 = vmatprep.subr.bf16.mxu1 %v4642_v60 }
 0x958   :  { %2476 = vmatpush1.bf16.msra.mxu0 %v4648_v4  ;;  %2517 = vmatpush1.bf16.msra.mxu1 %v4650_v46 }
 0x959   :  { %2477 = vmatprep.subr.bf16.mxu0 %v4656_v6  ;;  %2518 = vmatprep.subr.bf16.mxu1 %v4658_v47 }
 0x95c   :  { %2478 = vmatpush1.bf16.msra.mxu0 %v4660_v48  ;;  %2519 = vmatpush1.bf16.msra.mxu1 %v4662_v49 }
 0x95d   :  { %2479 = vmatprep.subr.bf16.mxu0 %v4664_v50  ;;  %2520 = vmatprep.subr.bf16.mxu1 %v4668_v51 }
 0x960   :  { %2480 = vmatpush1.bf16.msra.mxu0 %v4672_v52  ;;  %2521 = vmatpush1.bf16.msra.mxu1 %v4674_v37 }
 0x961   :  { %2580 = vmatprep.subr.bf16.mxu0 %v4584_v23  ;;  %2621 = vmatprep.subr.bf16.mxu1 %v4586_v39 }
 0xa03   :  { %v2384_v13 = vpop.f32.mrf.mxu0  ;;  %v2425_v16 = vpop.f32.mrf.mxu1 }
 0xa04   :  { %v2432_v19 = vadd.f32 %v2384_v13, %v1899_v53  ;;  %v2434_v30 = vadd.f32 %v2425_v16, %v1972_v26 }
 0xa05   :  { %v2386_v3 = vpop.f32.mrf.mxu0  ;;  %v2427_v63 = vpop.f32.mrf.mxu1 }
 0xa06   :  { %v3350_v62 = vmul.f32 -1.442695, %v2432_v19  ;;  %v2433_v34 = vadd.f32 %v2386_v3, %v1901_v2  ;;  %v2435_v17 = vadd.f32 %v2427_v63, %v1974_v33  ;;  %v1907_v33 = vadd.f32 %v4737_v24, %v4786_v36 }
 0xa07   :  { %v2388_v7 = vpop.f32.mrf.mxu0  ;;  %v2429_v11 = vpop.f32.mrf.mxu1 }
 0xa08   :  { %3724 = vpow2.f32 %v3350_v62  ;;  %v3351_v12 = vmul.f32 -1.442695, %v2433_v34  ;;  %v3352_v38 = vmul.f32 -1.442695, %v2435_v17 }
 0xa09   :  { %v2389_v29 = vpop.f32.mrf.mxu0  ;;  %v2430_v10 = vpop.f32.mrf.mxu1 }
 0xa0a   :  { %3726 = vpow2.f32 %v3351_v12 }
 0xa0b   :  { %3728 = vtanh.f32 %v2434_v30 }
 0xa0c   :  { %3730 = vpow2.f32 %v3352_v38 }
 0xa15   :  { %v3725_v5 = vpop.eup %3724 }
 0xa16   :  { %v2439_v31 = vadd.f32 1.0, %v3725_v5 }
 0xa17   :  { %v3727_v53 = vpop.eup %3726 }
 0xa18   :  { %3732 = vrcp.f32 %v2439_v31  ;;  %v2445_v13 = vadd.f32 1.0, %v3727_v53  ;;  %v3729_v2 = vpop.eup %3728 }
 0xa19   :  { %v3731_v19 = vpop.eup %3730 }
 0xa1a   :  { %3734 = vrcp.f32 %v2445_v13  ;;  %v2452_v18 = vadd.f32 1.0, %v3731_v19 }
 0xa1c   :  { %3736 = vrcp.f32 %v2452_v18 }
 0xa25   :  { %v3733_v3 = vpop.eup %3732 }
 0xa26   :  { %v2456_v62 = vmul.f32 %v3733_v3, %v3729_v2 }
 0xa27   :  { %v3735_v34 = vpop.eup %3734 }
 0xa28   :  { %v2455_v63 = vmul.f32 %v3735_v34, %v4804_v0  ;;  %v1905_v0 = vadd.f32 %v4733_v20, %v4778_v25  ;;  %v1980_v20 = vadd.f32 %v4739_v61, %v4796_v45 }
 0xa29   :  { %v3737_v21 = vpop.eup %3736 }
 0xa2a   :  { %v4850_v7 = vadd.f32 %v2456_v62, %v2455_v63  ;;  %v5231_v62 = vld [vmem:[#allocation13_spill] sm:$0xff] }
 0xa2b   :  { %v1978_v34 = vadd.f32 %v5231_v62, %v4801_v1 }
 0xa2c   :  { %3738 = vtanh.f32 %v4850_v7 }
 0xa39   :  { %v3739_v16 = vpop.eup %3738 }
 0xa3a   :  { %v2459_v11 = vmul.f32 %v3739_v16, %v3737_v21 }
 0xa3c   :  { %v2464_v12 = vpack.c.bf16 %v2459_v11, %v2459_v11 }
 0xa3e   :  { %2498 = vmatmul.mubr.bf16.vlgmr.msra.gmra.mxu0 %v2464_v12  ;;  %2539 = vmatmul.mubr.bf16.vlgmr.msra.gmra.mxu1 %v2464_v12 }
 0xa3f   :  { %2581 = vmatpush1.bf16.msra.mxu0 %v4588_v40  ;;  %2622 = vmatpush1.bf16.msra.mxu1 %v4590_v41 }
 0xa40   :  { %2582 = vmatprep.subr.bf16.mxu0 %v4596_v42  ;;  %2623 = vmatprep.subr.bf16.mxu1 %v4598_v43 }
 0xa41   :  { %2612 = vmatprep.mubr.bf16.mxu0 %v5185_v22  ;;  %2653 = vmatprep.mubr.bf16.mxu1 %v5185_v22 }
 0xa43   :  { %2583 = vmatpush1.bf16.msra.mxu0 %v4600_v44  ;;  %2624 = vmatpush1.bf16.msra.mxu1 %v4602_v9 }
 0xa44   :  { %2584 = vmatprep.subr.bf16.mxu0 %v4608_v35  ;;  %2625 = vmatprep.subr.bf16.mxu1 %v4610_v8 }
 0xa47   :  { %2585 = vmatpush1.bf16.msra.mxu0 %v4612_v28  ;;  %2626 = vmatpush1.bf16.msra.mxu1 %v4614_v14 }
 0xa48   :  { %2586 = vmatprep.subr.bf16.mxu0 %v4620_v32  ;;  %2627 = vmatprep.subr.bf16.mxu1 %v4622_v15 }
 0xa4b   :  { %2587 = vmatpush1.bf16.msra.mxu0 %v4624_v54  ;;  %2628 = vmatpush1.bf16.msra.mxu1 %v4626_v27 }
 0xa4c   :  { %2588 = vmatprep.subr.bf16.mxu0 %v4632_v55  ;;  %2629 = vmatprep.subr.bf16.mxu1 %v4634_v56 }
 0xa4f   :  { %2589 = vmatpush1.bf16.msra.mxu0 %v4636_v57  ;;  %2630 = vmatpush1.bf16.msra.mxu1 %v4638_v58 }
 0xa50   :  { %2590 = vmatprep.subr.bf16.mxu0 %v4640_v59  ;;  %2631 = vmatprep.subr.bf16.mxu1 %v4642_v60 }
 0xa53   :  { %2591 = vmatpush1.bf16.msra.mxu0 %v4648_v4  ;;  %2632 = vmatpush1.bf16.msra.mxu1 %v4650_v46 }
 0xa54   :  { %2592 = vmatprep.subr.bf16.mxu0 %v4656_v6  ;;  %2633 = vmatprep.subr.bf16.mxu1 %v4658_v47 }
 0xa57   :  { %2593 = vmatpush1.bf16.msra.mxu0 %v4660_v48  ;;  %2634 = vmatpush1.bf16.msra.mxu1 %v4662_v49 }
 0xa58   :  { %2594 = vmatprep.subr.bf16.mxu0 %v4664_v50  ;;  %2635 = vmatprep.subr.bf16.mxu1 %v4668_v51 }
 0xa5b   :  { %2595 = vmatpush1.bf16.msra.mxu0 %v4672_v52  ;;  %2636 = vmatpush1.bf16.msra.mxu1 %v4674_v37 }
 0xa5c   :  { %2695 = vmatprep.subr.bf16.mxu0 %v4584_v23  ;;  %2736 = vmatprep.subr.bf16.mxu1 %v4586_v39 }
 0xafe   :  { %v2499_v29 = vpop.f32.mrf.mxu0  ;;  %v2540_v10 = vpop.f32.mrf.mxu1 }
 0xaff   :  { %v2547_v17 = vadd.f32 %v2499_v29, %v1905_v0  ;;  %v2549_v24 = vadd.f32 %v2540_v10, %v1978_v34 }
 0xb00   :  { %v2501_v26 = vpop.f32.mrf.mxu0  ;;  %v2542_v30 = vpop.f32.mrf.mxu1 }
 0xb01   :  { %v3353_v38 = vmul.f32 -1.442695, %v2547_v17  ;;  %v2548_v5 = vadd.f32 %v2501_v26, %v1907_v33  ;;  %v2550_v3 = vadd.f32 %v2542_v30, %v1980_v20 }
 0xb02   :  { %v2503_v31 = vpop.f32.mrf.mxu0  ;;  %v2544_v53 = vpop.f32.mrf.mxu1 }
 0xb03   :  { %3740 = vpow2.f32 %v3353_v38  ;;  %v3354_v13 = vmul.f32 -1.442695, %v2548_v5  ;;  %v3355_v18 = vmul.f32 -1.442695, %v2550_v3 }
 0xb04   :  { %v2504_v2 = vpop.f32.mrf.mxu0  ;;  %v2545_v19 = vpop.f32.mrf.mxu1 }
 0xb05   :  { %3742 = vpow2.f32 %v3354_v13  ;;  %v5233_v19 = vld [vmem:[#allocation17_spill] sm:$0xff] }
 0xb06   :  { %3744 = vtanh.f32 %v2549_v24  ;;  %v1911_v20 = vadd.f32 %v5233_v19, %v4786_v36 }
 0xb07   :  { %3746 = vpow2.f32 %v3355_v18 }
 0xb10   :  { %v3741_v63 = vpop.eup %3740 }
 0xb11   :  { %v2554_v21 = vadd.f32 1.0, %v3741_v63 }
 0xb12   :  { %v3743_v16 = vpop.eup %3742 }
 0xb13   :  { %3748 = vrcp.f32 %v2554_v21  ;;  %v2560_v11 = vadd.f32 1.0, %v3743_v16  ;;  %v3745_v12 = vpop.eup %3744 }
 0xb14   :  { %v3747_v0 = vpop.eup %3746 }
 0xb15   :  { %3750 = vrcp.f32 %v2560_v11  ;;  %v2567_v61 = vadd.f32 1.0, %v3747_v0  ;;  %v5234_v0 = vld [vmem:[#allocation15_spill] sm:$0xff] }
 0xb17   :  { %3752 = vrcp.f32 %v2567_v61 }
 0xb20   :  { %v3749_v29 = vpop.eup %3748 }
 0xb21   :  { %v2571_v33 = vmul.f32 %v3749_v29, %v3745_v12  ;;  %v1984_v29 = vadd.f32 %v5234_v0, %v4796_v45 }
 0xb22   :  { %v3751_v17 = vpop.eup %3750 }
 0xb23   :  { %v2570_v26 = vmul.f32 %v3751_v17, %v4850_v7  ;;  %v5232_v7 = vld [vmem:[#allocation14_spill] sm:$0xff]  ;;  %v5235_v17 = vld [vmem:[#allocation16_spill] sm:$0xff] }
 0xb24   :  { %v3753_v10 = vpop.eup %3752  ;;  %v1909_v53 = vadd.f32 %v5232_v7, %v4778_v25  ;;  %v1982_v61 = vadd.f32 %v5235_v17, %v4801_v1  ;;  %v4991_v17 = vld [vmem:[#allocation8 + $0x1e0] ss:$16 sps:$4 sm:$0xff]  }
 0xb25   :  { %v4896_v30 = vadd.f32 %v2571_v33, %v2570_v26 }
 0xb27   :  { %3754 = vtanh.f32 %v4896_v30 }
 0xb34   :  { %v3755_v38 = vpop.eup %3754 }
 0xb35   :  { %v2574_v5 = vmul.f32 %v3755_v38, %v3753_v10 }
 0xb37   :  { %v2579_v31 = vpack.c.bf16 %v2574_v5, %v2574_v5 }
 0xb39   :  { %2613 = vmatmul.mubr.bf16.vlgmr.msra.gmra.mxu0 %v2579_v31  ;;  %2654 = vmatmul.mubr.bf16.vlgmr.msra.gmra.mxu1 %v2579_v31 }
 0xb3a   :  { %2696 = vmatpush1.bf16.msra.mxu0 %v4588_v40  ;;  %2737 = vmatpush1.bf16.msra.mxu1 %v4590_v41 }
 0xb3b   :  { %2697 = vmatprep.subr.bf16.mxu0 %v4596_v42  ;;  %2738 = vmatprep.subr.bf16.mxu1 %v4598_v43 }
 0xb3c   :  { %2727 = vmatprep.mubr.bf16.mxu0 %v5185_v22  ;;  %2768 = vmatprep.mubr.bf16.mxu1 %v5185_v22 }
 0xb3e   :  { %2698 = vmatpush1.bf16.msra.mxu0 %v4600_v44  ;;  %2739 = vmatpush1.bf16.msra.mxu1 %v4602_v9 }
 0xb3f   :  { %2699 = vmatprep.subr.bf16.mxu0 %v4608_v35  ;;  %2740 = vmatprep.subr.bf16.mxu1 %v4610_v8 }
 0xb42   :  { %2700 = vmatpush1.bf16.msra.mxu0 %v4612_v28  ;;  %2741 = vmatpush1.bf16.msra.mxu1 %v4614_v14 }
 0xb43   :  { %2701 = vmatprep.subr.bf16.mxu0 %v4620_v32  ;;  %2742 = vmatprep.subr.bf16.mxu1 %v4622_v15 }
 0xb46   :  { %2702 = vmatpush1.bf16.msra.mxu0 %v4624_v54  ;;  %2743 = vmatpush1.bf16.msra.mxu1 %v4626_v27 }
 0xb47   :  { %2703 = vmatprep.subr.bf16.mxu0 %v4632_v55  ;;  %2744 = vmatprep.subr.bf16.mxu1 %v4634_v56 }
 0xb4a   :  { %2704 = vmatpush1.bf16.msra.mxu0 %v4636_v57  ;;  %2745 = vmatpush1.bf16.msra.mxu1 %v4638_v58 }
 0xb4b   :  { %2705 = vmatprep.subr.bf16.mxu0 %v4640_v59  ;;  %2746 = vmatprep.subr.bf16.mxu1 %v4642_v60 }
 0xb4e   :  { %2706 = vmatpush1.bf16.msra.mxu0 %v4648_v4  ;;  %2747 = vmatpush1.bf16.msra.mxu1 %v4650_v46 }
 0xb4f   :  { %2707 = vmatprep.subr.bf16.mxu0 %v4656_v6  ;;  %2748 = vmatprep.subr.bf16.mxu1 %v4658_v47 }
 0xb52   :  { %2708 = vmatpush1.bf16.msra.mxu0 %v4660_v48  ;;  %2749 = vmatpush1.bf16.msra.mxu1 %v4662_v49 }
 0xb53   :  { %2709 = vmatprep.subr.bf16.mxu0 %v4664_v50  ;;  %2750 = vmatprep.subr.bf16.mxu1 %v4668_v51 }
 0xb56   :  { %2710 = vmatpush1.bf16.msra.mxu0 %v4672_v52  ;;  %2751 = vmatpush1.bf16.msra.mxu1 %v4674_v37 }
 0xb57   :  { %2810 = vmatprep.subr.bf16.mxu0 %v4584_v23  ;;  %2851 = vmatprep.subr.bf16.mxu1 %v4586_v39 }
 0xbf9   :  { %v2614_v13 = vpop.f32.mrf.mxu0  ;;  %v2655_v2 = vpop.f32.mrf.mxu1 }
 0xbfa   :  { %v2662_v3 = vadd.f32 %v2614_v13, %v1909_v53  ;;  %v2664_v26 = vadd.f32 %v2655_v2, %v1982_v61  ;;  %v4994_v61 = vld [vmem:[#allocation8 + $0x1e8] ss:$16 sps:$4 sm:$0xff]  }
 0xbfb   :  { %v2616_v62 = vpop.f32.mrf.mxu0  ;;  %v2657_v34 = vpop.f32.mrf.mxu1 }
 0xbfc   :  { %v3356_v24 = vmul.f32 -1.442695, %v2662_v3  ;;  %v2663_v18 = vadd.f32 %v2616_v62, %v1911_v20  ;;  %v2665_v33 = vadd.f32 %v2657_v34, %v1984_v29 }
 0xbfd   :  { %v2618_v63 = vpop.f32.mrf.mxu0  ;;  %v2659_v21 = vpop.f32.mrf.mxu1 }
 0xbfe   :  { %3756 = vpow2.f32 %v3356_v24  ;;  %v3357_v16 = vmul.f32 -1.442695, %v2663_v18  ;;  %v3358_v10 = vmul.f32 -1.442695, %v2665_v33 }
 0xbff   :  { %v2619_v11 = vpop.f32.mrf.mxu0  ;;  %v2660_v12 = vpop.f32.mrf.mxu1 }
 0xc00   :  { %3758 = vpow2.f32 %v3357_v16 }
 0xc01   :  { %3760 = vtanh.f32 %v2664_v26  ;;  %v4997_v26 = vld [vmem:[#allocation8 + $0x1c4] ss:$16 sps:$4 sm:$0xff]  }
 0xc02   :  { %3762 = vpow2.f32 %v3358_v10  ;;  %v5000_v10 = vld [vmem:[#allocation8 + $0x1cc] ss:$16 sps:$4 sm:$0xff]  }
 0xc0b   :  { %v3757_v38 = vpop.eup %3756 }
 0xc0c   :  { %v2669_v5 = vadd.f32 1.0, %v3757_v38  ;;  %v5005_v38 = vld [vmem:[#allocation8 + $0x1c0] ss:$16 sps:$4 sm:$0xff]  }
 0xc0d   :  { %v3759_v31 = vpop.eup %3758 }
 0xc0e   :  { %3764 = vrcp.f32 %v2669_v5  ;;  %v2675_v7 = vadd.f32 1.0, %v3759_v31  ;;  %v3761_v53 = vpop.eup %3760  ;;  %v5008_v5 = vld [vmem:[#allocation8 + $0x1c8] ss:$16 sps:$4 sm:$0xff]   ;;  %v5011_v31 = vld [vmem:[#allocation8 + $0x1a4] ss:$16 sps:$4 sm:$0xff]  }
 0xc0f   :  { %v3763_v13 = vpop.eup %3762 }
 0xc10   :  { %3766 = vrcp.f32 %v2675_v7  ;;  %v2682_v62 = vadd.f32 1.0, %v3763_v13  ;;  %v5014_v7 = vld [vmem:[#allocation8 + $0x1ac] ss:$16 sps:$4 sm:$0xff]   ;;  %v5020_v13 = vld [vmem:[#allocation8 + $0x1a8] ss:$16 sps:$4 sm:$0xff]  }
 0xc12   :  { %3768 = vrcp.f32 %v2682_v62  ;;  %v5032_v62 = vld [vmem:[#allocation8 + $0x188] ss:$16 sps:$4 sm:$0xff]  }
 0xc1b   :  { %v3765_v19 = vpop.eup %3764 }
 0xc1c   :  { %v2686_v20 = vmul.f32 %v3765_v19, %v3761_v53  ;;  %v5017_v53 = vld [vmem:[#allocation8 + $0x1a0] ss:$16 sps:$4 sm:$0xff]   ;;  %v5023_v19 = vld [vmem:[#allocation8 + $0x184] ss:$16 sps:$4 sm:$0xff]  }
 0xc1d   :  { %v3767_v3 = vpop.eup %3766 }
 0xc1e   :  { %v2685_v34 = vmul.f32 %v3767_v3, %v4896_v30  ;;  %v5029_v3 = vld [vmem:[#allocation8 + $0x180] ss:$16 sps:$4 sm:$0xff]  }
 0xc1f   :  { %v3769_v2 = vpop.eup %3768 }
 0xc20   :  { %v4942_v24 = vadd.f32 %v2686_v20, %v2685_v34  ;;  %v5026_v20 = vld [vmem:[#allocation8 + $0x18c] ss:$16 sps:$4 sm:$0xff]   ;;  %v5035_v34 = vld [vmem:[#allocation8 + $0x164] ss:$16 sps:$4 sm:$0xff]  }
 0xc22   :  { %3770 = vtanh.f32 %v4942_v24 }
 0xc2f   :  { %v3771_v18 = vpop.eup %3770 }
 0xc30   :  { %v2689_v63 = vmul.f32 %v3771_v18, %v3769_v2  ;;  %v5041_v2 = vld [vmem:[#allocation8 + $0x160] ss:$16 sps:$4 sm:$0xff]   ;;  %v5044_v18 = vld [vmem:[#allocation8 + $0x168] ss:$16 sps:$4 sm:$0xff]  }
 0xc32   :  { %v2694_v21 = vpack.c.bf16 %v2689_v63, %v2689_v63  ;;  %v5047_v63 = vld [vmem:[#allocation8 + $0x144] ss:$16 sps:$4 sm:$0xff]  }
 0xc34   :  { %2728 = vmatmul.mubr.bf16.vlgmr.msra.gmra.mxu0 %v2694_v21  ;;  %2769 = vmatmul.mubr.bf16.vlgmr.msra.gmra.mxu1 %v2694_v21  ;;  %v5050_v21 = vld [vmem:[#allocation8 + $0x14c] ss:$16 sps:$4 sm:$0xff]  }
 0xc35   :  { %2811 = vmatpush1.bf16.msra.mxu0 %v4588_v40  ;;  %2852 = vmatpush1.bf16.msra.mxu1 %v4590_v41  ;;  %v5236_v40 = vld [vmem:[#allocation18_spill] sm:$0xff] }
 0xc36   :  { %2812 = vmatprep.subr.bf16.mxu0 %v4596_v42  ;;  %2853 = vmatprep.subr.bf16.mxu1 %v4598_v43  ;;  %v1915_v41 = vadd.f32 %v5236_v40, %v4778_v25  ;;  %v5053_v40 = vld [vmem:[#allocation8 + $0x140] ss:$16 sps:$4 sm:$0xff]  }
 0xc37   :  { %2842 = vmatprep.mubr.bf16.mxu0 %v5185_v22  ;;  %2883 = vmatprep.mubr.bf16.mxu1 %v5185_v22 }
 0xc39   :  { %2813 = vmatpush1.bf16.msra.mxu0 %v4600_v44  ;;  %2854 = vmatpush1.bf16.msra.mxu1 %v4602_v9  ;;  %v5237_v44 = vld [vmem:[#allocation21_spill] sm:$0xff] }
 0xc3a   :  { %2814 = vmatprep.subr.bf16.mxu0 %v4608_v35  ;;  %2855 = vmatprep.subr.bf16.mxu1 %v4610_v8  ;;  %v1917_v9 = vadd.f32 %v5237_v44, %v4786_v36  ;;  %v5065_v44 = vld [vmem:[#allocation8 + $0x120] ss:$16 sps:$4 sm:$0xff]  }
 0xc3d   :  { %2815 = vmatpush1.bf16.msra.mxu0 %v4612_v28  ;;  %2856 = vmatpush1.bf16.msra.mxu1 %v4614_v14 }
 0xc3e   :  { %2816 = vmatprep.subr.bf16.mxu0 %v4620_v32  ;;  %2857 = vmatprep.subr.bf16.mxu1 %v4622_v15 }
 0xc41   :  { %2817 = vmatpush1.bf16.msra.mxu0 %v4624_v54  ;;  %2858 = vmatpush1.bf16.msra.mxu1 %v4626_v27 }
 0xc42   :  { %2818 = vmatprep.subr.bf16.mxu0 %v4632_v55  ;;  %2859 = vmatprep.subr.bf16.mxu1 %v4634_v56 }
 0xc45   :  { %2819 = vmatpush1.bf16.msra.mxu0 %v4636_v57  ;;  %2860 = vmatpush1.bf16.msra.mxu1 %v4638_v58  ;;  %v5239_v58 = vld [vmem:[#allocation20_spill] sm:$0xff] }
 0xc46   :  { %2820 = vmatprep.subr.bf16.mxu0 %v4640_v59  ;;  %2861 = vmatprep.subr.bf16.mxu1 %v4642_v60  ;;  %v1988_v59 = vadd.f32 %v5239_v58, %v4801_v1 }
 0xc49   :  { %2821 = vmatpush1.bf16.msra.mxu0 %v4648_v4  ;;  %2862 = vmatpush1.bf16.msra.mxu1 %v4650_v46 }
 0xc4a   :  { %2822 = vmatprep.subr.bf16.mxu0 %v4656_v6  ;;  %2863 = vmatprep.subr.bf16.mxu1 %v4658_v47 }
 0xc4d   :  { %2823 = vmatpush1.bf16.msra.mxu0 %v4660_v48  ;;  %2864 = vmatpush1.bf16.msra.mxu1 %v4662_v49 }
 0xc4e   :  { %2824 = vmatprep.subr.bf16.mxu0 %v4664_v50  ;;  %2865 = vmatprep.subr.bf16.mxu1 %v4668_v51 }
 0xc51   :  { %2825 = vmatpush1.bf16.msra.mxu0 %v4672_v52  ;;  %2866 = vmatpush1.bf16.msra.mxu1 %v4674_v37 }
 0xc52   :  { %2925 = vmatprep.subr.bf16.mxu0 %v4584_v23  ;;  %2966 = vmatprep.subr.bf16.mxu1 %v4586_v39  ;;  %v5238_v39 = vld [vmem:[#allocation19_spill] sm:$0xff] }
 0xc53   :  { %v1990_v56 = vadd.f32 %v5238_v39, %v4796_v45  ;;  %v5241_v39 = vld [vmem:[#allocation25_spill] sm:$0xff] }
 0xcf4   :  { %v2729_v42 = vpop.f32.mrf.mxu0  ;;  %v2770_v43 = vpop.f32.mrf.mxu1 }
 0xcf5   :  { %v2777_v35 = vadd.f32 %v2729_v42, %v1915_v41  ;;  %v2779_v60 = vadd.f32 %v2770_v43, %v1988_v59  ;;  %v5056_v41 = vld [vmem:[#allocation8 + $0x148] ss:$16 sps:$4 sm:$0xff]   ;;  %v5059_v42 = vld [vmem:[#allocation8 + $0x124] ss:$16 sps:$4 sm:$0xff]   ;;  %v5062_v43 = vld [vmem:[#allocation8 + $0x12c] ss:$16 sps:$4 sm:$0xff]  }
 0xcf6   :  { %v2731_v8 = vpop.f32.mrf.mxu0  ;;  %v2772_v28 = vpop.f32.mrf.mxu1 }
 0xcf7   :  { %v3359_v14 = vmul.f32 -1.442695, %v2777_v35  ;;  %v2778_v32 = vadd.f32 %v2731_v8, %v1917_v9  ;;  %v2780_v57 = vadd.f32 %v2772_v28, %v1990_v56  ;;  %v5068_v9 = vld [vmem:[#allocation8 + $0x128] ss:$16 sps:$4 sm:$0xff]   ;;  %v5071_v35 = vld [vmem:[#allocation8 + $0x104] ss:$16 sps:$4 sm:$0xff]   ;;  %v1921_v56 = vadd.f32 %v5241_v39, %v4786_v36 }
 0xcf8   :  { %v2733_v15 = vpop.f32.mrf.mxu0  ;;  %v2774_v54 = vpop.f32.mrf.mxu1  ;;  %v5074_v8 = vld [vmem:[#allocation8 + $0x10c] ss:$16 sps:$4 sm:$0xff]   ;;  %v5077_v28 = vld [vmem:[#allocation8 + $0x100] ss:$16 sps:$4 sm:$0xff]  }
 0xcf9   :  { %3772 = vpow2.f32 %v3359_v14  ;;  %v3360_v27 = vmul.f32 -1.442695, %v2778_v32  ;;  %v3361_v4 = vmul.f32 -1.442695, %v2780_v57  ;;  %v5080_v14 = vld [vmem:[#allocation8 + $0x108] ss:$16 sps:$4 sm:$0xff]  }
 0xcfa   :  { %v2734_v23 = vpop.f32.mrf.mxu0  ;;  %v2775_v55 = vpop.f32.mrf.mxu1  ;;  %v3902_v32 = vld [vmem:[#allocation8 + $0x1e4] ss:$16 sps:$4 sm:$0xff]   ;;  %v3903_v15 = vld [vmem:[#allocation8 + $0x1ec] ss:$16 sps:$4 sm:$0xff]  }
 0xcfb   :  { %3774 = vpow2.f32 %v3360_v27  ;;  %v5240_v54 = vld [vmem:[#allocation22_spill] sm:$0xff] }
 0xcfc   :  { %3776 = vtanh.f32 %v2779_v60  ;;  %v1919_v27 = vadd.f32 %v5240_v54, %v4778_v25 }
 0xcfd   :  { %3778 = vpow2.f32 %v3361_v4 }
 0xd06   :  { %v3773_v46 = vpop.eup %3772 }
 0xd07   :  { %v2784_v6 = vadd.f32 1.0, %v3773_v46 }
 0xd08   :  { %v3775_v47 = vpop.eup %3774 }
 0xd09   :  { %3780 = vrcp.f32 %v2784_v6  ;;  %v2790_v48 = vadd.f32 1.0, %v3775_v47  ;;  %v3777_v49 = vpop.eup %3776 }
 0xd0a   :  { %v3779_v50 = vpop.eup %3778 }
 0xd0b   :  { %3782 = vrcp.f32 %v2790_v48  ;;  %v2797_v30 = vadd.f32 1.0, %v3779_v50  ;;  %v5242_v50 = vld [vmem:[#allocation23_spill] sm:$0xff] }
 0xd0d   :  { %3784 = vrcp.f32 %v2797_v30 }
 0xd16   :  { %v3781_v51 = vpop.eup %3780 }
 0xd17   :  { %v2801_v52 = vmul.f32 %v3781_v51, %v3777_v49  ;;  %v1994_v51 = vadd.f32 %v5242_v50, %v4796_v45 }
 0xd18   :  { %v3783_v37 = vpop.eup %3782 }
 0xd19   :  { %v2800_v16 = vmul.f32 %v3783_v37, %v4942_v24  ;;  %v5038_v24 = vld [vmem:[#allocation8 + $0x16c] ss:$16 sps:$4 sm:$0xff]   ;;  %v5243_v37 = vld [vmem:[#allocation24_spill] sm:$0xff] }
 0xd1a   :  { %v3785_v12 = vpop.eup %3784  ;;  %v1992_v30 = vadd.f32 %v5243_v37, %v4801_v1 }
 0xd1b   :  { %v4988_v11 = vadd.f32 %v2801_v52, %v2800_v16 }
 0xd1d   :  { %3786 = vtanh.f32 %v4988_v11 }
 0xd2a   :  { %v3787_v0 = vpop.eup %3786 }
 0xd2b   :  { %v2804_v29 = vmul.f32 %v3787_v0, %v3785_v12 }
 0xd2d   :  { %v2809_v33 = vpack.c.bf16 %v2804_v29, %v2804_v29 }
 0xd2f   :  { %2843 = vmatmul.mubr.bf16.vlgmr.msra.gmra.mxu0 %v2809_v33  ;;  %2884 = vmatmul.mubr.bf16.vlgmr.msra.gmra.mxu1 %v2809_v33 }
 0xd30   :  { %2926 = vmatpush1.bf16.msra.mxu0 %v4991_v17  ;;  %2967 = vmatpush1.bf16.msra.mxu1 %v4994_v61 }
 0xd31   :  { %2927 = vmatprep.subr.bf16.mxu0 %v4997_v26  ;;  %2968 = vmatprep.subr.bf16.mxu1 %v5000_v10 }
 0xd32   :  { %2957 = vmatprep.mubr.bf16.mxu0 %v5185_v22  ;;  %2998 = vmatprep.mubr.bf16.mxu1 %v5185_v22 }
 0xd34   :  { %2928 = vmatpush1.bf16.msra.mxu0 %v5005_v38  ;;  %2969 = vmatpush1.bf16.msra.mxu1 %v5008_v5 }
 0xd35   :  { %2929 = vmatprep.subr.bf16.mxu0 %v5011_v31  ;;  %2970 = vmatprep.subr.bf16.mxu1 %v5014_v7 }
 0xd38   :  { %2930 = vmatpush1.bf16.msra.mxu0 %v5017_v53  ;;  %2971 = vmatpush1.bf16.msra.mxu1 %v5020_v13 }
 0xd39   :  { %2931 = vmatprep.subr.bf16.mxu0 %v5023_v19  ;;  %2972 = vmatprep.subr.bf16.mxu1 %v5026_v20 }
 0xd3c   :  { %2932 = vmatpush1.bf16.msra.mxu0 %v5029_v3  ;;  %2973 = vmatpush1.bf16.msra.mxu1 %v5032_v62 }
 0xd3d   :  { %2933 = vmatprep.subr.bf16.mxu0 %v5035_v34  ;;  %2974 = vmatprep.subr.bf16.mxu1 %v5038_v24 }
 0xd40   :  { %2934 = vmatpush1.bf16.msra.mxu0 %v5041_v2  ;;  %2975 = vmatpush1.bf16.msra.mxu1 %v5044_v18 }
 0xd41   :  { %2935 = vmatprep.subr.bf16.mxu0 %v5047_v63  ;;  %2976 = vmatprep.subr.bf16.mxu1 %v5050_v21 }
 0xd44   :  { %2936 = vmatpush1.bf16.msra.mxu0 %v5053_v40  ;;  %2977 = vmatpush1.bf16.msra.mxu1 %v5056_v41 }
 0xd45   :  { %2937 = vmatprep.subr.bf16.mxu0 %v5059_v42  ;;  %2978 = vmatprep.subr.bf16.mxu1 %v5062_v43 }
 0xd48   :  { %2938 = vmatpush1.bf16.msra.mxu0 %v5065_v44  ;;  %2979 = vmatpush1.bf16.msra.mxu1 %v5068_v9 }
 0xd49   :  { %2939 = vmatprep.subr.bf16.mxu0 %v5071_v35  ;;  %2980 = vmatprep.subr.bf16.mxu1 %v5074_v8 }
 0xd4c   :  { %2940 = vmatpush1.bf16.msra.mxu0 %v5077_v28  ;;  %2981 = vmatpush1.bf16.msra.mxu1 %v5080_v14 }
 0xd4d   :  { %3040 = vmatprep.subr.bf16.mxu0 %v3902_v32  ;;  %3081 = vmatprep.subr.bf16.mxu1 %v3903_v15 }
 0xdef   :  { %v2844_v23 = vpop.f32.mrf.mxu0  ;;  %v2885_v55 = vpop.f32.mrf.mxu1 }
 0xdf0   :  { %v2892_v57 = vadd.f32 %v2844_v23, %v1919_v27  ;;  %v2894_v16 = vadd.f32 %v2885_v55, %v1992_v30 }
 0xdf1   :  { %v2846_v58 = vpop.f32.mrf.mxu0  ;;  %v2887_v59 = vpop.f32.mrf.mxu1 }
 0xdf2   :  { %v3362_v60 = vmul.f32 -1.442695, %v2892_v57  ;;  %v2893_v4 = vadd.f32 %v2846_v58, %v1921_v56  ;;  %v2895_v52 = vadd.f32 %v2887_v59, %v1994_v51 }
 0xdf3   :  { %v2848_v46 = vpop.f32.mrf.mxu0  ;;  %v2889_v6 = vpop.f32.mrf.mxu1 }
 0xdf4   :  { %3788 = vpow2.f32 %v3362_v60  ;;  %v3363_v47 = vmul.f32 -1.442695, %v2893_v4  ;;  %v3364_v12 = vmul.f32 -1.442695, %v2895_v52  ;;  %v5248_v52 = vld [vmem:[#allocation30_spill] sm:$0xff] }
 0xdf5   :  { %v2849_v48 = vpop.f32.mrf.mxu0  ;;  %v2890_v49 = vpop.f32.mrf.mxu1  ;;  %v1929_v37 = vadd.f32 %v5248_v52, %v4778_v25 }
 0xdf6   :  { %3790 = vpow2.f32 %v3363_v47 }
 0xdf7   :  { %3792 = vtanh.f32 %v2894_v16 }
 0xdf8   :  { %3794 = vpow2.f32 %v3364_v12  ;;  %v5249_v12 = vld [vmem:[#allocation12_spill] sm:$0xff] }
 0xe01   :  { %v3789_v0 = vpop.eup %3788 }
 0xe02   :  { %v2899_v29 = vadd.f32 1.0, %v3789_v0  ;;  %v1931_v0 = vadd.f32 %v5249_v12, %v4786_v36 }
 0xe03   :  { %v3791_v33 = vpop.eup %3790 }
 0xe04   :  { %3796 = vrcp.f32 %v2899_v29  ;;  %v2905_v32 = vadd.f32 1.0, %v3791_v33  ;;  %v3793_v15 = vpop.eup %3792 }
 0xe05   :  { %v3795_v54 = vpop.eup %3794 }
 0xe06   :  { %3798 = vrcp.f32 %v2905_v32  ;;  %v2912_v56 = vadd.f32 1.0, %v3795_v54 }
 0xe08   :  { %3800 = vrcp.f32 %v2912_v56 }
 0xe11   :  { %v3797_v27 = vpop.eup %3796 }
 0xe12   :  { %v2916_v23 = vmul.f32 %v3797_v27, %v3793_v15 }
 0xe13   :  { %v3799_v39 = vpop.eup %3798 }
 0xe14   :  { %v2915_v57 = vmul.f32 %v3799_v39, %v4988_v11 }
 0xe15   :  { %v3801_v55 = vpop.eup %3800 }
 0xe16   :  { %v5092_v58 = vadd.f32 %v2916_v23, %v2915_v57 }
 0xe18   :  { %3802 = vtanh.f32 %v5092_v58 }
 0xe25   :  { %v3803_v59 = vpop.eup %3802 }
 0xe26   :  { %v2919_v60 = vmul.f32 %v3803_v59, %v3801_v55  ;;  %v5251_v59 = vld [vmem:[#allocation31_spill] sm:$0xff] }
 0xe28   :  { %v2924_v4 = vpack.c.bf16 %v2919_v60, %v2919_v60  ;;  %v2002_v60 = vadd.f32 %v5251_v59, %v4801_v1 }
 0xe2a   :  { %2958 = vmatmul.mubr.bf16.vlgmr.msra.gmra.mxu0 %v2924_v4  ;;  %2999 = vmatmul.mubr.bf16.vlgmr.msra.gmra.mxu1 %v2924_v4 }
 0xe2b   :  { %3041 = vmatpush1.bf16.msra.mxu0 %v4991_v17  ;;  %3082 = vmatpush1.bf16.msra.mxu1 %v4994_v61 }
 0xe2c   :  { %3042 = vmatprep.subr.bf16.mxu0 %v4997_v26  ;;  %3083 = vmatprep.subr.bf16.mxu1 %v5000_v10  ;;  %v5245_v26 = vld [vmem:[#allocation29_spill] sm:$0xff] }
 0xe2d   :  { %3072 = vmatprep.mubr.bf16.mxu0 %v5185_v22  ;;  %3113 = vmatprep.mubr.bf16.mxu1 %v5185_v22  ;;  %v5244_v22 = vld [vmem:[#allocation26_spill] sm:$0xff]  ;;  %v1927_v10 = vadd.f32 %v5245_v26, %v4786_v36 }
 0xe2e   :  { %v1925_v11 = vadd.f32 %v5244_v22, %v4778_v25 }
 0xe2f   :  { %3043 = vmatpush1.bf16.msra.mxu0 %v5005_v38  ;;  %3084 = vmatpush1.bf16.msra.mxu1 %v5008_v5 }
 0xe30   :  { %3044 = vmatprep.subr.bf16.mxu0 %v5011_v31  ;;  %3085 = vmatprep.subr.bf16.mxu1 %v5014_v7 }
 0xe33   :  { %3045 = vmatpush1.bf16.msra.mxu0 %v5017_v53  ;;  %3086 = vmatpush1.bf16.msra.mxu1 %v5020_v13 }
 0xe34   :  { %3046 = vmatprep.subr.bf16.mxu0 %v5023_v19  ;;  %3087 = vmatprep.subr.bf16.mxu1 %v5026_v20 }
 0xe37   :  { %3047 = vmatpush1.bf16.msra.mxu0 %v5029_v3  ;;  %3088 = vmatpush1.bf16.msra.mxu1 %v5032_v62 }
 0xe38   :  { %3048 = vmatprep.subr.bf16.mxu0 %v5035_v34  ;;  %3089 = vmatprep.subr.bf16.mxu1 %v5038_v24  ;;  %v5246_v34 = vld [vmem:[#allocation27_spill] sm:$0xff] }
 0xe39   :  { %v2000_v24 = vadd.f32 %v5246_v34, %v4796_v45 }
 0xe3b   :  { %3049 = vmatpush1.bf16.msra.mxu0 %v5041_v2  ;;  %3090 = vmatpush1.bf16.msra.mxu1 %v5044_v18  ;;  %v5247_v18 = vld [vmem:[#allocation28_spill] sm:$0xff] }
 0xe3c   :  { %3050 = vmatprep.subr.bf16.mxu0 %v5047_v63  ;;  %3091 = vmatprep.subr.bf16.mxu1 %v5050_v21  ;;  %v1998_v63 = vadd.f32 %v5247_v18, %v4801_v1 }
 0xe3f   :  { %3051 = vmatpush1.bf16.msra.mxu0 %v5053_v40  ;;  %3092 = vmatpush1.bf16.msra.mxu1 %v5056_v41 }
 0xe40   :  { %3052 = vmatprep.subr.bf16.mxu0 %v5059_v42  ;;  %3093 = vmatprep.subr.bf16.mxu1 %v5062_v43 }
 0xe43   :  { %3053 = vmatpush1.bf16.msra.mxu0 %v5065_v44  ;;  %3094 = vmatpush1.bf16.msra.mxu1 %v5068_v9 }
 0xe44   :  { %3054 = vmatprep.subr.bf16.mxu0 %v5071_v35  ;;  %3095 = vmatprep.subr.bf16.mxu1 %v5074_v8 }
 0xe47   :  { %3055 = vmatpush1.bf16.msra.mxu0 %v5077_v28  ;;  %3096 = vmatpush1.bf16.msra.mxu1 %v5080_v14 }
 0xeea   :  { %v2959_v17 = vpop.f32.mrf.mxu0  ;;  %v3000_v61 = vpop.f32.mrf.mxu1 }
 0xeeb   :  { %v3007_v38 = vadd.f32 %v2959_v17, %v1925_v11  ;;  %v3009_v21 = vadd.f32 %v3000_v61, %v1998_v63 }
 0xeec   :  { %v2961_v5 = vpop.f32.mrf.mxu0  ;;  %v3002_v31 = vpop.f32.mrf.mxu1 }
 0xeed   :  { %v3365_v7 = vmul.f32 -1.442695, %v3007_v38  ;;  %v3008_v53 = vadd.f32 %v2961_v5, %v1927_v10  ;;  %v3010_v2 = vadd.f32 %v3002_v31, %v2000_v24 }
 0xeee   :  { %v2963_v13 = vpop.f32.mrf.mxu0  ;;  %v3004_v19 = vpop.f32.mrf.mxu1 }
 0xeef   :  { %3804 = vpow2.f32 %v3365_v7  ;;  %v3366_v20 = vmul.f32 -1.442695, %v3008_v53  ;;  %v3367_v40 = vmul.f32 -1.442695, %v3010_v2  ;;  %v3371_v19 = vld [vmem:[%s5154_s4] ss:$0 sm:$0xff] }
 0xef0   :  { %v2964_v3 = vpop.f32.mrf.mxu0  ;;  %v3005_v62 = vpop.f32.mrf.mxu1 }
 0xef1   :  { %3806 = vpow2.f32 %v3366_v20  ;;  %v3372_v62 = vld [vmem:[#allocation5] ss:$0 sm:$0xff] }
 0xef2   :  { %3808 = vtanh.f32 %v3009_v21 }
 0xef3   :  { %3810 = vpow2.f32 %v3367_v40 }
 0xefc   :  { %v3805_v41 = vpop.eup %3804 }
 0xefd   :  { %v3014_v42 = vadd.f32 1.0, %v3805_v41 }
 0xefe   :  { %v3807_v43 = vpop.eup %3806 }
 0xeff   :  { %3812 = vrcp.f32 %v3014_v42  ;;  %v3020_v44 = vadd.f32 1.0, %v3807_v43  ;;  %v3809_v9 = vpop.eup %3808 }
 0xf00   :  { %v3811_v35 = vpop.eup %3810 }
 0xf01   :  { %3814 = vrcp.f32 %v3020_v44  ;;  %v3027_v46 = vadd.f32 1.0, %v3811_v35 }
 0xf03   :  { %3816 = vrcp.f32 %v3027_v46 }
 0xf0c   :  { %v3813_v8 = vpop.eup %3812 }
 0xf0d   :  { %v3031_v28 = vmul.f32 %v3813_v8, %v3809_v9 }
 0xf0e   :  { %v3815_v14 = vpop.eup %3814 }
 0xf0f   :  { %v3030_v6 = vmul.f32 %v3815_v14, %v5092_v58  ;;  %v5250_v58 = vld [vmem:[#allocation32_spill] sm:$0xff] }
 0xf10   :  { %v3817_v48 = vpop.eup %3816  ;;  %v2004_v25 = vadd.f32 %v5250_v58, %v4796_v45 }
 0xf11   :  { %v3032_v47 = vadd.f32 %v3031_v28, %v3030_v6 }
 0xf13   :  { %3818 = vtanh.f32 %v3032_v47 }
 0xf20   :  { %v3819_v49 = vpop.eup %3818 }
 0xf21   :  { %v3034_v50 = vmul.f32 %v3819_v49, %v3817_v48 }
 0xf23   :  { %v3039_v51 = vpack.c.bf16 %v3034_v50, %v3034_v50 }
 0xf25   :  { %3073 = vmatmul.mubr.bf16.vlgmr.msra.gmra.mxu0 %v3039_v51  ;;  %3114 = vmatmul.mubr.bf16.vlgmr.msra.gmra.mxu1 %v3039_v51 }
 0xfe5   :  { %v3074_v30 = vpop.f32.mrf.mxu0  ;;  %v3115_v16 = vpop.f32.mrf.mxu1 }
 0xfe6   :  { %v3122_v29 = vadd.f32 %v3074_v30, %v1929_v37  ;;  %v3124_v36 = vadd.f32 %v3115_v16, %v2002_v60 }
 0xfe7   :  { %v3076_v33 = vpop.f32.mrf.mxu0  ;;  %v3117_v32 = vpop.f32.mrf.mxu1 }
 0xfe8   :  { %v3368_v15 = vmul.f32 -1.442695, %v3122_v29  ;;  %v3123_v54 = vadd.f32 %v3076_v33, %v1931_v0  ;;  %v3125_v55 = vadd.f32 %v3117_v32, %v2004_v25 }
 0xfe9   :  { %v3078_v27 = vpop.f32.mrf.mxu0  ;;  %v3119_v23 = vpop.f32.mrf.mxu1 }
 0xfea   :  { %3820 = vpow2.f32 %v3368_v15  ;;  %v3369_v39 = vmul.f32 -1.442695, %v3123_v54  ;;  %v3370_v4 = vmul.f32 -1.442695, %v3125_v55 }
 0xfeb   :  { %v3079_v56 = vpop.f32.mrf.mxu0  ;;  %v3120_v57 = vpop.f32.mrf.mxu1 }
 0xfec   :  { %3822 = vpow2.f32 %v3369_v39 }
 0xfed   :  { %3824 = vtanh.f32 %v3124_v36 }
 0xfee   :  { %3826 = vpow2.f32 %v3370_v4 }
 0xff7   :  { %v3821_v22 = vpop.eup %3820 }
 0xff8   :  { %v3129_v11 = vadd.f32 1.0, %v3821_v22 }
 0xff9   :  { %v3823_v17 = vpop.eup %3822 }
 0xffa   :  { %3828 = vrcp.f32 %v3129_v11  ;;  %v3135_v61 = vadd.f32 1.0, %v3823_v17  ;;  %v3825_v26 = vpop.eup %3824 }
 0xffb   :  { %v3827_v10 = vpop.eup %3826 }
 0xffc   :  { %3830 = vrcp.f32 %v3135_v61  ;;  %v3142_v45 = vadd.f32 1.0, %v3827_v10 }
 0xffe   :  { %3832 = vrcp.f32 %v3142_v45 }
0x1007   :  { %v3829_v38 = vpop.eup %3828 }
0x1008   :  { %v3146_v5 = vmul.f32 %v3829_v38, %v3825_v26 }
0x1009   :  { %v3831_v31 = vpop.eup %3830 }
0x100a   :  { %v3145_v7 = vmul.f32 %v3831_v31, %v3032_v47 }
0x100b   :  { %v3833_v1 = vpop.eup %3832 }
0x100c   :  { %v3147_v53 = vadd.f32 %v3146_v5, %v3145_v7 }
0x100e   :  { %3834 = vtanh.f32 %v3147_v53 }
0x101b   :  { %v3835_v13 = vpop.eup %3834 }
0x101c   :  { %v3149_v20 = vmul.f32 %v3835_v13, %v3833_v1 }
0x101e   :  { %v3157_v3 = vmul.f32 %v3371_v19, %v3149_v20 }
0x1020   :  { %3158 = vadd.xlane.f32.xlu0 %v3157_v3 }
0x10a9   :  { %v3159_v34 = vpop.xlane.xlu0 %3158 }
0x10aa   :  { %v3167_v24 = vadd.f32 %v3372_v62, %v3159_v34 }
0x10ac   :  { %v3373_v2 = vmul.f32 -1.442695, %v3167_v24 }
0x10ae   :  { %3836 = vpow2.f32 %v3373_v2 }
0x10bb   :  { %v3837_v18 = vpop.eup %3836 }
0x10bc   :  { %v3171_v63 = vadd.f32 1.0, %v3837_v18 }
0x10be   :  { %3838 = vrcp.f32 %v3171_v63 }
0x10cb   :  { %v3839_v21 = vpop.eup %3838 }
0x10cc   :  { %3176 = vperm.xlu0 %3379, %v3839_v21  }
0x1147   :  { %v3177_v40 = vpop.permute.xlu0 %3176 }
0x1148   :  { %3179 = vst [vmem:[%s5156_s6] sm:$0xff] %v3177_v40 }
0x1149   :  { %3184 = vsyncpa [#allocation7], 1 }
0x114a   :  { %3185 = vsyncpa [#allocation9], 1 }

</bundles_post_ra>
